<compile_context>
chip_gen: v7x
topology: tpu7x:2x2x1
jax: 0.10.0
libtpu: 0.0.40
codegen_flags: <defaults>
</compile_context>

<pallas_src>
import math

import numpy as np
import jax
import jax.numpy as jnp
from jax.experimental import pallas as pl
from jax.experimental.pallas import tpu as pltpu

EPS = 1e-5
N_BLOCKS = 4                      # same lstm_block repeated 4 times -> shared weights

# Flat layout of the conv taps inside the SMEM vector:
#   w1: (3,1,3) -> [0, 9),  w2: (3,3,5) -> [9, 54),  w3: (1,3,3) -> [54, 63)
_W1_OFF, _W2_OFF, _W3_OFF, _N_TAPS = 0, 9, 54, 63


# ----------------------------- Pallas kernel ---------------------------------
def _shifted(h, o, lane, L):
    """y[:, i] = h[:, i + o], zero-filled outside [0, L) (Conv1d zero padding)."""
    if o == 0:
        return h
    y = pltpu.roll(h, shift=(-o) % L, axis=1)        # circular lane rotate (XLU slot)
    if o > 0:
        return jnp.where(lane < (L - o), y, 0.0)      # zero the wrapped-around lanes
    return jnp.where(lane >= (-o), y, 0.0)


def _bn_relu(h, inv_count):
    """Training-mode BatchNorm1d (batch stats, biased var, gamma=1, beta=0) + ReLU
    for one channel slab (N, L).  Single-pass stats: sum and sum-of-squares."""
    s = jnp.sum(h)
    ss = jnp.sum(h * h)
    mean = s * inv_count
    var = ss * inv_count - mean * mean
    return jnp.maximum((h - mean) * jax.lax.rsqrt(var + EPS), 0.0)


def _fma_sum(terms):
    acc = terms[0]
    for t in terms[1:]:
        acc = acc + t
    return acc


def lstm_conv_kernel(x_ref, taps_ref, o_ref):
    N, L = x_ref.shape
    inv_count = 1.0 / float(N * L)
    lane = jax.lax.broadcasted_iota(jnp.int32, (N, L), 1)

    # Read all conv taps (scalars) from SMEM once; reused across the 4 unrolled blocks.
    w1 = [[taps_ref[_W1_OFF + co * 3 + k] for k in range(3)] for co in range(3)]
    w2 = [[[taps_ref[_W2_OFF + co * 15 + ci * 5 + k] for k in range(5)]
           for ci in range(3)] for co in range(3)]
    w3 = [[taps_ref[_W3_OFF + ci * 3 + k] for k in range(3)] for ci in range(3)]

    x = x_ref[...]                                    # (N, L) float32, stays resident

    for _ in range(N_BLOCKS):
        # conv1: 1 -> 3 channels, k=3, pad=1, dil=1   (input offsets -1, 0, +1)
        xs = {o: _shifted(x, o, lane, L) for o in (-1, 0, 1)}
        h1 = [_bn_relu(_fma_sum([w1[co][k] * xs[k - 1] for k in range(3)]), inv_count)
              for co in range(3)]

        # conv2: 3 -> 3 channels, k=5, pad=2, dil=1   (offsets -2..+2, shared per ci)
        h1s = [{o: _shifted(h1[ci], o, lane, L) for o in (-2, -1, 0, 1, 2)}
               for ci in range(3)]
        h2 = [_bn_relu(_fma_sum([w2[co][ci][k] * h1s[ci][k - 2]
                                 for ci in range(3) for k in range(5)]), inv_count)
              for co in range(3)]

        # conv3: 3 -> 1 channel, k=3, pad=2, dil=2    (offsets -2, 0, +2)
        h2s = [{o: _shifted(h2[ci], o, lane, L) for o in (-2, 0, 2)} for ci in range(3)]
        out = _bn_relu(_fma_sum([w3[ci][k] * h2s[ci][2 * k - 2]
                                 for ci in range(3) for k in range(3)]), inv_count)

        # residual add + final ReLU   (out += residual; relu; squeeze)
        x = jnp.maximum(out + x, 0.0)

    o_ref[...] = x


def lstm_conv_pallas(x, taps):
    N, L = x.shape
    # Rough cost hint: 63 MACs/element per block for the convs + BN/ReLU elementwise work.
    cost = pl.CostEstimate(
        flops=N_BLOCKS * (2 * 63 + 7 * 8 + 4) * N * L,
        transcendentals=N_BLOCKS * 7,                 # one rsqrt per BatchNorm channel
        bytes_accessed=2 * N * L * 4 + taps.size * 4,
    )
    return pl.pallas_call(
        lstm_conv_kernel,
        out_shape=jax.ShapeDtypeStruct((N, L), jnp.float32),
        grid=(1,),
        in_specs=[
            pl.BlockSpec((N, L), lambda i: (0, 0)),                    # activations (VMEM)
            pl.BlockSpec(memory_space=pltpu.MemorySpace.SMEM),         # 64 conv taps (SMEM)
        ],
        out_specs=pl.BlockSpec((N, L), lambda i: (0, 0)),
        compiler_params=pltpu.CompilerParams(dimension_semantics=("arbitrary",)),
        cost_estimate=cost,
    )(x, taps)


# ----------------------------- parameter construction -------------------------
def make_params(key):
    k1, k2, k3 = jax.random.split(key, 3)

    def xavier_normal(k, shape):
        c_out, c_in, ksz = shape
        fan_in, fan_out = c_in * ksz, c_out * ksz
        std = math.sqrt(2.0 / (fan_in + fan_out))
        return jax.random.normal(k, shape, dtype=jnp.float32) * std

    w1 = xavier_normal(k1, (3, 1, 3))   # conv1 weight
    w2 = xavier_normal(k2, (3, 3, 5))   # conv2 weight
    w3 = xavier_normal(k3, (1, 3, 3))   # conv3 weight
    taps = jnp.concatenate([w1.reshape(-1), w2.reshape(-1), w3.reshape(-1),
                            jnp.zeros((1,), jnp.float32)])  # 63 taps, padded to 64
    return w1, w2, w3, taps


# ----------------------------- pure-JAX reference ------------------------------
def _conv1d(h, w, pad, dil):
    return jax.lax.conv_general_dilated(
        h, w, window_strides=(1,), padding=[(pad, pad)], rhs_dilation=(dil,),
        dimension_numbers=("NCH", "OIH", "NCH"))


def _bn_relu_ref(h):
    mean = h.mean(axis=(0, 2), keepdims=True)
    var = ((h - mean) ** 2).mean(axis=(0, 2), keepdims=True)
    return jnp.maximum((h - mean) / jnp.sqrt(var + EPS), 0.0)


def lstm_conv_ref(x, w1, w2, w3):
    for _ in range(N_BLOCKS):
        xi = x[:, None, :]
        h = _bn_relu_ref(_conv1d(xi, w1, 1, 1))
        h = _bn_relu_ref(_conv1d(h, w2, 2, 1))
        h = _bn_relu_ref(_conv1d(h, w3, 2, 2))
        x = jnp.maximum(h + xi, 0.0)[:, 0, :]
    return x


# ----------------------------------- main --------------------------------------
if __name__ == "__main__":
    N, L = 8, 128                      # batch, sequence length (PyTorch input x: (N, L))
    key = jax.random.PRNGKey(0)
    kx, kp = jax.random.split(key)

    x = jax.random.normal(kx, (N, L), dtype=jnp.float32)
    w1, w2, w3, taps = make_params(kp)

    out = jax.block_until_ready(jax.jit(lstm_conv_pallas)(x, taps))
    ref = jax.block_until_ready(lstm_conv_ref(x, w1, w2, w3))
    np.testing.assert_allclose(np.asarray(out), np.asarray(ref), rtol=2e-3, atol=2e-3)

    print("KERNEL_OK")
</pallas_src>

<mosaic_0001>
module attributes {stable_mosaic.version = 11 : i64} {
  func.func @lstm_conv_kernel(%arg0: i32, %arg1: memref<8x128xf32, #tpu.memory_space<vmem>>, %arg2: memref<64xf32, #tpu.memory_space<smem>>, %arg3: memref<8x128xf32, #tpu.memory_space<vmem>>) attributes {dimension_semantics = [#tpu.dimension_semantics<arbitrary>], iteration_bounds = array<i64: 1>, scalar_prefetch = 0 : i64, scratch_operands = 0 : i64, tpu.core_type = #tpu.core_type<tc>, window_params = [{pipeline_mode = #tpu.pipeline_mode<synchronous>, transform_indices = @transform_0, window_bounds = array<i64: 8, 128>}, {transform_indices = @transform_1, window_bounds = array<i64: 64>}, {pipeline_mode = #tpu.pipeline_mode<synchronous>, transform_indices = @transform_2, window_bounds = array<i64: 8, 128>}]} {
    %0 = tpu.iota {dimensions = array<i32: 1>} : vector<8x128xi32>
    %c0 = arith.constant 0 : index
    %1 = memref.load %arg2[%c0] : memref<64xf32, #tpu.memory_space<smem>>
    %c1 = arith.constant 1 : index
    %2 = memref.load %arg2[%c1] : memref<64xf32, #tpu.memory_space<smem>>
    %c2 = arith.constant 2 : index
    %3 = memref.load %arg2[%c2] : memref<64xf32, #tpu.memory_space<smem>>
    %c3 = arith.constant 3 : index
    %4 = memref.load %arg2[%c3] : memref<64xf32, #tpu.memory_space<smem>>
    %c4 = arith.constant 4 : index
    %5 = memref.load %arg2[%c4] : memref<64xf32, #tpu.memory_space<smem>>
    %c5 = arith.constant 5 : index
    %6 = memref.load %arg2[%c5] : memref<64xf32, #tpu.memory_space<smem>>
    %c6 = arith.constant 6 : index
    %7 = memref.load %arg2[%c6] : memref<64xf32, #tpu.memory_space<smem>>
    %c7 = arith.constant 7 : index
    %8 = memref.load %arg2[%c7] : memref<64xf32, #tpu.memory_space<smem>>
    %c8 = arith.constant 8 : index
    %9 = memref.load %arg2[%c8] : memref<64xf32, #tpu.memory_space<smem>>
    %c9 = arith.constant 9 : index
    %10 = memref.load %arg2[%c9] : memref<64xf32, #tpu.memory_space<smem>>
    %c10 = arith.constant 10 : index
    %11 = memref.load %arg2[%c10] : memref<64xf32, #tpu.memory_space<smem>>
    %c11 = arith.constant 11 : index
    %12 = memref.load %arg2[%c11] : memref<64xf32, #tpu.memory_space<smem>>
    %c12 = arith.constant 12 : index
    %13 = memref.load %arg2[%c12] : memref<64xf32, #tpu.memory_space<smem>>
    %c13 = arith.constant 13 : index
    %14 = memref.load %arg2[%c13] : memref<64xf32, #tpu.memory_space<smem>>
    %c14 = arith.constant 14 : index
    %15 = memref.load %arg2[%c14] : memref<64xf32, #tpu.memory_space<smem>>
    %c15 = arith.constant 15 : index
    %16 = memref.load %arg2[%c15] : memref<64xf32, #tpu.memory_space<smem>>
    %c16 = arith.constant 16 : index
    %17 = memref.load %arg2[%c16] : memref<64xf32, #tpu.memory_space<smem>>
    %c17 = arith.constant 17 : index
    %18 = memref.load %arg2[%c17] : memref<64xf32, #tpu.memory_space<smem>>
    %c18 = arith.constant 18 : index
    %19 = memref.load %arg2[%c18] : memref<64xf32, #tpu.memory_space<smem>>
    %c19 = arith.constant 19 : index
    %20 = memref.load %arg2[%c19] : memref<64xf32, #tpu.memory_space<smem>>
    %c20 = arith.constant 20 : index
    %21 = memref.load %arg2[%c20] : memref<64xf32, #tpu.memory_space<smem>>
    %c21 = arith.constant 21 : index
    %22 = memref.load %arg2[%c21] : memref<64xf32, #tpu.memory_space<smem>>
    %c22 = arith.constant 22 : index
    %23 = memref.load %arg2[%c22] : memref<64xf32, #tpu.memory_space<smem>>
    %c23 = arith.constant 23 : index
    %24 = memref.load %arg2[%c23] : memref<64xf32, #tpu.memory_space<smem>>
    %c24 = arith.constant 24 : index
    %25 = memref.load %arg2[%c24] : memref<64xf32, #tpu.memory_space<smem>>
    %c25 = arith.constant 25 : index
    %26 = memref.load %arg2[%c25] : memref<64xf32, #tpu.memory_space<smem>>
    %c26 = arith.constant 26 : index
    %27 = memref.load %arg2[%c26] : memref<64xf32, #tpu.memory_space<smem>>
    %c27 = arith.constant 27 : index
    %28 = memref.load %arg2[%c27] : memref<64xf32, #tpu.memory_space<smem>>
    %c28 = arith.constant 28 : index
    %29 = memref.load %arg2[%c28] : memref<64xf32, #tpu.memory_space<smem>>
    %c29 = arith.constant 29 : index
    %30 = memref.load %arg2[%c29] : memref<64xf32, #tpu.memory_space<smem>>
    %c30 = arith.constant 30 : index
    %31 = memref.load %arg2[%c30] : memref<64xf32, #tpu.memory_space<smem>>
    %c31 = arith.constant 31 : index
    %32 = memref.load %arg2[%c31] : memref<64xf32, #tpu.memory_space<smem>>
    %c32 = arith.constant 32 : index
    %33 = memref.load %arg2[%c32] : memref<64xf32, #tpu.memory_space<smem>>
    %c33 = arith.constant 33 : index
    %34 = memref.load %arg2[%c33] : memref<64xf32, #tpu.memory_space<smem>>
    %c34 = arith.constant 34 : index
    %35 = memref.load %arg2[%c34] : memref<64xf32, #tpu.memory_space<smem>>
    %c35 = arith.constant 35 : index
    %36 = memref.load %arg2[%c35] : memref<64xf32, #tpu.memory_space<smem>>
    %c36 = arith.constant 36 : index
    %37 = memref.load %arg2[%c36] : memref<64xf32, #tpu.memory_space<smem>>
    %c37 = arith.constant 37 : index
    %38 = memref.load %arg2[%c37] : memref<64xf32, #tpu.memory_space<smem>>
    %c38 = arith.constant 38 : index
    %39 = memref.load %arg2[%c38] : memref<64xf32, #tpu.memory_space<smem>>
    %c39 = arith.constant 39 : index
    %40 = memref.load %arg2[%c39] : memref<64xf32, #tpu.memory_space<smem>>
    %c40 = arith.constant 40 : index
    %41 = memref.load %arg2[%c40] : memref<64xf32, #tpu.memory_space<smem>>
    %c41 = arith.constant 41 : index
    %42 = memref.load %arg2[%c41] : memref<64xf32, #tpu.memory_space<smem>>
    %c42 = arith.constant 42 : index
    %43 = memref.load %arg2[%c42] : memref<64xf32, #tpu.memory_space<smem>>
    %c43 = arith.constant 43 : index
    %44 = memref.load %arg2[%c43] : memref<64xf32, #tpu.memory_space<smem>>
    %c44 = arith.constant 44 : index
    %45 = memref.load %arg2[%c44] : memref<64xf32, #tpu.memory_space<smem>>
    %c45 = arith.constant 45 : index
    %46 = memref.load %arg2[%c45] : memref<64xf32, #tpu.memory_space<smem>>
    %c46 = arith.constant 46 : index
    %47 = memref.load %arg2[%c46] : memref<64xf32, #tpu.memory_space<smem>>
    %c47 = arith.constant 47 : index
    %48 = memref.load %arg2[%c47] : memref<64xf32, #tpu.memory_space<smem>>
    %c48 = arith.constant 48 : index
    %49 = memref.load %arg2[%c48] : memref<64xf32, #tpu.memory_space<smem>>
    %c49 = arith.constant 49 : index
    %50 = memref.load %arg2[%c49] : memref<64xf32, #tpu.memory_space<smem>>
    %c50 = arith.constant 50 : index
    %51 = memref.load %arg2[%c50] : memref<64xf32, #tpu.memory_space<smem>>
    %c51 = arith.constant 51 : index
    %52 = memref.load %arg2[%c51] : memref<64xf32, #tpu.memory_space<smem>>
    %c52 = arith.constant 52 : index
    %53 = memref.load %arg2[%c52] : memref<64xf32, #tpu.memory_space<smem>>
    %c53 = arith.constant 53 : index
    %54 = memref.load %arg2[%c53] : memref<64xf32, #tpu.memory_space<smem>>
    %c54 = arith.constant 54 : index
    %55 = memref.load %arg2[%c54] : memref<64xf32, #tpu.memory_space<smem>>
    %c55 = arith.constant 55 : index
    %56 = memref.load %arg2[%c55] : memref<64xf32, #tpu.memory_space<smem>>
    %c56 = arith.constant 56 : index
    %57 = memref.load %arg2[%c56] : memref<64xf32, #tpu.memory_space<smem>>
    %c57 = arith.constant 57 : index
    %58 = memref.load %arg2[%c57] : memref<64xf32, #tpu.memory_space<smem>>
    %c58 = arith.constant 58 : index
    %59 = memref.load %arg2[%c58] : memref<64xf32, #tpu.memory_space<smem>>
    %c59 = arith.constant 59 : index
    %60 = memref.load %arg2[%c59] : memref<64xf32, #tpu.memory_space<smem>>
    %c60 = arith.constant 60 : index
    %61 = memref.load %arg2[%c60] : memref<64xf32, #tpu.memory_space<smem>>
    %c61 = arith.constant 61 : index
    %62 = memref.load %arg2[%c61] : memref<64xf32, #tpu.memory_space<smem>>
    %c62 = arith.constant 62 : index
    %63 = memref.load %arg2[%c62] : memref<64xf32, #tpu.memory_space<smem>>
    %c0_0 = arith.constant 0 : index
    %c0_1 = arith.constant 0 : index
    %64 = vector.load %arg1[%c0_0, %c0_1] : memref<8x128xf32, #tpu.memory_space<vmem>>, vector<8x128xf32>
    %c1_i32 = arith.constant 1 : i32
    %65 = tpu.dynamic_rotate %64 by %c1_i32 dim 1 : vector<8x128xf32>, i32 -> vector<8x128xf32>
    %c1_i32_2 = arith.constant 1 : i32
    %66 = vector.broadcast %c1_i32_2 : i32 to vector<8x128xi32>
    %67 = arith.cmpi sge, %0, %66 : vector<8x128xi32>
    %cst = arith.constant 0.000000e+00 : f32
    %68 = vector.broadcast %cst : f32 to vector<8x128xf32>
    %69 = arith.select %67, %65, %68 : vector<8x128xi1>, vector<8x128xf32>
    %c127_i32 = arith.constant 127 : i32
    %70 = tpu.dynamic_rotate %64 by %c127_i32 dim 1 : vector<8x128xf32>, i32 -> vector<8x128xf32>
    %c127_i32_3 = arith.constant 127 : i32
    %71 = vector.broadcast %c127_i32_3 : i32 to vector<8x128xi32>
    %72 = arith.cmpi slt, %0, %71 : vector<8x128xi32>
    %cst_4 = arith.constant 0.000000e+00 : f32
    %73 = vector.broadcast %cst_4 : f32 to vector<8x128xf32>
    %74 = arith.select %72, %70, %73 : vector<8x128xi1>, vector<8x128xf32>
    %75 = vector.broadcast %1 : f32 to vector<8x128xf32>
    %76 = arith.mulf %75, %69 : vector<8x128xf32>
    %77 = vector.broadcast %2 : f32 to vector<8x128xf32>
    %78 = arith.mulf %77, %64 : vector<8x128xf32>
    %79 = vector.broadcast %3 : f32 to vector<8x128xf32>
    %80 = arith.mulf %79, %74 : vector<8x128xf32>
    %81 = arith.addf %76, %78 : vector<8x128xf32>
    %82 = arith.addf %81, %80 : vector<8x128xf32>
    %83 = vector.shape_cast %82 : vector<8x128xf32> to vector<1x8x128xf32>
    %cst_5 = arith.constant dense<0.000000e+00> : vector<1xf32>
    %84 = vector.multi_reduction <add>, %83, %cst_5 [1, 2] : vector<1x8x128xf32> to vector<1xf32>
    %85 = vector.shape_cast %84 : vector<1xf32> to vector<1x1x1xf32>
    %86 = vector.extract %85[0, 0, 0] : f32 from vector<1x1x1xf32>
    %87 = arith.mulf %82, %82 : vector<8x128xf32>
    %88 = vector.shape_cast %87 : vector<8x128xf32> to vector<1x8x128xf32>
    %cst_6 = arith.constant dense<0.000000e+00> : vector<1xf32>
    %89 = vector.multi_reduction <add>, %88, %cst_6 [1, 2] : vector<1x8x128xf32> to vector<1xf32>
    %90 = vector.shape_cast %89 : vector<1xf32> to vector<1x1x1xf32>
    %91 = vector.extract %90[0, 0, 0] : f32 from vector<1x1x1xf32>
    %cst_7 = arith.constant 9.765625E-4 : f32
    %92 = arith.mulf %86, %cst_7 : f32
    %cst_8 = arith.constant 9.765625E-4 : f32
    %93 = arith.mulf %91, %cst_8 : f32
    %94 = arith.mulf %92, %92 : f32
    %95 = arith.subf %93, %94 : f32
    %96 = vector.broadcast %92 : f32 to vector<8x128xf32>
    %97 = arith.subf %82, %96 : vector<8x128xf32>
    %cst_9 = arith.constant 9.99999974E-6 : f32
    %98 = arith.addf %95, %cst_9 : f32
    %99 = math.rsqrt %98 : f32
    %100 = vector.broadcast %99 : f32 to vector<8x128xf32>
    %101 = arith.mulf %97, %100 : vector<8x128xf32>
    %cst_10 = arith.constant 0.000000e+00 : f32
    %102 = vector.broadcast %cst_10 : f32 to vector<8x128xf32>
    %103 = arith.maximumf %101, %102 : vector<8x128xf32>
    %104 = vector.broadcast %4 : f32 to vector<8x128xf32>
    %105 = arith.mulf %104, %69 : vector<8x128xf32>
    %106 = vector.broadcast %5 : f32 to vector<8x128xf32>
    %107 = arith.mulf %106, %64 : vector<8x128xf32>
    %108 = vector.broadcast %6 : f32 to vector<8x128xf32>
    %109 = arith.mulf %108, %74 : vector<8x128xf32>
    %110 = arith.addf %105, %107 : vector<8x128xf32>
    %111 = arith.addf %110, %109 : vector<8x128xf32>
    %112 = vector.shape_cast %111 : vector<8x128xf32> to vector<1x8x128xf32>
    %cst_11 = arith.constant dense<0.000000e+00> : vector<1xf32>
    %113 = vector.multi_reduction <add>, %112, %cst_11 [1, 2] : vector<1x8x128xf32> to vector<1xf32>
    %114 = vector.shape_cast %113 : vector<1xf32> to vector<1x1x1xf32>
    %115 = vector.extract %114[0, 0, 0] : f32 from vector<1x1x1xf32>
    %116 = arith.mulf %111, %111 : vector<8x128xf32>
    %117 = vector.shape_cast %116 : vector<8x128xf32> to vector<1x8x128xf32>
    %cst_12 = arith.constant dense<0.000000e+00> : vector<1xf32>
    %118 = vector.multi_reduction <add>, %117, %cst_12 [1, 2] : vector<1x8x128xf32> to vector<1xf32>
    %119 = vector.shape_cast %118 : vector<1xf32> to vector<1x1x1xf32>
    %120 = vector.extract %119[0, 0, 0] : f32 from vector<1x1x1xf32>
    %cst_13 = arith.constant 9.765625E-4 : f32
    %121 = arith.mulf %115, %cst_13 : f32
    %cst_14 = arith.constant 9.765625E-4 : f32
    %122 = arith.mulf %120, %cst_14 : f32
    %123 = arith.mulf %121, %121 : f32
    %124 = arith.subf %122, %123 : f32
    %125 = vector.broadcast %121 : f32 to vector<8x128xf32>
    %126 = arith.subf %111, %125 : vector<8x128xf32>
    %cst_15 = arith.constant 9.99999974E-6 : f32
    %127 = arith.addf %124, %cst_15 : f32
    %128 = math.rsqrt %127 : f32
    %129 = vector.broadcast %128 : f32 to vector<8x128xf32>
    %130 = arith.mulf %126, %129 : vector<8x128xf32>
    %cst_16 = arith.constant 0.000000e+00 : f32
    %131 = vector.broadcast %cst_16 : f32 to vector<8x128xf32>
    %132 = arith.maximumf %130, %131 : vector<8x128xf32>
    %133 = vector.broadcast %7 : f32 to vector<8x128xf32>
    %134 = arith.mulf %133, %69 : vector<8x128xf32>
    %135 = vector.broadcast %8 : f32 to vector<8x128xf32>
    %136 = arith.mulf %135, %64 : vector<8x128xf32>
    %137 = vector.broadcast %9 : f32 to vector<8x128xf32>
    %138 = arith.mulf %137, %74 : vector<8x128xf32>
    %139 = arith.addf %134, %136 : vector<8x128xf32>
    %140 = arith.addf %139, %138 : vector<8x128xf32>
    %141 = vector.shape_cast %140 : vector<8x128xf32> to vector<1x8x128xf32>
    %cst_17 = arith.constant dense<0.000000e+00> : vector<1xf32>
    %142 = vector.multi_reduction <add>, %141, %cst_17 [1, 2] : vector<1x8x128xf32> to vector<1xf32>
    %143 = vector.shape_cast %142 : vector<1xf32> to vector<1x1x1xf32>
    %144 = vector.extract %143[0, 0, 0] : f32 from vector<1x1x1xf32>
    %145 = arith.mulf %140, %140 : vector<8x128xf32>
    %146 = vector.shape_cast %145 : vector<8x128xf32> to vector<1x8x128xf32>
    %cst_18 = arith.constant dense<0.000000e+00> : vector<1xf32>
    %147 = vector.multi_reduction <add>, %146, %cst_18 [1, 2] : vector<1x8x128xf32> to vector<1xf32>
    %148 = vector.shape_cast %147 : vector<1xf32> to vector<1x1x1xf32>
    %149 = vector.extract %148[0, 0, 0] : f32 from vector<1x1x1xf32>
    %cst_19 = arith.constant 9.765625E-4 : f32
    %150 = arith.mulf %144, %cst_19 : f32
    %cst_20 = arith.constant 9.765625E-4 : f32
    %151 = arith.mulf %149, %cst_20 : f32
    %152 = arith.mulf %150, %150 : f32
    %153 = arith.subf %151, %152 : f32
    %154 = vector.broadcast %150 : f32 to vector<8x128xf32>
    %155 = arith.subf %140, %154 : vector<8x128xf32>
    %cst_21 = arith.constant 9.99999974E-6 : f32
    %156 = arith.addf %153, %cst_21 : f32
    %157 = math.rsqrt %156 : f32
    %158 = vector.broadcast %157 : f32 to vector<8x128xf32>
    %159 = arith.mulf %155, %158 : vector<8x128xf32>
    %cst_22 = arith.constant 0.000000e+00 : f32
    %160 = vector.broadcast %cst_22 : f32 to vector<8x128xf32>
    %161 = arith.maximumf %159, %160 : vector<8x128xf32>
    %c2_i32 = arith.constant 2 : i32
    %162 = tpu.dynamic_rotate %103 by %c2_i32 dim 1 : vector<8x128xf32>, i32 -> vector<8x128xf32>
    %c2_i32_23 = arith.constant 2 : i32
    %163 = vector.broadcast %c2_i32_23 : i32 to vector<8x128xi32>
    %164 = arith.cmpi sge, %0, %163 : vector<8x128xi32>
    %cst_24 = arith.constant 0.000000e+00 : f32
    %165 = vector.broadcast %cst_24 : f32 to vector<8x128xf32>
    %166 = arith.select %164, %162, %165 : vector<8x128xi1>, vector<8x128xf32>
    %c1_i32_25 = arith.constant 1 : i32
    %167 = tpu.dynamic_rotate %103 by %c1_i32_25 dim 1 : vector<8x128xf32>, i32 -> vector<8x128xf32>
    %c1_i32_26 = arith.constant 1 : i32
    %168 = vector.broadcast %c1_i32_26 : i32 to vector<8x128xi32>
    %169 = arith.cmpi sge, %0, %168 : vector<8x128xi32>
    %cst_27 = arith.constant 0.000000e+00 : f32
    %170 = vector.broadcast %cst_27 : f32 to vector<8x128xf32>
    %171 = arith.select %169, %167, %170 : vector<8x128xi1>, vector<8x128xf32>
    %c127_i32_28 = arith.constant 127 : i32
    %172 = tpu.dynamic_rotate %103 by %c127_i32_28 dim 1 : vector<8x128xf32>, i32 -> vector<8x128xf32>
    %c127_i32_29 = arith.constant 127 : i32
    %173 = vector.broadcast %c127_i32_29 : i32 to vector<8x128xi32>
    %174 = arith.cmpi slt, %0, %173 : vector<8x128xi32>
    %cst_30 = arith.constant 0.000000e+00 : f32
    %175 = vector.broadcast %cst_30 : f32 to vector<8x128xf32>
    %176 = arith.select %174, %172, %175 : vector<8x128xi1>, vector<8x128xf32>
    %c126_i32 = arith.constant 126 : i32
    %177 = tpu.dynamic_rotate %103 by %c126_i32 dim 1 : vector<8x128xf32>, i32 -> vector<8x128xf32>
    %c126_i32_31 = arith.constant 126 : i32
    %178 = vector.broadcast %c126_i32_31 : i32 to vector<8x128xi32>
    %179 = arith.cmpi slt, %0, %178 : vector<8x128xi32>
    %cst_32 = arith.constant 0.000000e+00 : f32
    %180 = vector.broadcast %cst_32 : f32 to vector<8x128xf32>
    %181 = arith.select %179, %177, %180 : vector<8x128xi1>, vector<8x128xf32>
    %c2_i32_33 = arith.constant 2 : i32
    %182 = tpu.dynamic_rotate %132 by %c2_i32_33 dim 1 : vector<8x128xf32>, i32 -> vector<8x128xf32>
    %c2_i32_34 = arith.constant 2 : i32
    %183 = vector.broadcast %c2_i32_34 : i32 to vector<8x128xi32>
    %184 = arith.cmpi sge, %0, %183 : vector<8x128xi32>
    %cst_35 = arith.constant 0.000000e+00 : f32
    %185 = vector.broadcast %cst_35 : f32 to vector<8x128xf32>
    %186 = arith.select %184, %182, %185 : vector<8x128xi1>, vector<8x128xf32>
    %c1_i32_36 = arith.constant 1 : i32
    %187 = tpu.dynamic_rotate %132 by %c1_i32_36 dim 1 : vector<8x128xf32>, i32 -> vector<8x128xf32>
    %c1_i32_37 = arith.constant 1 : i32
    %188 = vector.broadcast %c1_i32_37 : i32 to vector<8x128xi32>
    %189 = arith.cmpi sge, %0, %188 : vector<8x128xi32>
    %cst_38 = arith.constant 0.000000e+00 : f32
    %190 = vector.broadcast %cst_38 : f32 to vector<8x128xf32>
    %191 = arith.select %189, %187, %190 : vector<8x128xi1>, vector<8x128xf32>
    %c127_i32_39 = arith.constant 127 : i32
    %192 = tpu.dynamic_rotate %132 by %c127_i32_39 dim 1 : vector<8x128xf32>, i32 -> vector<8x128xf32>
    %c127_i32_40 = arith.constant 127 : i32
    %193 = vector.broadcast %c127_i32_40 : i32 to vector<8x128xi32>
    %194 = arith.cmpi slt, %0, %193 : vector<8x128xi32>
    %cst_41 = arith.constant 0.000000e+00 : f32
    %195 = vector.broadcast %cst_41 : f32 to vector<8x128xf32>
    %196 = arith.select %194, %192, %195 : vector<8x128xi1>, vector<8x128xf32>
    %c126_i32_42 = arith.constant 126 : i32
    %197 = tpu.dynamic_rotate %132 by %c126_i32_42 dim 1 : vector<8x128xf32>, i32 -> vector<8x128xf32>
    %c126_i32_43 = arith.constant 126 : i32
    %198 = vector.broadcast %c126_i32_43 : i32 to vector<8x128xi32>
    %199 = arith.cmpi slt, %0, %198 : vector<8x128xi32>
    %cst_44 = arith.constant 0.000000e+00 : f32
    %200 = vector.broadcast %cst_44 : f32 to vector<8x128xf32>
    %201 = arith.select %199, %197, %200 : vector<8x128xi1>, vector<8x128xf32>
    %c2_i32_45 = arith.constant 2 : i32
    %202 = tpu.dynamic_rotate %161 by %c2_i32_45 dim 1 : vector<8x128xf32>, i32 -> vector<8x128xf32>
    %c2_i32_46 = arith.constant 2 : i32
    %203 = vector.broadcast %c2_i32_46 : i32 to vector<8x128xi32>
    %204 = arith.cmpi sge, %0, %203 : vector<8x128xi32>
    %cst_47 = arith.constant 0.000000e+00 : f32
    %205 = vector.broadcast %cst_47 : f32 to vector<8x128xf32>
    %206 = arith.select %204, %202, %205 : vector<8x128xi1>, vector<8x128xf32>
    %c1_i32_48 = arith.constant 1 : i32
    %207 = tpu.dynamic_rotate %161 by %c1_i32_48 dim 1 : vector<8x128xf32>, i32 -> vector<8x128xf32>
    %c1_i32_49 = arith.constant 1 : i32
    %208 = vector.broadcast %c1_i32_49 : i32 to vector<8x128xi32>
    %209 = arith.cmpi sge, %0, %208 : vector<8x128xi32>
    %cst_50 = arith.constant 0.000000e+00 : f32
    %210 = vector.broadcast %cst_50 : f32 to vector<8x128xf32>
    %211 = arith.select %209, %207, %210 : vector<8x128xi1>, vector<8x128xf32>
    %c127_i32_51 = arith.constant 127 : i32
    %212 = tpu.dynamic_rotate %161 by %c127_i32_51 dim 1 : vector<8x128xf32>, i32 -> vector<8x128xf32>
    %c127_i32_52 = arith.constant 127 : i32
    %213 = vector.broadcast %c127_i32_52 : i32 to vector<8x128xi32>
    %214 = arith.cmpi slt, %0, %213 : vector<8x128xi32>
    %cst_53 = arith.constant 0.000000e+00 : f32
    %215 = vector.broadcast %cst_53 : f32 to vector<8x128xf32>
    %216 = arith.select %214, %212, %215 : vector<8x128xi1>, vector<8x128xf32>
    %c126_i32_54 = arith.constant 126 : i32
    %217 = tpu.dynamic_rotate %161 by %c126_i32_54 dim 1 : vector<8x128xf32>, i32 -> vector<8x128xf32>
    %c126_i32_55 = arith.constant 126 : i32
    %218 = vector.broadcast %c126_i32_55 : i32 to vector<8x128xi32>
    %219 = arith.cmpi slt, %0, %218 : vector<8x128xi32>
    %cst_56 = arith.constant 0.000000e+00 : f32
    %220 = vector.broadcast %cst_56 : f32 to vector<8x128xf32>
    %221 = arith.select %219, %217, %220 : vector<8x128xi1>, vector<8x128xf32>
    %222 = vector.broadcast %10 : f32 to vector<8x128xf32>
    %223 = arith.mulf %222, %166 : vector<8x128xf32>
    %224 = vector.broadcast %11 : f32 to vector<8x128xf32>
    %225 = arith.mulf %224, %171 : vector<8x128xf32>
    %226 = vector.broadcast %12 : f32 to vector<8x128xf32>
    %227 = arith.mulf %226, %103 : vector<8x128xf32>
    %228 = vector.broadcast %13 : f32 to vector<8x128xf32>
    %229 = arith.mulf %228, %176 : vector<8x128xf32>
    %230 = vector.broadcast %14 : f32 to vector<8x128xf32>
    %231 = arith.mulf %230, %181 : vector<8x128xf32>
    %232 = vector.broadcast %15 : f32 to vector<8x128xf32>
    %233 = arith.mulf %232, %186 : vector<8x128xf32>
    %234 = vector.broadcast %16 : f32 to vector<8x128xf32>
    %235 = arith.mulf %234, %191 : vector<8x128xf32>
    %236 = vector.broadcast %17 : f32 to vector<8x128xf32>
    %237 = arith.mulf %236, %132 : vector<8x128xf32>
    %238 = vector.broadcast %18 : f32 to vector<8x128xf32>
    %239 = arith.mulf %238, %196 : vector<8x128xf32>
    %240 = vector.broadcast %19 : f32 to vector<8x128xf32>
    %241 = arith.mulf %240, %201 : vector<8x128xf32>
    %242 = vector.broadcast %20 : f32 to vector<8x128xf32>
    %243 = arith.mulf %242, %206 : vector<8x128xf32>
    %244 = vector.broadcast %21 : f32 to vector<8x128xf32>
    %245 = arith.mulf %244, %211 : vector<8x128xf32>
    %246 = vector.broadcast %22 : f32 to vector<8x128xf32>
    %247 = arith.mulf %246, %161 : vector<8x128xf32>
    %248 = vector.broadcast %23 : f32 to vector<8x128xf32>
    %249 = arith.mulf %248, %216 : vector<8x128xf32>
    %250 = vector.broadcast %24 : f32 to vector<8x128xf32>
    %251 = arith.mulf %250, %221 : vector<8x128xf32>
    %252 = arith.addf %223, %225 : vector<8x128xf32>
    %253 = arith.addf %252, %227 : vector<8x128xf32>
    %254 = arith.addf %253, %229 : vector<8x128xf32>
    %255 = arith.addf %254, %231 : vector<8x128xf32>
    %256 = arith.addf %255, %233 : vector<8x128xf32>
    %257 = arith.addf %256, %235 : vector<8x128xf32>
    %258 = arith.addf %257, %237 : vector<8x128xf32>
    %259 = arith.addf %258, %239 : vector<8x128xf32>
    %260 = arith.addf %259, %241 : vector<8x128xf32>
    %261 = arith.addf %260, %243 : vector<8x128xf32>
    %262 = arith.addf %261, %245 : vector<8x128xf32>
    %263 = arith.addf %262, %247 : vector<8x128xf32>
    %264 = arith.addf %263, %249 : vector<8x128xf32>
    %265 = arith.addf %264, %251 : vector<8x128xf32>
    %266 = vector.shape_cast %265 : vector<8x128xf32> to vector<1x8x128xf32>
    %cst_57 = arith.constant dense<0.000000e+00> : vector<1xf32>
    %267 = vector.multi_reduction <add>, %266, %cst_57 [1, 2] : vector<1x8x128xf32> to vector<1xf32>
    %268 = vector.shape_cast %267 : vector<1xf32> to vector<1x1x1xf32>
    %269 = vector.extract %268[0, 0, 0] : f32 from vector<1x1x1xf32>
    %270 = arith.mulf %265, %265 : vector<8x128xf32>
    %271 = vector.shape_cast %270 : vector<8x128xf32> to vector<1x8x128xf32>
    %cst_58 = arith.constant dense<0.000000e+00> : vector<1xf32>
    %272 = vector.multi_reduction <add>, %271, %cst_58 [1, 2] : vector<1x8x128xf32> to vector<1xf32>
    %273 = vector.shape_cast %272 : vector<1xf32> to vector<1x1x1xf32>
    %274 = vector.extract %273[0, 0, 0] : f32 from vector<1x1x1xf32>
    %cst_59 = arith.constant 9.765625E-4 : f32
    %275 = arith.mulf %269, %cst_59 : f32
    %cst_60 = arith.constant 9.765625E-4 : f32
    %276 = arith.mulf %274, %cst_60 : f32
    %277 = arith.mulf %275, %275 : f32
    %278 = arith.subf %276, %277 : f32
    %279 = vector.broadcast %275 : f32 to vector<8x128xf32>
    %280 = arith.subf %265, %279 : vector<8x128xf32>
    %cst_61 = arith.constant 9.99999974E-6 : f32
    %281 = arith.addf %278, %cst_61 : f32
    %282 = math.rsqrt %281 : f32
    %283 = vector.broadcast %282 : f32 to vector<8x128xf32>
    %284 = arith.mulf %280, %283 : vector<8x128xf32>
    %cst_62 = arith.constant 0.000000e+00 : f32
    %285 = vector.broadcast %cst_62 : f32 to vector<8x128xf32>
    %286 = arith.maximumf %284, %285 : vector<8x128xf32>
    %287 = vector.broadcast %25 : f32 to vector<8x128xf32>
    %288 = arith.mulf %287, %166 : vector<8x128xf32>
    %289 = vector.broadcast %26 : f32 to vector<8x128xf32>
    %290 = arith.mulf %289, %171 : vector<8x128xf32>
    %291 = vector.broadcast %27 : f32 to vector<8x128xf32>
    %292 = arith.mulf %291, %103 : vector<8x128xf32>
    %293 = vector.broadcast %28 : f32 to vector<8x128xf32>
    %294 = arith.mulf %293, %176 : vector<8x128xf32>
    %295 = vector.broadcast %29 : f32 to vector<8x128xf32>
    %296 = arith.mulf %295, %181 : vector<8x128xf32>
    %297 = vector.broadcast %30 : f32 to vector<8x128xf32>
    %298 = arith.mulf %297, %186 : vector<8x128xf32>
    %299 = vector.broadcast %31 : f32 to vector<8x128xf32>
    %300 = arith.mulf %299, %191 : vector<8x128xf32>
    %301 = vector.broadcast %32 : f32 to vector<8x128xf32>
    %302 = arith.mulf %301, %132 : vector<8x128xf32>
    %303 = vector.broadcast %33 : f32 to vector<8x128xf32>
    %304 = arith.mulf %303, %196 : vector<8x128xf32>
    %305 = vector.broadcast %34 : f32 to vector<8x128xf32>
    %306 = arith.mulf %305, %201 : vector<8x128xf32>
    %307 = vector.broadcast %35 : f32 to vector<8x128xf32>
    %308 = arith.mulf %307, %206 : vector<8x128xf32>
    %309 = vector.broadcast %36 : f32 to vector<8x128xf32>
    %310 = arith.mulf %309, %211 : vector<8x128xf32>
    %311 = vector.broadcast %37 : f32 to vector<8x128xf32>
    %312 = arith.mulf %311, %161 : vector<8x128xf32>
    %313 = vector.broadcast %38 : f32 to vector<8x128xf32>
    %314 = arith.mulf %313, %216 : vector<8x128xf32>
    %315 = vector.broadcast %39 : f32 to vector<8x128xf32>
    %316 = arith.mulf %315, %221 : vector<8x128xf32>
    %317 = arith.addf %288, %290 : vector<8x128xf32>
    %318 = arith.addf %317, %292 : vector<8x128xf32>
    %319 = arith.addf %318, %294 : vector<8x128xf32>
    %320 = arith.addf %319, %296 : vector<8x128xf32>
    %321 = arith.addf %320, %298 : vector<8x128xf32>
    %322 = arith.addf %321, %300 : vector<8x128xf32>
    %323 = arith.addf %322, %302 : vector<8x128xf32>
    %324 = arith.addf %323, %304 : vector<8x128xf32>
    %325 = arith.addf %324, %306 : vector<8x128xf32>
    %326 = arith.addf %325, %308 : vector<8x128xf32>
    %327 = arith.addf %326, %310 : vector<8x128xf32>
    %328 = arith.addf %327, %312 : vector<8x128xf32>
    %329 = arith.addf %328, %314 : vector<8x128xf32>
    %330 = arith.addf %329, %316 : vector<8x128xf32>
    %331 = vector.shape_cast %330 : vector<8x128xf32> to vector<1x8x128xf32>
    %cst_63 = arith.constant dense<0.000000e+00> : vector<1xf32>
    %332 = vector.multi_reduction <add>, %331, %cst_63 [1, 2] : vector<1x8x128xf32> to vector<1xf32>
    %333 = vector.shape_cast %332 : vector<1xf32> to vector<1x1x1xf32>
    %334 = vector.extract %333[0, 0, 0] : f32 from vector<1x1x1xf32>
    %335 = arith.mulf %330, %330 : vector<8x128xf32>
    %336 = vector.shape_cast %335 : vector<8x128xf32> to vector<1x8x128xf32>
    %cst_64 = arith.constant dense<0.000000e+00> : vector<1xf32>
    %337 = vector.multi_reduction <add>, %336, %cst_64 [1, 2] : vector<1x8x128xf32> to vector<1xf32>
    %338 = vector.shape_cast %337 : vector<1xf32> to vector<1x1x1xf32>
    %339 = vector.extract %338[0, 0, 0] : f32 from vector<1x1x1xf32>
    %cst_65 = arith.constant 9.765625E-4 : f32
    %340 = arith.mulf %334, %cst_65 : f32
    %cst_66 = arith.constant 9.765625E-4 : f32
    %341 = arith.mulf %339, %cst_66 : f32
    %342 = arith.mulf %340, %340 : f32
    %343 = arith.subf %341, %342 : f32
    %344 = vector.broadcast %340 : f32 to vector<8x128xf32>
    %345 = arith.subf %330, %344 : vector<8x128xf32>
    %cst_67 = arith.constant 9.99999974E-6 : f32
    %346 = arith.addf %343, %cst_67 : f32
    %347 = math.rsqrt %346 : f32
    %348 = vector.broadcast %347 : f32 to vector<8x128xf32>
    %349 = arith.mulf %345, %348 : vector<8x128xf32>
    %cst_68 = arith.constant 0.000000e+00 : f32
    %350 = vector.broadcast %cst_68 : f32 to vector<8x128xf32>
    %351 = arith.maximumf %349, %350 : vector<8x128xf32>
    %352 = vector.broadcast %40 : f32 to vector<8x128xf32>
    %353 = arith.mulf %352, %166 : vector<8x128xf32>
    %354 = vector.broadcast %41 : f32 to vector<8x128xf32>
    %355 = arith.mulf %354, %171 : vector<8x128xf32>
    %356 = vector.broadcast %42 : f32 to vector<8x128xf32>
    %357 = arith.mulf %356, %103 : vector<8x128xf32>
    %358 = vector.broadcast %43 : f32 to vector<8x128xf32>
    %359 = arith.mulf %358, %176 : vector<8x128xf32>
    %360 = vector.broadcast %44 : f32 to vector<8x128xf32>
    %361 = arith.mulf %360, %181 : vector<8x128xf32>
    %362 = vector.broadcast %45 : f32 to vector<8x128xf32>
    %363 = arith.mulf %362, %186 : vector<8x128xf32>
    %364 = vector.broadcast %46 : f32 to vector<8x128xf32>
    %365 = arith.mulf %364, %191 : vector<8x128xf32>
    %366 = vector.broadcast %47 : f32 to vector<8x128xf32>
    %367 = arith.mulf %366, %132 : vector<8x128xf32>
    %368 = vector.broadcast %48 : f32 to vector<8x128xf32>
    %369 = arith.mulf %368, %196 : vector<8x128xf32>
    %370 = vector.broadcast %49 : f32 to vector<8x128xf32>
    %371 = arith.mulf %370, %201 : vector<8x128xf32>
    %372 = vector.broadcast %50 : f32 to vector<8x128xf32>
    %373 = arith.mulf %372, %206 : vector<8x128xf32>
    %374 = vector.broadcast %51 : f32 to vector<8x128xf32>
    %375 = arith.mulf %374, %211 : vector<8x128xf32>
    %376 = vector.broadcast %52 : f32 to vector<8x128xf32>
    %377 = arith.mulf %376, %161 : vector<8x128xf32>
    %378 = vector.broadcast %53 : f32 to vector<8x128xf32>
    %379 = arith.mulf %378, %216 : vector<8x128xf32>
    %380 = vector.broadcast %54 : f32 to vector<8x128xf32>
    %381 = arith.mulf %380, %221 : vector<8x128xf32>
    %382 = arith.addf %353, %355 : vector<8x128xf32>
    %383 = arith.addf %382, %357 : vector<8x128xf32>
    %384 = arith.addf %383, %359 : vector<8x128xf32>
    %385 = arith.addf %384, %361 : vector<8x128xf32>
    %386 = arith.addf %385, %363 : vector<8x128xf32>
    %387 = arith.addf %386, %365 : vector<8x128xf32>
    %388 = arith.addf %387, %367 : vector<8x128xf32>
    %389 = arith.addf %388, %369 : vector<8x128xf32>
    %390 = arith.addf %389, %371 : vector<8x128xf32>
    %391 = arith.addf %390, %373 : vector<8x128xf32>
    %392 = arith.addf %391, %375 : vector<8x128xf32>
    %393 = arith.addf %392, %377 : vector<8x128xf32>
    %394 = arith.addf %393, %379 : vector<8x128xf32>
    %395 = arith.addf %394, %381 : vector<8x128xf32>
    %396 = vector.shape_cast %395 : vector<8x128xf32> to vector<1x8x128xf32>
    %cst_69 = arith.constant dense<0.000000e+00> : vector<1xf32>
    %397 = vector.multi_reduction <add>, %396, %cst_69 [1, 2] : vector<1x8x128xf32> to vector<1xf32>
    %398 = vector.shape_cast %397 : vector<1xf32> to vector<1x1x1xf32>
    %399 = vector.extract %398[0, 0, 0] : f32 from vector<1x1x1xf32>
    %400 = arith.mulf %395, %395 : vector<8x128xf32>
    %401 = vector.shape_cast %400 : vector<8x128xf32> to vector<1x8x128xf32>
    %cst_70 = arith.constant dense<0.000000e+00> : vector<1xf32>
    %402 = vector.multi_reduction <add>, %401, %cst_70 [1, 2] : vector<1x8x128xf32> to vector<1xf32>
    %403 = vector.shape_cast %402 : vector<1xf32> to vector<1x1x1xf32>
    %404 = vector.extract %403[0, 0, 0] : f32 from vector<1x1x1xf32>
    %cst_71 = arith.constant 9.765625E-4 : f32
    %405 = arith.mulf %399, %cst_71 : f32
    %cst_72 = arith.constant 9.765625E-4 : f32
    %406 = arith.mulf %404, %cst_72 : f32
    %407 = arith.mulf %405, %405 : f32
    %408 = arith.subf %406, %407 : f32
    %409 = vector.broadcast %405 : f32 to vector<8x128xf32>
    %410 = arith.subf %395, %409 : vector<8x128xf32>
    %cst_73 = arith.constant 9.99999974E-6 : f32
    %411 = arith.addf %408, %cst_73 : f32
    %412 = math.rsqrt %411 : f32
    %413 = vector.broadcast %412 : f32 to vector<8x128xf32>
    %414 = arith.mulf %410, %413 : vector<8x128xf32>
    %cst_74 = arith.constant 0.000000e+00 : f32
    %415 = vector.broadcast %cst_74 : f32 to vector<8x128xf32>
    %416 = arith.maximumf %414, %415 : vector<8x128xf32>
    %c2_i32_75 = arith.constant 2 : i32
    %417 = tpu.dynamic_rotate %286 by %c2_i32_75 dim 1 : vector<8x128xf32>, i32 -> vector<8x128xf32>
    %c2_i32_76 = arith.constant 2 : i32
    %418 = vector.broadcast %c2_i32_76 : i32 to vector<8x128xi32>
    %419 = arith.cmpi sge, %0, %418 : vector<8x128xi32>
    %cst_77 = arith.constant 0.000000e+00 : f32
    %420 = vector.broadcast %cst_77 : f32 to vector<8x128xf32>
    %421 = arith.select %419, %417, %420 : vector<8x128xi1>, vector<8x128xf32>
    %c126_i32_78 = arith.constant 126 : i32
    %422 = tpu.dynamic_rotate %286 by %c126_i32_78 dim 1 : vector<8x128xf32>, i32 -> vector<8x128xf32>
    %c126_i32_79 = arith.constant 126 : i32
    %423 = vector.broadcast %c126_i32_79 : i32 to vector<8x128xi32>
    %424 = arith.cmpi slt, %0, %423 : vector<8x128xi32>
    %cst_80 = arith.constant 0.000000e+00 : f32
    %425 = vector.broadcast %cst_80 : f32 to vector<8x128xf32>
    %426 = arith.select %424, %422, %425 : vector<8x128xi1>, vector<8x128xf32>
    %c2_i32_81 = arith.constant 2 : i32
    %427 = tpu.dynamic_rotate %351 by %c2_i32_81 dim 1 : vector<8x128xf32>, i32 -> vector<8x128xf32>
    %c2_i32_82 = arith.constant 2 : i32
    %428 = vector.broadcast %c2_i32_82 : i32 to vector<8x128xi32>
    %429 = arith.cmpi sge, %0, %428 : vector<8x128xi32>
    %cst_83 = arith.constant 0.000000e+00 : f32
    %430 = vector.broadcast %cst_83 : f32 to vector<8x128xf32>
    %431 = arith.select %429, %427, %430 : vector<8x128xi1>, vector<8x128xf32>
    %c126_i32_84 = arith.constant 126 : i32
    %432 = tpu.dynamic_rotate %351 by %c126_i32_84 dim 1 : vector<8x128xf32>, i32 -> vector<8x128xf32>
    %c126_i32_85 = arith.constant 126 : i32
    %433 = vector.broadcast %c126_i32_85 : i32 to vector<8x128xi32>
    %434 = arith.cmpi slt, %0, %433 : vector<8x128xi32>
    %cst_86 = arith.constant 0.000000e+00 : f32
    %435 = vector.broadcast %cst_86 : f32 to vector<8x128xf32>
    %436 = arith.select %434, %432, %435 : vector<8x128xi1>, vector<8x128xf32>
    %c2_i32_87 = arith.constant 2 : i32
    %437 = tpu.dynamic_rotate %416 by %c2_i32_87 dim 1 : vector<8x128xf32>, i32 -> vector<8x128xf32>
    %c2_i32_88 = arith.constant 2 : i32
    %438 = vector.broadcast %c2_i32_88 : i32 to vector<8x128xi32>
    %439 = arith.cmpi sge, %0, %438 : vector<8x128xi32>
    %cst_89 = arith.constant 0.000000e+00 : f32
    %440 = vector.broadcast %cst_89 : f32 to vector<8x128xf32>
    %441 = arith.select %439, %437, %440 : vector<8x128xi1>, vector<8x128xf32>
    %c126_i32_90 = arith.constant 126 : i32
    %442 = tpu.dynamic_rotate %416 by %c126_i32_90 dim 1 : vector<8x128xf32>, i32 -> vector<8x128xf32>
    %c126_i32_91 = arith.constant 126 : i32
    %443 = vector.broadcast %c126_i32_91 : i32 to vector<8x128xi32>
    %444 = arith.cmpi slt, %0, %443 : vector<8x128xi32>
    %cst_92 = arith.constant 0.000000e+00 : f32
    %445 = vector.broadcast %cst_92 : f32 to vector<8x128xf32>
    %446 = arith.select %444, %442, %445 : vector<8x128xi1>, vector<8x128xf32>
    %447 = vector.broadcast %55 : f32 to vector<8x128xf32>
    %448 = arith.mulf %447, %421 : vector<8x128xf32>
    %449 = vector.broadcast %56 : f32 to vector<8x128xf32>
    %450 = arith.mulf %449, %286 : vector<8x128xf32>
    %451 = vector.broadcast %57 : f32 to vector<8x128xf32>
    %452 = arith.mulf %451, %426 : vector<8x128xf32>
    %453 = vector.broadcast %58 : f32 to vector<8x128xf32>
    %454 = arith.mulf %453, %431 : vector<8x128xf32>
    %455 = vector.broadcast %59 : f32 to vector<8x128xf32>
    %456 = arith.mulf %455, %351 : vector<8x128xf32>
    %457 = vector.broadcast %60 : f32 to vector<8x128xf32>
    %458 = arith.mulf %457, %436 : vector<8x128xf32>
    %459 = vector.broadcast %61 : f32 to vector<8x128xf32>
    %460 = arith.mulf %459, %441 : vector<8x128xf32>
    %461 = vector.broadcast %62 : f32 to vector<8x128xf32>
    %462 = arith.mulf %461, %416 : vector<8x128xf32>
    %463 = vector.broadcast %63 : f32 to vector<8x128xf32>
    %464 = arith.mulf %463, %446 : vector<8x128xf32>
    %465 = arith.addf %448, %450 : vector<8x128xf32>
    %466 = arith.addf %465, %452 : vector<8x128xf32>
    %467 = arith.addf %466, %454 : vector<8x128xf32>
    %468 = arith.addf %467, %456 : vector<8x128xf32>
    %469 = arith.addf %468, %458 : vector<8x128xf32>
    %470 = arith.addf %469, %460 : vector<8x128xf32>
    %471 = arith.addf %470, %462 : vector<8x128xf32>
    %472 = arith.addf %471, %464 : vector<8x128xf32>
    %473 = vector.shape_cast %472 : vector<8x128xf32> to vector<1x8x128xf32>
    %cst_93 = arith.constant dense<0.000000e+00> : vector<1xf32>
    %474 = vector.multi_reduction <add>, %473, %cst_93 [1, 2] : vector<1x8x128xf32> to vector<1xf32>
    %475 = vector.shape_cast %474 : vector<1xf32> to vector<1x1x1xf32>
    %476 = vector.extract %475[0, 0, 0] : f32 from vector<1x1x1xf32>
    %477 = arith.mulf %472, %472 : vector<8x128xf32>
    %478 = vector.shape_cast %477 : vector<8x128xf32> to vector<1x8x128xf32>
    %cst_94 = arith.constant dense<0.000000e+00> : vector<1xf32>
    %479 = vector.multi_reduction <add>, %478, %cst_94 [1, 2] : vector<1x8x128xf32> to vector<1xf32>
    %480 = vector.shape_cast %479 : vector<1xf32> to vector<1x1x1xf32>
    %481 = vector.extract %480[0, 0, 0] : f32 from vector<1x1x1xf32>
    %cst_95 = arith.constant 9.765625E-4 : f32
    %482 = arith.mulf %476, %cst_95 : f32
    %cst_96 = arith.constant 9.765625E-4 : f32
    %483 = arith.mulf %481, %cst_96 : f32
    %484 = arith.mulf %482, %482 : f32
    %485 = arith.subf %483, %484 : f32
    %486 = vector.broadcast %482 : f32 to vector<8x128xf32>
    %487 = arith.subf %472, %486 : vector<8x128xf32>
    %cst_97 = arith.constant 9.99999974E-6 : f32
    %488 = arith.addf %485, %cst_97 : f32
    %489 = math.rsqrt %488 : f32
    %490 = vector.broadcast %489 : f32 to vector<8x128xf32>
    %491 = arith.mulf %487, %490 : vector<8x128xf32>
    %cst_98 = arith.constant 0.000000e+00 : f32
    %492 = vector.broadcast %cst_98 : f32 to vector<8x128xf32>
    %493 = arith.maximumf %491, %492 : vector<8x128xf32>
    %494 = arith.addf %493, %64 : vector<8x128xf32>
    %cst_99 = arith.constant 0.000000e+00 : f32
    %495 = vector.broadcast %cst_99 : f32 to vector<8x128xf32>
    %496 = arith.maximumf %494, %495 : vector<8x128xf32>
    %c1_i32_100 = arith.constant 1 : i32
    %497 = tpu.dynamic_rotate %496 by %c1_i32_100 dim 1 : vector<8x128xf32>, i32 -> vector<8x128xf32>
    %c1_i32_101 = arith.constant 1 : i32
    %498 = vector.broadcast %c1_i32_101 : i32 to vector<8x128xi32>
    %499 = arith.cmpi sge, %0, %498 : vector<8x128xi32>
    %cst_102 = arith.constant 0.000000e+00 : f32
    %500 = vector.broadcast %cst_102 : f32 to vector<8x128xf32>
    %501 = arith.select %499, %497, %500 : vector<8x128xi1>, vector<8x128xf32>
    %c127_i32_103 = arith.constant 127 : i32
    %502 = tpu.dynamic_rotate %496 by %c127_i32_103 dim 1 : vector<8x128xf32>, i32 -> vector<8x128xf32>
    %c127_i32_104 = arith.constant 127 : i32
    %503 = vector.broadcast %c127_i32_104 : i32 to vector<8x128xi32>
    %504 = arith.cmpi slt, %0, %503 : vector<8x128xi32>
    %cst_105 = arith.constant 0.000000e+00 : f32
    %505 = vector.broadcast %cst_105 : f32 to vector<8x128xf32>
    %506 = arith.select %504, %502, %505 : vector<8x128xi1>, vector<8x128xf32>
    %507 = vector.broadcast %1 : f32 to vector<8x128xf32>
    %508 = arith.mulf %507, %501 : vector<8x128xf32>
    %509 = vector.broadcast %2 : f32 to vector<8x128xf32>
    %510 = arith.mulf %509, %496 : vector<8x128xf32>
    %511 = vector.broadcast %3 : f32 to vector<8x128xf32>
    %512 = arith.mulf %511, %506 : vector<8x128xf32>
    %513 = arith.addf %508, %510 : vector<8x128xf32>
    %514 = arith.addf %513, %512 : vector<8x128xf32>
    %515 = vector.shape_cast %514 : vector<8x128xf32> to vector<1x8x128xf32>
    %cst_106 = arith.constant dense<0.000000e+00> : vector<1xf32>
    %516 = vector.multi_reduction <add>, %515, %cst_106 [1, 2] : vector<1x8x128xf32> to vector<1xf32>
    %517 = vector.shape_cast %516 : vector<1xf32> to vector<1x1x1xf32>
    %518 = vector.extract %517[0, 0, 0] : f32 from vector<1x1x1xf32>
    %519 = arith.mulf %514, %514 : vector<8x128xf32>
    %520 = vector.shape_cast %519 : vector<8x128xf32> to vector<1x8x128xf32>
    %cst_107 = arith.constant dense<0.000000e+00> : vector<1xf32>
    %521 = vector.multi_reduction <add>, %520, %cst_107 [1, 2] : vector<1x8x128xf32> to vector<1xf32>
    %522 = vector.shape_cast %521 : vector<1xf32> to vector<1x1x1xf32>
    %523 = vector.extract %522[0, 0, 0] : f32 from vector<1x1x1xf32>
    %cst_108 = arith.constant 9.765625E-4 : f32
    %524 = arith.mulf %518, %cst_108 : f32
    %cst_109 = arith.constant 9.765625E-4 : f32
    %525 = arith.mulf %523, %cst_109 : f32
    %526 = arith.mulf %524, %524 : f32
    %527 = arith.subf %525, %526 : f32
    %528 = vector.broadcast %524 : f32 to vector<8x128xf32>
    %529 = arith.subf %514, %528 : vector<8x128xf32>
    %cst_110 = arith.constant 9.99999974E-6 : f32
    %530 = arith.addf %527, %cst_110 : f32
    %531 = math.rsqrt %530 : f32
    %532 = vector.broadcast %531 : f32 to vector<8x128xf32>
    %533 = arith.mulf %529, %532 : vector<8x128xf32>
    %cst_111 = arith.constant 0.000000e+00 : f32
    %534 = vector.broadcast %cst_111 : f32 to vector<8x128xf32>
    %535 = arith.maximumf %533, %534 : vector<8x128xf32>
    %536 = vector.broadcast %4 : f32 to vector<8x128xf32>
    %537 = arith.mulf %536, %501 : vector<8x128xf32>
    %538 = vector.broadcast %5 : f32 to vector<8x128xf32>
    %539 = arith.mulf %538, %496 : vector<8x128xf32>
    %540 = vector.broadcast %6 : f32 to vector<8x128xf32>
    %541 = arith.mulf %540, %506 : vector<8x128xf32>
    %542 = arith.addf %537, %539 : vector<8x128xf32>
    %543 = arith.addf %542, %541 : vector<8x128xf32>
    %544 = vector.shape_cast %543 : vector<8x128xf32> to vector<1x8x128xf32>
    %cst_112 = arith.constant dense<0.000000e+00> : vector<1xf32>
    %545 = vector.multi_reduction <add>, %544, %cst_112 [1, 2] : vector<1x8x128xf32> to vector<1xf32>
    %546 = vector.shape_cast %545 : vector<1xf32> to vector<1x1x1xf32>
    %547 = vector.extract %546[0, 0, 0] : f32 from vector<1x1x1xf32>
    %548 = arith.mulf %543, %543 : vector<8x128xf32>
    %549 = vector.shape_cast %548 : vector<8x128xf32> to vector<1x8x128xf32>
    %cst_113 = arith.constant dense<0.000000e+00> : vector<1xf32>
    %550 = vector.multi_reduction <add>, %549, %cst_113 [1, 2] : vector<1x8x128xf32> to vector<1xf32>
    %551 = vector.shape_cast %550 : vector<1xf32> to vector<1x1x1xf32>
    %552 = vector.extract %551[0, 0, 0] : f32 from vector<1x1x1xf32>
    %cst_114 = arith.constant 9.765625E-4 : f32
    %553 = arith.mulf %547, %cst_114 : f32
    %cst_115 = arith.constant 9.765625E-4 : f32
    %554 = arith.mulf %552, %cst_115 : f32
    %555 = arith.mulf %553, %553 : f32
    %556 = arith.subf %554, %555 : f32
    %557 = vector.broadcast %553 : f32 to vector<8x128xf32>
    %558 = arith.subf %543, %557 : vector<8x128xf32>
    %cst_116 = arith.constant 9.99999974E-6 : f32
    %559 = arith.addf %556, %cst_116 : f32
    %560 = math.rsqrt %559 : f32
    %561 = vector.broadcast %560 : f32 to vector<8x128xf32>
    %562 = arith.mulf %558, %561 : vector<8x128xf32>
    %cst_117 = arith.constant 0.000000e+00 : f32
    %563 = vector.broadcast %cst_117 : f32 to vector<8x128xf32>
    %564 = arith.maximumf %562, %563 : vector<8x128xf32>
    %565 = vector.broadcast %7 : f32 to vector<8x128xf32>
    %566 = arith.mulf %565, %501 : vector<8x128xf32>
    %567 = vector.broadcast %8 : f32 to vector<8x128xf32>
    %568 = arith.mulf %567, %496 : vector<8x128xf32>
    %569 = vector.broadcast %9 : f32 to vector<8x128xf32>
    %570 = arith.mulf %569, %506 : vector<8x128xf32>
    %571 = arith.addf %566, %568 : vector<8x128xf32>
    %572 = arith.addf %571, %570 : vector<8x128xf32>
    %573 = vector.shape_cast %572 : vector<8x128xf32> to vector<1x8x128xf32>
    %cst_118 = arith.constant dense<0.000000e+00> : vector<1xf32>
    %574 = vector.multi_reduction <add>, %573, %cst_118 [1, 2] : vector<1x8x128xf32> to vector<1xf32>
    %575 = vector.shape_cast %574 : vector<1xf32> to vector<1x1x1xf32>
    %576 = vector.extract %575[0, 0, 0] : f32 from vector<1x1x1xf32>
    %577 = arith.mulf %572, %572 : vector<8x128xf32>
    %578 = vector.shape_cast %577 : vector<8x128xf32> to vector<1x8x128xf32>
    %cst_119 = arith.constant dense<0.000000e+00> : vector<1xf32>
    %579 = vector.multi_reduction <add>, %578, %cst_119 [1, 2] : vector<1x8x128xf32> to vector<1xf32>
    %580 = vector.shape_cast %579 : vector<1xf32> to vector<1x1x1xf32>
    %581 = vector.extract %580[0, 0, 0] : f32 from vector<1x1x1xf32>
    %cst_120 = arith.constant 9.765625E-4 : f32
    %582 = arith.mulf %576, %cst_120 : f32
    %cst_121 = arith.constant 9.765625E-4 : f32
    %583 = arith.mulf %581, %cst_121 : f32
    %584 = arith.mulf %582, %582 : f32
    %585 = arith.subf %583, %584 : f32
    %586 = vector.broadcast %582 : f32 to vector<8x128xf32>
    %587 = arith.subf %572, %586 : vector<8x128xf32>
    %cst_122 = arith.constant 9.99999974E-6 : f32
    %588 = arith.addf %585, %cst_122 : f32
    %589 = math.rsqrt %588 : f32
    %590 = vector.broadcast %589 : f32 to vector<8x128xf32>
    %591 = arith.mulf %587, %590 : vector<8x128xf32>
    %cst_123 = arith.constant 0.000000e+00 : f32
    %592 = vector.broadcast %cst_123 : f32 to vector<8x128xf32>
    %593 = arith.maximumf %591, %592 : vector<8x128xf32>
    %c2_i32_124 = arith.constant 2 : i32
    %594 = tpu.dynamic_rotate %535 by %c2_i32_124 dim 1 : vector<8x128xf32>, i32 -> vector<8x128xf32>
    %c2_i32_125 = arith.constant 2 : i32
    %595 = vector.broadcast %c2_i32_125 : i32 to vector<8x128xi32>
    %596 = arith.cmpi sge, %0, %595 : vector<8x128xi32>
    %cst_126 = arith.constant 0.000000e+00 : f32
    %597 = vector.broadcast %cst_126 : f32 to vector<8x128xf32>
    %598 = arith.select %596, %594, %597 : vector<8x128xi1>, vector<8x128xf32>
    %c1_i32_127 = arith.constant 1 : i32
    %599 = tpu.dynamic_rotate %535 by %c1_i32_127 dim 1 : vector<8x128xf32>, i32 -> vector<8x128xf32>
    %c1_i32_128 = arith.constant 1 : i32
    %600 = vector.broadcast %c1_i32_128 : i32 to vector<8x128xi32>
    %601 = arith.cmpi sge, %0, %600 : vector<8x128xi32>
    %cst_129 = arith.constant 0.000000e+00 : f32
    %602 = vector.broadcast %cst_129 : f32 to vector<8x128xf32>
    %603 = arith.select %601, %599, %602 : vector<8x128xi1>, vector<8x128xf32>
    %c127_i32_130 = arith.constant 127 : i32
    %604 = tpu.dynamic_rotate %535 by %c127_i32_130 dim 1 : vector<8x128xf32>, i32 -> vector<8x128xf32>
    %c127_i32_131 = arith.constant 127 : i32
    %605 = vector.broadcast %c127_i32_131 : i32 to vector<8x128xi32>
    %606 = arith.cmpi slt, %0, %605 : vector<8x128xi32>
    %cst_132 = arith.constant 0.000000e+00 : f32
    %607 = vector.broadcast %cst_132 : f32 to vector<8x128xf32>
    %608 = arith.select %606, %604, %607 : vector<8x128xi1>, vector<8x128xf32>
    %c126_i32_133 = arith.constant 126 : i32
    %609 = tpu.dynamic_rotate %535 by %c126_i32_133 dim 1 : vector<8x128xf32>, i32 -> vector<8x128xf32>
    %c126_i32_134 = arith.constant 126 : i32
    %610 = vector.broadcast %c126_i32_134 : i32 to vector<8x128xi32>
    %611 = arith.cmpi slt, %0, %610 : vector<8x128xi32>
    %cst_135 = arith.constant 0.000000e+00 : f32
    %612 = vector.broadcast %cst_135 : f32 to vector<8x128xf32>
    %613 = arith.select %611, %609, %612 : vector<8x128xi1>, vector<8x128xf32>
    %c2_i32_136 = arith.constant 2 : i32
    %614 = tpu.dynamic_rotate %564 by %c2_i32_136 dim 1 : vector<8x128xf32>, i32 -> vector<8x128xf32>
    %c2_i32_137 = arith.constant 2 : i32
    %615 = vector.broadcast %c2_i32_137 : i32 to vector<8x128xi32>
    %616 = arith.cmpi sge, %0, %615 : vector<8x128xi32>
    %cst_138 = arith.constant 0.000000e+00 : f32
    %617 = vector.broadcast %cst_138 : f32 to vector<8x128xf32>
    %618 = arith.select %616, %614, %617 : vector<8x128xi1>, vector<8x128xf32>
    %c1_i32_139 = arith.constant 1 : i32
    %619 = tpu.dynamic_rotate %564 by %c1_i32_139 dim 1 : vector<8x128xf32>, i32 -> vector<8x128xf32>
    %c1_i32_140 = arith.constant 1 : i32
    %620 = vector.broadcast %c1_i32_140 : i32 to vector<8x128xi32>
    %621 = arith.cmpi sge, %0, %620 : vector<8x128xi32>
    %cst_141 = arith.constant 0.000000e+00 : f32
    %622 = vector.broadcast %cst_141 : f32 to vector<8x128xf32>
    %623 = arith.select %621, %619, %622 : vector<8x128xi1>, vector<8x128xf32>
    %c127_i32_142 = arith.constant 127 : i32
    %624 = tpu.dynamic_rotate %564 by %c127_i32_142 dim 1 : vector<8x128xf32>, i32 -> vector<8x128xf32>
    %c127_i32_143 = arith.constant 127 : i32
    %625 = vector.broadcast %c127_i32_143 : i32 to vector<8x128xi32>
    %626 = arith.cmpi slt, %0, %625 : vector<8x128xi32>
    %cst_144 = arith.constant 0.000000e+00 : f32
    %627 = vector.broadcast %cst_144 : f32 to vector<8x128xf32>
    %628 = arith.select %626, %624, %627 : vector<8x128xi1>, vector<8x128xf32>
    %c126_i32_145 = arith.constant 126 : i32
    %629 = tpu.dynamic_rotate %564 by %c126_i32_145 dim 1 : vector<8x128xf32>, i32 -> vector<8x128xf32>
    %c126_i32_146 = arith.constant 126 : i32
    %630 = vector.broadcast %c126_i32_146 : i32 to vector<8x128xi32>
    %631 = arith.cmpi slt, %0, %630 : vector<8x128xi32>
    %cst_147 = arith.constant 0.000000e+00 : f32
    %632 = vector.broadcast %cst_147 : f32 to vector<8x128xf32>
    %633 = arith.select %631, %629, %632 : vector<8x128xi1>, vector<8x128xf32>
    %c2_i32_148 = arith.constant 2 : i32
    %634 = tpu.dynamic_rotate %593 by %c2_i32_148 dim 1 : vector<8x128xf32>, i32 -> vector<8x128xf32>
    %c2_i32_149 = arith.constant 2 : i32
    %635 = vector.broadcast %c2_i32_149 : i32 to vector<8x128xi32>
    %636 = arith.cmpi sge, %0, %635 : vector<8x128xi32>
    %cst_150 = arith.constant 0.000000e+00 : f32
    %637 = vector.broadcast %cst_150 : f32 to vector<8x128xf32>
    %638 = arith.select %636, %634, %637 : vector<8x128xi1>, vector<8x128xf32>
    %c1_i32_151 = arith.constant 1 : i32
    %639 = tpu.dynamic_rotate %593 by %c1_i32_151 dim 1 : vector<8x128xf32>, i32 -> vector<8x128xf32>
    %c1_i32_152 = arith.constant 1 : i32
    %640 = vector.broadcast %c1_i32_152 : i32 to vector<8x128xi32>
    %641 = arith.cmpi sge, %0, %640 : vector<8x128xi32>
    %cst_153 = arith.constant 0.000000e+00 : f32
    %642 = vector.broadcast %cst_153 : f32 to vector<8x128xf32>
    %643 = arith.select %641, %639, %642 : vector<8x128xi1>, vector<8x128xf32>
    %c127_i32_154 = arith.constant 127 : i32
    %644 = tpu.dynamic_rotate %593 by %c127_i32_154 dim 1 : vector<8x128xf32>, i32 -> vector<8x128xf32>
    %c127_i32_155 = arith.constant 127 : i32
    %645 = vector.broadcast %c127_i32_155 : i32 to vector<8x128xi32>
    %646 = arith.cmpi slt, %0, %645 : vector<8x128xi32>
    %cst_156 = arith.constant 0.000000e+00 : f32
    %647 = vector.broadcast %cst_156 : f32 to vector<8x128xf32>
    %648 = arith.select %646, %644, %647 : vector<8x128xi1>, vector<8x128xf32>
    %c126_i32_157 = arith.constant 126 : i32
    %649 = tpu.dynamic_rotate %593 by %c126_i32_157 dim 1 : vector<8x128xf32>, i32 -> vector<8x128xf32>
    %c126_i32_158 = arith.constant 126 : i32
    %650 = vector.broadcast %c126_i32_158 : i32 to vector<8x128xi32>
    %651 = arith.cmpi slt, %0, %650 : vector<8x128xi32>
    %cst_159 = arith.constant 0.000000e+00 : f32
    %652 = vector.broadcast %cst_159 : f32 to vector<8x128xf32>
    %653 = arith.select %651, %649, %652 : vector<8x128xi1>, vector<8x128xf32>
    %654 = vector.broadcast %10 : f32 to vector<8x128xf32>
    %655 = arith.mulf %654, %598 : vector<8x128xf32>
    %656 = vector.broadcast %11 : f32 to vector<8x128xf32>
    %657 = arith.mulf %656, %603 : vector<8x128xf32>
    %658 = vector.broadcast %12 : f32 to vector<8x128xf32>
    %659 = arith.mulf %658, %535 : vector<8x128xf32>
    %660 = vector.broadcast %13 : f32 to vector<8x128xf32>
    %661 = arith.mulf %660, %608 : vector<8x128xf32>
    %662 = vector.broadcast %14 : f32 to vector<8x128xf32>
    %663 = arith.mulf %662, %613 : vector<8x128xf32>
    %664 = vector.broadcast %15 : f32 to vector<8x128xf32>
    %665 = arith.mulf %664, %618 : vector<8x128xf32>
    %666 = vector.broadcast %16 : f32 to vector<8x128xf32>
    %667 = arith.mulf %666, %623 : vector<8x128xf32>
    %668 = vector.broadcast %17 : f32 to vector<8x128xf32>
    %669 = arith.mulf %668, %564 : vector<8x128xf32>
    %670 = vector.broadcast %18 : f32 to vector<8x128xf32>
    %671 = arith.mulf %670, %628 : vector<8x128xf32>
    %672 = vector.broadcast %19 : f32 to vector<8x128xf32>
    %673 = arith.mulf %672, %633 : vector<8x128xf32>
    %674 = vector.broadcast %20 : f32 to vector<8x128xf32>
    %675 = arith.mulf %674, %638 : vector<8x128xf32>
    %676 = vector.broadcast %21 : f32 to vector<8x128xf32>
    %677 = arith.mulf %676, %643 : vector<8x128xf32>
    %678 = vector.broadcast %22 : f32 to vector<8x128xf32>
    %679 = arith.mulf %678, %593 : vector<8x128xf32>
    %680 = vector.broadcast %23 : f32 to vector<8x128xf32>
    %681 = arith.mulf %680, %648 : vector<8x128xf32>
    %682 = vector.broadcast %24 : f32 to vector<8x128xf32>
    %683 = arith.mulf %682, %653 : vector<8x128xf32>
    %684 = arith.addf %655, %657 : vector<8x128xf32>
    %685 = arith.addf %684, %659 : vector<8x128xf32>
    %686 = arith.addf %685, %661 : vector<8x128xf32>
    %687 = arith.addf %686, %663 : vector<8x128xf32>
    %688 = arith.addf %687, %665 : vector<8x128xf32>
    %689 = arith.addf %688, %667 : vector<8x128xf32>
    %690 = arith.addf %689, %669 : vector<8x128xf32>
    %691 = arith.addf %690, %671 : vector<8x128xf32>
    %692 = arith.addf %691, %673 : vector<8x128xf32>
    %693 = arith.addf %692, %675 : vector<8x128xf32>
    %694 = arith.addf %693, %677 : vector<8x128xf32>
    %695 = arith.addf %694, %679 : vector<8x128xf32>
    %696 = arith.addf %695, %681 : vector<8x128xf32>
    %697 = arith.addf %696, %683 : vector<8x128xf32>
    %698 = vector.shape_cast %697 : vector<8x128xf32> to vector<1x8x128xf32>
    %cst_160 = arith.constant dense<0.000000e+00> : vector<1xf32>
    %699 = vector.multi_reduction <add>, %698, %cst_160 [1, 2] : vector<1x8x128xf32> to vector<1xf32>
    %700 = vector.shape_cast %699 : vector<1xf32> to vector<1x1x1xf32>
    %701 = vector.extract %700[0, 0, 0] : f32 from vector<1x1x1xf32>
    %702 = arith.mulf %697, %697 : vector<8x128xf32>
    %703 = vector.shape_cast %702 : vector<8x128xf32> to vector<1x8x128xf32>
    %cst_161 = arith.constant dense<0.000000e+00> : vector<1xf32>
    %704 = vector.multi_reduction <add>, %703, %cst_161 [1, 2] : vector<1x8x128xf32> to vector<1xf32>
    %705 = vector.shape_cast %704 : vector<1xf32> to vector<1x1x1xf32>
    %706 = vector.extract %705[0, 0, 0] : f32 from vector<1x1x1xf32>
    %cst_162 = arith.constant 9.765625E-4 : f32
    %707 = arith.mulf %701, %cst_162 : f32
    %cst_163 = arith.constant 9.765625E-4 : f32
    %708 = arith.mulf %706, %cst_163 : f32
    %709 = arith.mulf %707, %707 : f32
    %710 = arith.subf %708, %709 : f32
    %711 = vector.broadcast %707 : f32 to vector<8x128xf32>
    %712 = arith.subf %697, %711 : vector<8x128xf32>
    %cst_164 = arith.constant 9.99999974E-6 : f32
    %713 = arith.addf %710, %cst_164 : f32
    %714 = math.rsqrt %713 : f32
    %715 = vector.broadcast %714 : f32 to vector<8x128xf32>
    %716 = arith.mulf %712, %715 : vector<8x128xf32>
    %cst_165 = arith.constant 0.000000e+00 : f32
    %717 = vector.broadcast %cst_165 : f32 to vector<8x128xf32>
    %718 = arith.maximumf %716, %717 : vector<8x128xf32>
    %719 = vector.broadcast %25 : f32 to vector<8x128xf32>
    %720 = arith.mulf %719, %598 : vector<8x128xf32>
    %721 = vector.broadcast %26 : f32 to vector<8x128xf32>
    %722 = arith.mulf %721, %603 : vector<8x128xf32>
    %723 = vector.broadcast %27 : f32 to vector<8x128xf32>
    %724 = arith.mulf %723, %535 : vector<8x128xf32>
    %725 = vector.broadcast %28 : f32 to vector<8x128xf32>
    %726 = arith.mulf %725, %608 : vector<8x128xf32>
    %727 = vector.broadcast %29 : f32 to vector<8x128xf32>
    %728 = arith.mulf %727, %613 : vector<8x128xf32>
    %729 = vector.broadcast %30 : f32 to vector<8x128xf32>
    %730 = arith.mulf %729, %618 : vector<8x128xf32>
    %731 = vector.broadcast %31 : f32 to vector<8x128xf32>
    %732 = arith.mulf %731, %623 : vector<8x128xf32>
    %733 = vector.broadcast %32 : f32 to vector<8x128xf32>
    %734 = arith.mulf %733, %564 : vector<8x128xf32>
    %735 = vector.broadcast %33 : f32 to vector<8x128xf32>
    %736 = arith.mulf %735, %628 : vector<8x128xf32>
    %737 = vector.broadcast %34 : f32 to vector<8x128xf32>
    %738 = arith.mulf %737, %633 : vector<8x128xf32>
    %739 = vector.broadcast %35 : f32 to vector<8x128xf32>
    %740 = arith.mulf %739, %638 : vector<8x128xf32>
    %741 = vector.broadcast %36 : f32 to vector<8x128xf32>
    %742 = arith.mulf %741, %643 : vector<8x128xf32>
    %743 = vector.broadcast %37 : f32 to vector<8x128xf32>
    %744 = arith.mulf %743, %593 : vector<8x128xf32>
    %745 = vector.broadcast %38 : f32 to vector<8x128xf32>
    %746 = arith.mulf %745, %648 : vector<8x128xf32>
    %747 = vector.broadcast %39 : f32 to vector<8x128xf32>
    %748 = arith.mulf %747, %653 : vector<8x128xf32>
    %749 = arith.addf %720, %722 : vector<8x128xf32>
    %750 = arith.addf %749, %724 : vector<8x128xf32>
    %751 = arith.addf %750, %726 : vector<8x128xf32>
    %752 = arith.addf %751, %728 : vector<8x128xf32>
    %753 = arith.addf %752, %730 : vector<8x128xf32>
    %754 = arith.addf %753, %732 : vector<8x128xf32>
    %755 = arith.addf %754, %734 : vector<8x128xf32>
    %756 = arith.addf %755, %736 : vector<8x128xf32>
    %757 = arith.addf %756, %738 : vector<8x128xf32>
    %758 = arith.addf %757, %740 : vector<8x128xf32>
    %759 = arith.addf %758, %742 : vector<8x128xf32>
    %760 = arith.addf %759, %744 : vector<8x128xf32>
    %761 = arith.addf %760, %746 : vector<8x128xf32>
    %762 = arith.addf %761, %748 : vector<8x128xf32>
    %763 = vector.shape_cast %762 : vector<8x128xf32> to vector<1x8x128xf32>
    %cst_166 = arith.constant dense<0.000000e+00> : vector<1xf32>
    %764 = vector.multi_reduction <add>, %763, %cst_166 [1, 2] : vector<1x8x128xf32> to vector<1xf32>
    %765 = vector.shape_cast %764 : vector<1xf32> to vector<1x1x1xf32>
    %766 = vector.extract %765[0, 0, 0] : f32 from vector<1x1x1xf32>
    %767 = arith.mulf %762, %762 : vector<8x128xf32>
    %768 = vector.shape_cast %767 : vector<8x128xf32> to vector<1x8x128xf32>
    %cst_167 = arith.constant dense<0.000000e+00> : vector<1xf32>
    %769 = vector.multi_reduction <add>, %768, %cst_167 [1, 2] : vector<1x8x128xf32> to vector<1xf32>
    %770 = vector.shape_cast %769 : vector<1xf32> to vector<1x1x1xf32>
    %771 = vector.extract %770[0, 0, 0] : f32 from vector<1x1x1xf32>
    %cst_168 = arith.constant 9.765625E-4 : f32
    %772 = arith.mulf %766, %cst_168 : f32
    %cst_169 = arith.constant 9.765625E-4 : f32
    %773 = arith.mulf %771, %cst_169 : f32
    %774 = arith.mulf %772, %772 : f32
    %775 = arith.subf %773, %774 : f32
    %776 = vector.broadcast %772 : f32 to vector<8x128xf32>
    %777 = arith.subf %762, %776 : vector<8x128xf32>
    %cst_170 = arith.constant 9.99999974E-6 : f32
    %778 = arith.addf %775, %cst_170 : f32
    %779 = math.rsqrt %778 : f32
    %780 = vector.broadcast %779 : f32 to vector<8x128xf32>
    %781 = arith.mulf %777, %780 : vector<8x128xf32>
    %cst_171 = arith.constant 0.000000e+00 : f32
    %782 = vector.broadcast %cst_171 : f32 to vector<8x128xf32>
    %783 = arith.maximumf %781, %782 : vector<8x128xf32>
    %784 = vector.broadcast %40 : f32 to vector<8x128xf32>
    %785 = arith.mulf %784, %598 : vector<8x128xf32>
    %786 = vector.broadcast %41 : f32 to vector<8x128xf32>
    %787 = arith.mulf %786, %603 : vector<8x128xf32>
    %788 = vector.broadcast %42 : f32 to vector<8x128xf32>
    %789 = arith.mulf %788, %535 : vector<8x128xf32>
    %790 = vector.broadcast %43 : f32 to vector<8x128xf32>
    %791 = arith.mulf %790, %608 : vector<8x128xf32>
    %792 = vector.broadcast %44 : f32 to vector<8x128xf32>
    %793 = arith.mulf %792, %613 : vector<8x128xf32>
    %794 = vector.broadcast %45 : f32 to vector<8x128xf32>
    %795 = arith.mulf %794, %618 : vector<8x128xf32>
    %796 = vector.broadcast %46 : f32 to vector<8x128xf32>
    %797 = arith.mulf %796, %623 : vector<8x128xf32>
    %798 = vector.broadcast %47 : f32 to vector<8x128xf32>
    %799 = arith.mulf %798, %564 : vector<8x128xf32>
    %800 = vector.broadcast %48 : f32 to vector<8x128xf32>
    %801 = arith.mulf %800, %628 : vector<8x128xf32>
    %802 = vector.broadcast %49 : f32 to vector<8x128xf32>
    %803 = arith.mulf %802, %633 : vector<8x128xf32>
    %804 = vector.broadcast %50 : f32 to vector<8x128xf32>
    %805 = arith.mulf %804, %638 : vector<8x128xf32>
    %806 = vector.broadcast %51 : f32 to vector<8x128xf32>
    %807 = arith.mulf %806, %643 : vector<8x128xf32>
    %808 = vector.broadcast %52 : f32 to vector<8x128xf32>
    %809 = arith.mulf %808, %593 : vector<8x128xf32>
    %810 = vector.broadcast %53 : f32 to vector<8x128xf32>
    %811 = arith.mulf %810, %648 : vector<8x128xf32>
    %812 = vector.broadcast %54 : f32 to vector<8x128xf32>
    %813 = arith.mulf %812, %653 : vector<8x128xf32>
    %814 = arith.addf %785, %787 : vector<8x128xf32>
    %815 = arith.addf %814, %789 : vector<8x128xf32>
    %816 = arith.addf %815, %791 : vector<8x128xf32>
    %817 = arith.addf %816, %793 : vector<8x128xf32>
    %818 = arith.addf %817, %795 : vector<8x128xf32>
    %819 = arith.addf %818, %797 : vector<8x128xf32>
    %820 = arith.addf %819, %799 : vector<8x128xf32>
    %821 = arith.addf %820, %801 : vector<8x128xf32>
    %822 = arith.addf %821, %803 : vector<8x128xf32>
    %823 = arith.addf %822, %805 : vector<8x128xf32>
    %824 = arith.addf %823, %807 : vector<8x128xf32>
    %825 = arith.addf %824, %809 : vector<8x128xf32>
    %826 = arith.addf %825, %811 : vector<8x128xf32>
    %827 = arith.addf %826, %813 : vector<8x128xf32>
    %828 = vector.shape_cast %827 : vector<8x128xf32> to vector<1x8x128xf32>
    %cst_172 = arith.constant dense<0.000000e+00> : vector<1xf32>
    %829 = vector.multi_reduction <add>, %828, %cst_172 [1, 2] : vector<1x8x128xf32> to vector<1xf32>
    %830 = vector.shape_cast %829 : vector<1xf32> to vector<1x1x1xf32>
    %831 = vector.extract %830[0, 0, 0] : f32 from vector<1x1x1xf32>
    %832 = arith.mulf %827, %827 : vector<8x128xf32>
    %833 = vector.shape_cast %832 : vector<8x128xf32> to vector<1x8x128xf32>
    %cst_173 = arith.constant dense<0.000000e+00> : vector<1xf32>
    %834 = vector.multi_reduction <add>, %833, %cst_173 [1, 2] : vector<1x8x128xf32> to vector<1xf32>
    %835 = vector.shape_cast %834 : vector<1xf32> to vector<1x1x1xf32>
    %836 = vector.extract %835[0, 0, 0] : f32 from vector<1x1x1xf32>
    %cst_174 = arith.constant 9.765625E-4 : f32
    %837 = arith.mulf %831, %cst_174 : f32
    %cst_175 = arith.constant 9.765625E-4 : f32
    %838 = arith.mulf %836, %cst_175 : f32
    %839 = arith.mulf %837, %837 : f32
    %840 = arith.subf %838, %839 : f32
    %841 = vector.broadcast %837 : f32 to vector<8x128xf32>
    %842 = arith.subf %827, %841 : vector<8x128xf32>
    %cst_176 = arith.constant 9.99999974E-6 : f32
    %843 = arith.addf %840, %cst_176 : f32
    %844 = math.rsqrt %843 : f32
    %845 = vector.broadcast %844 : f32 to vector<8x128xf32>
    %846 = arith.mulf %842, %845 : vector<8x128xf32>
    %cst_177 = arith.constant 0.000000e+00 : f32
    %847 = vector.broadcast %cst_177 : f32 to vector<8x128xf32>
    %848 = arith.maximumf %846, %847 : vector<8x128xf32>
    %c2_i32_178 = arith.constant 2 : i32
    %849 = tpu.dynamic_rotate %718 by %c2_i32_178 dim 1 : vector<8x128xf32>, i32 -> vector<8x128xf32>
    %c2_i32_179 = arith.constant 2 : i32
    %850 = vector.broadcast %c2_i32_179 : i32 to vector<8x128xi32>
    %851 = arith.cmpi sge, %0, %850 : vector<8x128xi32>
    %cst_180 = arith.constant 0.000000e+00 : f32
    %852 = vector.broadcast %cst_180 : f32 to vector<8x128xf32>
    %853 = arith.select %851, %849, %852 : vector<8x128xi1>, vector<8x128xf32>
    %c126_i32_181 = arith.constant 126 : i32
    %854 = tpu.dynamic_rotate %718 by %c126_i32_181 dim 1 : vector<8x128xf32>, i32 -> vector<8x128xf32>
    %c126_i32_182 = arith.constant 126 : i32
    %855 = vector.broadcast %c126_i32_182 : i32 to vector<8x128xi32>
    %856 = arith.cmpi slt, %0, %855 : vector<8x128xi32>
    %cst_183 = arith.constant 0.000000e+00 : f32
    %857 = vector.broadcast %cst_183 : f32 to vector<8x128xf32>
    %858 = arith.select %856, %854, %857 : vector<8x128xi1>, vector<8x128xf32>
    %c2_i32_184 = arith.constant 2 : i32
    %859 = tpu.dynamic_rotate %783 by %c2_i32_184 dim 1 : vector<8x128xf32>, i32 -> vector<8x128xf32>
    %c2_i32_185 = arith.constant 2 : i32
    %860 = vector.broadcast %c2_i32_185 : i32 to vector<8x128xi32>
    %861 = arith.cmpi sge, %0, %860 : vector<8x128xi32>
    %cst_186 = arith.constant 0.000000e+00 : f32
    %862 = vector.broadcast %cst_186 : f32 to vector<8x128xf32>
    %863 = arith.select %861, %859, %862 : vector<8x128xi1>, vector<8x128xf32>
    %c126_i32_187 = arith.constant 126 : i32
    %864 = tpu.dynamic_rotate %783 by %c126_i32_187 dim 1 : vector<8x128xf32>, i32 -> vector<8x128xf32>
    %c126_i32_188 = arith.constant 126 : i32
    %865 = vector.broadcast %c126_i32_188 : i32 to vector<8x128xi32>
    %866 = arith.cmpi slt, %0, %865 : vector<8x128xi32>
    %cst_189 = arith.constant 0.000000e+00 : f32
    %867 = vector.broadcast %cst_189 : f32 to vector<8x128xf32>
    %868 = arith.select %866, %864, %867 : vector<8x128xi1>, vector<8x128xf32>
    %c2_i32_190 = arith.constant 2 : i32
    %869 = tpu.dynamic_rotate %848 by %c2_i32_190 dim 1 : vector<8x128xf32>, i32 -> vector<8x128xf32>
    %c2_i32_191 = arith.constant 2 : i32
    %870 = vector.broadcast %c2_i32_191 : i32 to vector<8x128xi32>
    %871 = arith.cmpi sge, %0, %870 : vector<8x128xi32>
    %cst_192 = arith.constant 0.000000e+00 : f32
    %872 = vector.broadcast %cst_192 : f32 to vector<8x128xf32>
    %873 = arith.select %871, %869, %872 : vector<8x128xi1>, vector<8x128xf32>
    %c126_i32_193 = arith.constant 126 : i32
    %874 = tpu.dynamic_rotate %848 by %c126_i32_193 dim 1 : vector<8x128xf32>, i32 -> vector<8x128xf32>
    %c126_i32_194 = arith.constant 126 : i32
    %875 = vector.broadcast %c126_i32_194 : i32 to vector<8x128xi32>
    %876 = arith.cmpi slt, %0, %875 : vector<8x128xi32>
    %cst_195 = arith.constant 0.000000e+00 : f32
    %877 = vector.broadcast %cst_195 : f32 to vector<8x128xf32>
    %878 = arith.select %876, %874, %877 : vector<8x128xi1>, vector<8x128xf32>
    %879 = vector.broadcast %55 : f32 to vector<8x128xf32>
    %880 = arith.mulf %879, %853 : vector<8x128xf32>
    %881 = vector.broadcast %56 : f32 to vector<8x128xf32>
    %882 = arith.mulf %881, %718 : vector<8x128xf32>
    %883 = vector.broadcast %57 : f32 to vector<8x128xf32>
    %884 = arith.mulf %883, %858 : vector<8x128xf32>
    %885 = vector.broadcast %58 : f32 to vector<8x128xf32>
    %886 = arith.mulf %885, %863 : vector<8x128xf32>
    %887 = vector.broadcast %59 : f32 to vector<8x128xf32>
    %888 = arith.mulf %887, %783 : vector<8x128xf32>
    %889 = vector.broadcast %60 : f32 to vector<8x128xf32>
    %890 = arith.mulf %889, %868 : vector<8x128xf32>
    %891 = vector.broadcast %61 : f32 to vector<8x128xf32>
    %892 = arith.mulf %891, %873 : vector<8x128xf32>
    %893 = vector.broadcast %62 : f32 to vector<8x128xf32>
    %894 = arith.mulf %893, %848 : vector<8x128xf32>
    %895 = vector.broadcast %63 : f32 to vector<8x128xf32>
    %896 = arith.mulf %895, %878 : vector<8x128xf32>
    %897 = arith.addf %880, %882 : vector<8x128xf32>
    %898 = arith.addf %897, %884 : vector<8x128xf32>
    %899 = arith.addf %898, %886 : vector<8x128xf32>
    %900 = arith.addf %899, %888 : vector<8x128xf32>
    %901 = arith.addf %900, %890 : vector<8x128xf32>
    %902 = arith.addf %901, %892 : vector<8x128xf32>
    %903 = arith.addf %902, %894 : vector<8x128xf32>
    %904 = arith.addf %903, %896 : vector<8x128xf32>
    %905 = vector.shape_cast %904 : vector<8x128xf32> to vector<1x8x128xf32>
    %cst_196 = arith.constant dense<0.000000e+00> : vector<1xf32>
    %906 = vector.multi_reduction <add>, %905, %cst_196 [1, 2] : vector<1x8x128xf32> to vector<1xf32>
    %907 = vector.shape_cast %906 : vector<1xf32> to vector<1x1x1xf32>
    %908 = vector.extract %907[0, 0, 0] : f32 from vector<1x1x1xf32>
    %909 = arith.mulf %904, %904 : vector<8x128xf32>
    %910 = vector.shape_cast %909 : vector<8x128xf32> to vector<1x8x128xf32>
    %cst_197 = arith.constant dense<0.000000e+00> : vector<1xf32>
    %911 = vector.multi_reduction <add>, %910, %cst_197 [1, 2] : vector<1x8x128xf32> to vector<1xf32>
    %912 = vector.shape_cast %911 : vector<1xf32> to vector<1x1x1xf32>
    %913 = vector.extract %912[0, 0, 0] : f32 from vector<1x1x1xf32>
    %cst_198 = arith.constant 9.765625E-4 : f32
    %914 = arith.mulf %908, %cst_198 : f32
    %cst_199 = arith.constant 9.765625E-4 : f32
    %915 = arith.mulf %913, %cst_199 : f32
    %916 = arith.mulf %914, %914 : f32
    %917 = arith.subf %915, %916 : f32
    %918 = vector.broadcast %914 : f32 to vector<8x128xf32>
    %919 = arith.subf %904, %918 : vector<8x128xf32>
    %cst_200 = arith.constant 9.99999974E-6 : f32
    %920 = arith.addf %917, %cst_200 : f32
    %921 = math.rsqrt %920 : f32
    %922 = vector.broadcast %921 : f32 to vector<8x128xf32>
    %923 = arith.mulf %919, %922 : vector<8x128xf32>
    %cst_201 = arith.constant 0.000000e+00 : f32
    %924 = vector.broadcast %cst_201 : f32 to vector<8x128xf32>
    %925 = arith.maximumf %923, %924 : vector<8x128xf32>
    %926 = arith.addf %925, %496 : vector<8x128xf32>
    %cst_202 = arith.constant 0.000000e+00 : f32
    %927 = vector.broadcast %cst_202 : f32 to vector<8x128xf32>
    %928 = arith.maximumf %926, %927 : vector<8x128xf32>
    %c1_i32_203 = arith.constant 1 : i32
    %929 = tpu.dynamic_rotate %928 by %c1_i32_203 dim 1 : vector<8x128xf32>, i32 -> vector<8x128xf32>
    %c1_i32_204 = arith.constant 1 : i32
    %930 = vector.broadcast %c1_i32_204 : i32 to vector<8x128xi32>
    %931 = arith.cmpi sge, %0, %930 : vector<8x128xi32>
    %cst_205 = arith.constant 0.000000e+00 : f32
    %932 = vector.broadcast %cst_205 : f32 to vector<8x128xf32>
    %933 = arith.select %931, %929, %932 : vector<8x128xi1>, vector<8x128xf32>
    %c127_i32_206 = arith.constant 127 : i32
    %934 = tpu.dynamic_rotate %928 by %c127_i32_206 dim 1 : vector<8x128xf32>, i32 -> vector<8x128xf32>
    %c127_i32_207 = arith.constant 127 : i32
    %935 = vector.broadcast %c127_i32_207 : i32 to vector<8x128xi32>
    %936 = arith.cmpi slt, %0, %935 : vector<8x128xi32>
    %cst_208 = arith.constant 0.000000e+00 : f32
    %937 = vector.broadcast %cst_208 : f32 to vector<8x128xf32>
    %938 = arith.select %936, %934, %937 : vector<8x128xi1>, vector<8x128xf32>
    %939 = vector.broadcast %1 : f32 to vector<8x128xf32>
    %940 = arith.mulf %939, %933 : vector<8x128xf32>
    %941 = vector.broadcast %2 : f32 to vector<8x128xf32>
    %942 = arith.mulf %941, %928 : vector<8x128xf32>
    %943 = vector.broadcast %3 : f32 to vector<8x128xf32>
    %944 = arith.mulf %943, %938 : vector<8x128xf32>
    %945 = arith.addf %940, %942 : vector<8x128xf32>
    %946 = arith.addf %945, %944 : vector<8x128xf32>
    %947 = vector.shape_cast %946 : vector<8x128xf32> to vector<1x8x128xf32>
    %cst_209 = arith.constant dense<0.000000e+00> : vector<1xf32>
    %948 = vector.multi_reduction <add>, %947, %cst_209 [1, 2] : vector<1x8x128xf32> to vector<1xf32>
    %949 = vector.shape_cast %948 : vector<1xf32> to vector<1x1x1xf32>
    %950 = vector.extract %949[0, 0, 0] : f32 from vector<1x1x1xf32>
    %951 = arith.mulf %946, %946 : vector<8x128xf32>
    %952 = vector.shape_cast %951 : vector<8x128xf32> to vector<1x8x128xf32>
    %cst_210 = arith.constant dense<0.000000e+00> : vector<1xf32>
    %953 = vector.multi_reduction <add>, %952, %cst_210 [1, 2] : vector<1x8x128xf32> to vector<1xf32>
    %954 = vector.shape_cast %953 : vector<1xf32> to vector<1x1x1xf32>
    %955 = vector.extract %954[0, 0, 0] : f32 from vector<1x1x1xf32>
    %cst_211 = arith.constant 9.765625E-4 : f32
    %956 = arith.mulf %950, %cst_211 : f32
    %cst_212 = arith.constant 9.765625E-4 : f32
    %957 = arith.mulf %955, %cst_212 : f32
    %958 = arith.mulf %956, %956 : f32
    %959 = arith.subf %957, %958 : f32
    %960 = vector.broadcast %956 : f32 to vector<8x128xf32>
    %961 = arith.subf %946, %960 : vector<8x128xf32>
    %cst_213 = arith.constant 9.99999974E-6 : f32
    %962 = arith.addf %959, %cst_213 : f32
    %963 = math.rsqrt %962 : f32
    %964 = vector.broadcast %963 : f32 to vector<8x128xf32>
    %965 = arith.mulf %961, %964 : vector<8x128xf32>
    %cst_214 = arith.constant 0.000000e+00 : f32
    %966 = vector.broadcast %cst_214 : f32 to vector<8x128xf32>
    %967 = arith.maximumf %965, %966 : vector<8x128xf32>
    %968 = vector.broadcast %4 : f32 to vector<8x128xf32>
    %969 = arith.mulf %968, %933 : vector<8x128xf32>
    %970 = vector.broadcast %5 : f32 to vector<8x128xf32>
    %971 = arith.mulf %970, %928 : vector<8x128xf32>
    %972 = vector.broadcast %6 : f32 to vector<8x128xf32>
    %973 = arith.mulf %972, %938 : vector<8x128xf32>
    %974 = arith.addf %969, %971 : vector<8x128xf32>
    %975 = arith.addf %974, %973 : vector<8x128xf32>
    %976 = vector.shape_cast %975 : vector<8x128xf32> to vector<1x8x128xf32>
    %cst_215 = arith.constant dense<0.000000e+00> : vector<1xf32>
    %977 = vector.multi_reduction <add>, %976, %cst_215 [1, 2] : vector<1x8x128xf32> to vector<1xf32>
    %978 = vector.shape_cast %977 : vector<1xf32> to vector<1x1x1xf32>
    %979 = vector.extract %978[0, 0, 0] : f32 from vector<1x1x1xf32>
    %980 = arith.mulf %975, %975 : vector<8x128xf32>
    %981 = vector.shape_cast %980 : vector<8x128xf32> to vector<1x8x128xf32>
    %cst_216 = arith.constant dense<0.000000e+00> : vector<1xf32>
    %982 = vector.multi_reduction <add>, %981, %cst_216 [1, 2] : vector<1x8x128xf32> to vector<1xf32>
    %983 = vector.shape_cast %982 : vector<1xf32> to vector<1x1x1xf32>
    %984 = vector.extract %983[0, 0, 0] : f32 from vector<1x1x1xf32>
    %cst_217 = arith.constant 9.765625E-4 : f32
    %985 = arith.mulf %979, %cst_217 : f32
    %cst_218 = arith.constant 9.765625E-4 : f32
    %986 = arith.mulf %984, %cst_218 : f32
    %987 = arith.mulf %985, %985 : f32
    %988 = arith.subf %986, %987 : f32
    %989 = vector.broadcast %985 : f32 to vector<8x128xf32>
    %990 = arith.subf %975, %989 : vector<8x128xf32>
    %cst_219 = arith.constant 9.99999974E-6 : f32
    %991 = arith.addf %988, %cst_219 : f32
    %992 = math.rsqrt %991 : f32
    %993 = vector.broadcast %992 : f32 to vector<8x128xf32>
    %994 = arith.mulf %990, %993 : vector<8x128xf32>
    %cst_220 = arith.constant 0.000000e+00 : f32
    %995 = vector.broadcast %cst_220 : f32 to vector<8x128xf32>
    %996 = arith.maximumf %994, %995 : vector<8x128xf32>
    %997 = vector.broadcast %7 : f32 to vector<8x128xf32>
    %998 = arith.mulf %997, %933 : vector<8x128xf32>
    %999 = vector.broadcast %8 : f32 to vector<8x128xf32>
    %1000 = arith.mulf %999, %928 : vector<8x128xf32>
    %1001 = vector.broadcast %9 : f32 to vector<8x128xf32>
    %1002 = arith.mulf %1001, %938 : vector<8x128xf32>
    %1003 = arith.addf %998, %1000 : vector<8x128xf32>
    %1004 = arith.addf %1003, %1002 : vector<8x128xf32>
    %1005 = vector.shape_cast %1004 : vector<8x128xf32> to vector<1x8x128xf32>
    %cst_221 = arith.constant dense<0.000000e+00> : vector<1xf32>
    %1006 = vector.multi_reduction <add>, %1005, %cst_221 [1, 2] : vector<1x8x128xf32> to vector<1xf32>
    %1007 = vector.shape_cast %1006 : vector<1xf32> to vector<1x1x1xf32>
    %1008 = vector.extract %1007[0, 0, 0] : f32 from vector<1x1x1xf32>
    %1009 = arith.mulf %1004, %1004 : vector<8x128xf32>
    %1010 = vector.shape_cast %1009 : vector<8x128xf32> to vector<1x8x128xf32>
    %cst_222 = arith.constant dense<0.000000e+00> : vector<1xf32>
    %1011 = vector.multi_reduction <add>, %1010, %cst_222 [1, 2] : vector<1x8x128xf32> to vector<1xf32>
    %1012 = vector.shape_cast %1011 : vector<1xf32> to vector<1x1x1xf32>
    %1013 = vector.extract %1012[0, 0, 0] : f32 from vector<1x1x1xf32>
    %cst_223 = arith.constant 9.765625E-4 : f32
    %1014 = arith.mulf %1008, %cst_223 : f32
    %cst_224 = arith.constant 9.765625E-4 : f32
    %1015 = arith.mulf %1013, %cst_224 : f32
    %1016 = arith.mulf %1014, %1014 : f32
    %1017 = arith.subf %1015, %1016 : f32
    %1018 = vector.broadcast %1014 : f32 to vector<8x128xf32>
    %1019 = arith.subf %1004, %1018 : vector<8x128xf32>
    %cst_225 = arith.constant 9.99999974E-6 : f32
    %1020 = arith.addf %1017, %cst_225 : f32
    %1021 = math.rsqrt %1020 : f32
    %1022 = vector.broadcast %1021 : f32 to vector<8x128xf32>
    %1023 = arith.mulf %1019, %1022 : vector<8x128xf32>
    %cst_226 = arith.constant 0.000000e+00 : f32
    %1024 = vector.broadcast %cst_226 : f32 to vector<8x128xf32>
    %1025 = arith.maximumf %1023, %1024 : vector<8x128xf32>
    %c2_i32_227 = arith.constant 2 : i32
    %1026 = tpu.dynamic_rotate %967 by %c2_i32_227 dim 1 : vector<8x128xf32>, i32 -> vector<8x128xf32>
    %c2_i32_228 = arith.constant 2 : i32
    %1027 = vector.broadcast %c2_i32_228 : i32 to vector<8x128xi32>
    %1028 = arith.cmpi sge, %0, %1027 : vector<8x128xi32>
    %cst_229 = arith.constant 0.000000e+00 : f32
    %1029 = vector.broadcast %cst_229 : f32 to vector<8x128xf32>
    %1030 = arith.select %1028, %1026, %1029 : vector<8x128xi1>, vector<8x128xf32>
    %c1_i32_230 = arith.constant 1 : i32
    %1031 = tpu.dynamic_rotate %967 by %c1_i32_230 dim 1 : vector<8x128xf32>, i32 -> vector<8x128xf32>
    %c1_i32_231 = arith.constant 1 : i32
    %1032 = vector.broadcast %c1_i32_231 : i32 to vector<8x128xi32>
    %1033 = arith.cmpi sge, %0, %1032 : vector<8x128xi32>
    %cst_232 = arith.constant 0.000000e+00 : f32
    %1034 = vector.broadcast %cst_232 : f32 to vector<8x128xf32>
    %1035 = arith.select %1033, %1031, %1034 : vector<8x128xi1>, vector<8x128xf32>
    %c127_i32_233 = arith.constant 127 : i32
    %1036 = tpu.dynamic_rotate %967 by %c127_i32_233 dim 1 : vector<8x128xf32>, i32 -> vector<8x128xf32>
    %c127_i32_234 = arith.constant 127 : i32
    %1037 = vector.broadcast %c127_i32_234 : i32 to vector<8x128xi32>
    %1038 = arith.cmpi slt, %0, %1037 : vector<8x128xi32>
    %cst_235 = arith.constant 0.000000e+00 : f32
    %1039 = vector.broadcast %cst_235 : f32 to vector<8x128xf32>
    %1040 = arith.select %1038, %1036, %1039 : vector<8x128xi1>, vector<8x128xf32>
    %c126_i32_236 = arith.constant 126 : i32
    %1041 = tpu.dynamic_rotate %967 by %c126_i32_236 dim 1 : vector<8x128xf32>, i32 -> vector<8x128xf32>
    %c126_i32_237 = arith.constant 126 : i32
    %1042 = vector.broadcast %c126_i32_237 : i32 to vector<8x128xi32>
    %1043 = arith.cmpi slt, %0, %1042 : vector<8x128xi32>
    %cst_238 = arith.constant 0.000000e+00 : f32
    %1044 = vector.broadcast %cst_238 : f32 to vector<8x128xf32>
    %1045 = arith.select %1043, %1041, %1044 : vector<8x128xi1>, vector<8x128xf32>
    %c2_i32_239 = arith.constant 2 : i32
    %1046 = tpu.dynamic_rotate %996 by %c2_i32_239 dim 1 : vector<8x128xf32>, i32 -> vector<8x128xf32>
    %c2_i32_240 = arith.constant 2 : i32
    %1047 = vector.broadcast %c2_i32_240 : i32 to vector<8x128xi32>
    %1048 = arith.cmpi sge, %0, %1047 : vector<8x128xi32>
    %cst_241 = arith.constant 0.000000e+00 : f32
    %1049 = vector.broadcast %cst_241 : f32 to vector<8x128xf32>
    %1050 = arith.select %1048, %1046, %1049 : vector<8x128xi1>, vector<8x128xf32>
    %c1_i32_242 = arith.constant 1 : i32
    %1051 = tpu.dynamic_rotate %996 by %c1_i32_242 dim 1 : vector<8x128xf32>, i32 -> vector<8x128xf32>
    %c1_i32_243 = arith.constant 1 : i32
    %1052 = vector.broadcast %c1_i32_243 : i32 to vector<8x128xi32>
    %1053 = arith.cmpi sge, %0, %1052 : vector<8x128xi32>
    %cst_244 = arith.constant 0.000000e+00 : f32
    %1054 = vector.broadcast %cst_244 : f32 to vector<8x128xf32>
    %1055 = arith.select %1053, %1051, %1054 : vector<8x128xi1>, vector<8x128xf32>
    %c127_i32_245 = arith.constant 127 : i32
    %1056 = tpu.dynamic_rotate %996 by %c127_i32_245 dim 1 : vector<8x128xf32>, i32 -> vector<8x128xf32>
    %c127_i32_246 = arith.constant 127 : i32
    %1057 = vector.broadcast %c127_i32_246 : i32 to vector<8x128xi32>
    %1058 = arith.cmpi slt, %0, %1057 : vector<8x128xi32>
    %cst_247 = arith.constant 0.000000e+00 : f32
    %1059 = vector.broadcast %cst_247 : f32 to vector<8x128xf32>
    %1060 = arith.select %1058, %1056, %1059 : vector<8x128xi1>, vector<8x128xf32>
    %c126_i32_248 = arith.constant 126 : i32
    %1061 = tpu.dynamic_rotate %996 by %c126_i32_248 dim 1 : vector<8x128xf32>, i32 -> vector<8x128xf32>
    %c126_i32_249 = arith.constant 126 : i32
    %1062 = vector.broadcast %c126_i32_249 : i32 to vector<8x128xi32>
    %1063 = arith.cmpi slt, %0, %1062 : vector<8x128xi32>
    %cst_250 = arith.constant 0.000000e+00 : f32
    %1064 = vector.broadcast %cst_250 : f32 to vector<8x128xf32>
    %1065 = arith.select %1063, %1061, %1064 : vector<8x128xi1>, vector<8x128xf32>
    %c2_i32_251 = arith.constant 2 : i32
    %1066 = tpu.dynamic_rotate %1025 by %c2_i32_251 dim 1 : vector<8x128xf32>, i32 -> vector<8x128xf32>
    %c2_i32_252 = arith.constant 2 : i32
    %1067 = vector.broadcast %c2_i32_252 : i32 to vector<8x128xi32>
    %1068 = arith.cmpi sge, %0, %1067 : vector<8x128xi32>
    %cst_253 = arith.constant 0.000000e+00 : f32
    %1069 = vector.broadcast %cst_253 : f32 to vector<8x128xf32>
    %1070 = arith.select %1068, %1066, %1069 : vector<8x128xi1>, vector<8x128xf32>
    %c1_i32_254 = arith.constant 1 : i32
    %1071 = tpu.dynamic_rotate %1025 by %c1_i32_254 dim 1 : vector<8x128xf32>, i32 -> vector<8x128xf32>
    %c1_i32_255 = arith.constant 1 : i32
    %1072 = vector.broadcast %c1_i32_255 : i32 to vector<8x128xi32>
    %1073 = arith.cmpi sge, %0, %1072 : vector<8x128xi32>
    %cst_256 = arith.constant 0.000000e+00 : f32
    %1074 = vector.broadcast %cst_256 : f32 to vector<8x128xf32>
    %1075 = arith.select %1073, %1071, %1074 : vector<8x128xi1>, vector<8x128xf32>
    %c127_i32_257 = arith.constant 127 : i32
    %1076 = tpu.dynamic_rotate %1025 by %c127_i32_257 dim 1 : vector<8x128xf32>, i32 -> vector<8x128xf32>
    %c127_i32_258 = arith.constant 127 : i32
    %1077 = vector.broadcast %c127_i32_258 : i32 to vector<8x128xi32>
    %1078 = arith.cmpi slt, %0, %1077 : vector<8x128xi32>
    %cst_259 = arith.constant 0.000000e+00 : f32
    %1079 = vector.broadcast %cst_259 : f32 to vector<8x128xf32>
    %1080 = arith.select %1078, %1076, %1079 : vector<8x128xi1>, vector<8x128xf32>
    %c126_i32_260 = arith.constant 126 : i32
    %1081 = tpu.dynamic_rotate %1025 by %c126_i32_260 dim 1 : vector<8x128xf32>, i32 -> vector<8x128xf32>
    %c126_i32_261 = arith.constant 126 : i32
    %1082 = vector.broadcast %c126_i32_261 : i32 to vector<8x128xi32>
    %1083 = arith.cmpi slt, %0, %1082 : vector<8x128xi32>
    %cst_262 = arith.constant 0.000000e+00 : f32
    %1084 = vector.broadcast %cst_262 : f32 to vector<8x128xf32>
    %1085 = arith.select %1083, %1081, %1084 : vector<8x128xi1>, vector<8x128xf32>
    %1086 = vector.broadcast %10 : f32 to vector<8x128xf32>
    %1087 = arith.mulf %1086, %1030 : vector<8x128xf32>
    %1088 = vector.broadcast %11 : f32 to vector<8x128xf32>
    %1089 = arith.mulf %1088, %1035 : vector<8x128xf32>
    %1090 = vector.broadcast %12 : f32 to vector<8x128xf32>
    %1091 = arith.mulf %1090, %967 : vector<8x128xf32>
    %1092 = vector.broadcast %13 : f32 to vector<8x128xf32>
    %1093 = arith.mulf %1092, %1040 : vector<8x128xf32>
    %1094 = vector.broadcast %14 : f32 to vector<8x128xf32>
    %1095 = arith.mulf %1094, %1045 : vector<8x128xf32>
    %1096 = vector.broadcast %15 : f32 to vector<8x128xf32>
    %1097 = arith.mulf %1096, %1050 : vector<8x128xf32>
    %1098 = vector.broadcast %16 : f32 to vector<8x128xf32>
    %1099 = arith.mulf %1098, %1055 : vector<8x128xf32>
    %1100 = vector.broadcast %17 : f32 to vector<8x128xf32>
    %1101 = arith.mulf %1100, %996 : vector<8x128xf32>
    %1102 = vector.broadcast %18 : f32 to vector<8x128xf32>
    %1103 = arith.mulf %1102, %1060 : vector<8x128xf32>
    %1104 = vector.broadcast %19 : f32 to vector<8x128xf32>
    %1105 = arith.mulf %1104, %1065 : vector<8x128xf32>
    %1106 = vector.broadcast %20 : f32 to vector<8x128xf32>
    %1107 = arith.mulf %1106, %1070 : vector<8x128xf32>
    %1108 = vector.broadcast %21 : f32 to vector<8x128xf32>
    %1109 = arith.mulf %1108, %1075 : vector<8x128xf32>
    %1110 = vector.broadcast %22 : f32 to vector<8x128xf32>
    %1111 = arith.mulf %1110, %1025 : vector<8x128xf32>
    %1112 = vector.broadcast %23 : f32 to vector<8x128xf32>
    %1113 = arith.mulf %1112, %1080 : vector<8x128xf32>
    %1114 = vector.broadcast %24 : f32 to vector<8x128xf32>
    %1115 = arith.mulf %1114, %1085 : vector<8x128xf32>
    %1116 = arith.addf %1087, %1089 : vector<8x128xf32>
    %1117 = arith.addf %1116, %1091 : vector<8x128xf32>
    %1118 = arith.addf %1117, %1093 : vector<8x128xf32>
    %1119 = arith.addf %1118, %1095 : vector<8x128xf32>
    %1120 = arith.addf %1119, %1097 : vector<8x128xf32>
    %1121 = arith.addf %1120, %1099 : vector<8x128xf32>
    %1122 = arith.addf %1121, %1101 : vector<8x128xf32>
    %1123 = arith.addf %1122, %1103 : vector<8x128xf32>
    %1124 = arith.addf %1123, %1105 : vector<8x128xf32>
    %1125 = arith.addf %1124, %1107 : vector<8x128xf32>
    %1126 = arith.addf %1125, %1109 : vector<8x128xf32>
    %1127 = arith.addf %1126, %1111 : vector<8x128xf32>
    %1128 = arith.addf %1127, %1113 : vector<8x128xf32>
    %1129 = arith.addf %1128, %1115 : vector<8x128xf32>
    %1130 = vector.shape_cast %1129 : vector<8x128xf32> to vector<1x8x128xf32>
    %cst_263 = arith.constant dense<0.000000e+00> : vector<1xf32>
    %1131 = vector.multi_reduction <add>, %1130, %cst_263 [1, 2] : vector<1x8x128xf32> to vector<1xf32>
    %1132 = vector.shape_cast %1131 : vector<1xf32> to vector<1x1x1xf32>
    %1133 = vector.extract %1132[0, 0, 0] : f32 from vector<1x1x1xf32>
    %1134 = arith.mulf %1129, %1129 : vector<8x128xf32>
    %1135 = vector.shape_cast %1134 : vector<8x128xf32> to vector<1x8x128xf32>
    %cst_264 = arith.constant dense<0.000000e+00> : vector<1xf32>
    %1136 = vector.multi_reduction <add>, %1135, %cst_264 [1, 2] : vector<1x8x128xf32> to vector<1xf32>
    %1137 = vector.shape_cast %1136 : vector<1xf32> to vector<1x1x1xf32>
    %1138 = vector.extract %1137[0, 0, 0] : f32 from vector<1x1x1xf32>
    %cst_265 = arith.constant 9.765625E-4 : f32
    %1139 = arith.mulf %1133, %cst_265 : f32
    %cst_266 = arith.constant 9.765625E-4 : f32
    %1140 = arith.mulf %1138, %cst_266 : f32
    %1141 = arith.mulf %1139, %1139 : f32
    %1142 = arith.subf %1140, %1141 : f32
    %1143 = vector.broadcast %1139 : f32 to vector<8x128xf32>
    %1144 = arith.subf %1129, %1143 : vector<8x128xf32>
    %cst_267 = arith.constant 9.99999974E-6 : f32
    %1145 = arith.addf %1142, %cst_267 : f32
    %1146 = math.rsqrt %1145 : f32
    %1147 = vector.broadcast %1146 : f32 to vector<8x128xf32>
    %1148 = arith.mulf %1144, %1147 : vector<8x128xf32>
    %cst_268 = arith.constant 0.000000e+00 : f32
    %1149 = vector.broadcast %cst_268 : f32 to vector<8x128xf32>
    %1150 = arith.maximumf %1148, %1149 : vector<8x128xf32>
    %1151 = vector.broadcast %25 : f32 to vector<8x128xf32>
    %1152 = arith.mulf %1151, %1030 : vector<8x128xf32>
    %1153 = vector.broadcast %26 : f32 to vector<8x128xf32>
    %1154 = arith.mulf %1153, %1035 : vector<8x128xf32>
    %1155 = vector.broadcast %27 : f32 to vector<8x128xf32>
    %1156 = arith.mulf %1155, %967 : vector<8x128xf32>
    %1157 = vector.broadcast %28 : f32 to vector<8x128xf32>
    %1158 = arith.mulf %1157, %1040 : vector<8x128xf32>
    %1159 = vector.broadcast %29 : f32 to vector<8x128xf32>
    %1160 = arith.mulf %1159, %1045 : vector<8x128xf32>
    %1161 = vector.broadcast %30 : f32 to vector<8x128xf32>
    %1162 = arith.mulf %1161, %1050 : vector<8x128xf32>
    %1163 = vector.broadcast %31 : f32 to vector<8x128xf32>
    %1164 = arith.mulf %1163, %1055 : vector<8x128xf32>
    %1165 = vector.broadcast %32 : f32 to vector<8x128xf32>
    %1166 = arith.mulf %1165, %996 : vector<8x128xf32>
    %1167 = vector.broadcast %33 : f32 to vector<8x128xf32>
    %1168 = arith.mulf %1167, %1060 : vector<8x128xf32>
    %1169 = vector.broadcast %34 : f32 to vector<8x128xf32>
    %1170 = arith.mulf %1169, %1065 : vector<8x128xf32>
    %1171 = vector.broadcast %35 : f32 to vector<8x128xf32>
    %1172 = arith.mulf %1171, %1070 : vector<8x128xf32>
    %1173 = vector.broadcast %36 : f32 to vector<8x128xf32>
    %1174 = arith.mulf %1173, %1075 : vector<8x128xf32>
    %1175 = vector.broadcast %37 : f32 to vector<8x128xf32>
    %1176 = arith.mulf %1175, %1025 : vector<8x128xf32>
    %1177 = vector.broadcast %38 : f32 to vector<8x128xf32>
    %1178 = arith.mulf %1177, %1080 : vector<8x128xf32>
    %1179 = vector.broadcast %39 : f32 to vector<8x128xf32>
    %1180 = arith.mulf %1179, %1085 : vector<8x128xf32>
    %1181 = arith.addf %1152, %1154 : vector<8x128xf32>
    %1182 = arith.addf %1181, %1156 : vector<8x128xf32>
    %1183 = arith.addf %1182, %1158 : vector<8x128xf32>
    %1184 = arith.addf %1183, %1160 : vector<8x128xf32>
    %1185 = arith.addf %1184, %1162 : vector<8x128xf32>
    %1186 = arith.addf %1185, %1164 : vector<8x128xf32>
    %1187 = arith.addf %1186, %1166 : vector<8x128xf32>
    %1188 = arith.addf %1187, %1168 : vector<8x128xf32>
    %1189 = arith.addf %1188, %1170 : vector<8x128xf32>
    %1190 = arith.addf %1189, %1172 : vector<8x128xf32>
    %1191 = arith.addf %1190, %1174 : vector<8x128xf32>
    %1192 = arith.addf %1191, %1176 : vector<8x128xf32>
    %1193 = arith.addf %1192, %1178 : vector<8x128xf32>
    %1194 = arith.addf %1193, %1180 : vector<8x128xf32>
    %1195 = vector.shape_cast %1194 : vector<8x128xf32> to vector<1x8x128xf32>
    %cst_269 = arith.constant dense<0.000000e+00> : vector<1xf32>
    %1196 = vector.multi_reduction <add>, %1195, %cst_269 [1, 2] : vector<1x8x128xf32> to vector<1xf32>
    %1197 = vector.shape_cast %1196 : vector<1xf32> to vector<1x1x1xf32>
    %1198 = vector.extract %1197[0, 0, 0] : f32 from vector<1x1x1xf32>
    %1199 = arith.mulf %1194, %1194 : vector<8x128xf32>
    %1200 = vector.shape_cast %1199 : vector<8x128xf32> to vector<1x8x128xf32>
    %cst_270 = arith.constant dense<0.000000e+00> : vector<1xf32>
    %1201 = vector.multi_reduction <add>, %1200, %cst_270 [1, 2] : vector<1x8x128xf32> to vector<1xf32>
    %1202 = vector.shape_cast %1201 : vector<1xf32> to vector<1x1x1xf32>
    %1203 = vector.extract %1202[0, 0, 0] : f32 from vector<1x1x1xf32>
    %cst_271 = arith.constant 9.765625E-4 : f32
    %1204 = arith.mulf %1198, %cst_271 : f32
    %cst_272 = arith.constant 9.765625E-4 : f32
    %1205 = arith.mulf %1203, %cst_272 : f32
    %1206 = arith.mulf %1204, %1204 : f32
    %1207 = arith.subf %1205, %1206 : f32
    %1208 = vector.broadcast %1204 : f32 to vector<8x128xf32>
    %1209 = arith.subf %1194, %1208 : vector<8x128xf32>
    %cst_273 = arith.constant 9.99999974E-6 : f32
    %1210 = arith.addf %1207, %cst_273 : f32
    %1211 = math.rsqrt %1210 : f32
    %1212 = vector.broadcast %1211 : f32 to vector<8x128xf32>
    %1213 = arith.mulf %1209, %1212 : vector<8x128xf32>
    %cst_274 = arith.constant 0.000000e+00 : f32
    %1214 = vector.broadcast %cst_274 : f32 to vector<8x128xf32>
    %1215 = arith.maximumf %1213, %1214 : vector<8x128xf32>
    %1216 = vector.broadcast %40 : f32 to vector<8x128xf32>
    %1217 = arith.mulf %1216, %1030 : vector<8x128xf32>
    %1218 = vector.broadcast %41 : f32 to vector<8x128xf32>
    %1219 = arith.mulf %1218, %1035 : vector<8x128xf32>
    %1220 = vector.broadcast %42 : f32 to vector<8x128xf32>
    %1221 = arith.mulf %1220, %967 : vector<8x128xf32>
    %1222 = vector.broadcast %43 : f32 to vector<8x128xf32>
    %1223 = arith.mulf %1222, %1040 : vector<8x128xf32>
    %1224 = vector.broadcast %44 : f32 to vector<8x128xf32>
    %1225 = arith.mulf %1224, %1045 : vector<8x128xf32>
    %1226 = vector.broadcast %45 : f32 to vector<8x128xf32>
    %1227 = arith.mulf %1226, %1050 : vector<8x128xf32>
    %1228 = vector.broadcast %46 : f32 to vector<8x128xf32>
    %1229 = arith.mulf %1228, %1055 : vector<8x128xf32>
    %1230 = vector.broadcast %47 : f32 to vector<8x128xf32>
    %1231 = arith.mulf %1230, %996 : vector<8x128xf32>
    %1232 = vector.broadcast %48 : f32 to vector<8x128xf32>
    %1233 = arith.mulf %1232, %1060 : vector<8x128xf32>
    %1234 = vector.broadcast %49 : f32 to vector<8x128xf32>
    %1235 = arith.mulf %1234, %1065 : vector<8x128xf32>
    %1236 = vector.broadcast %50 : f32 to vector<8x128xf32>
    %1237 = arith.mulf %1236, %1070 : vector<8x128xf32>
    %1238 = vector.broadcast %51 : f32 to vector<8x128xf32>
    %1239 = arith.mulf %1238, %1075 : vector<8x128xf32>
    %1240 = vector.broadcast %52 : f32 to vector<8x128xf32>
    %1241 = arith.mulf %1240, %1025 : vector<8x128xf32>
    %1242 = vector.broadcast %53 : f32 to vector<8x128xf32>
    %1243 = arith.mulf %1242, %1080 : vector<8x128xf32>
    %1244 = vector.broadcast %54 : f32 to vector<8x128xf32>
    %1245 = arith.mulf %1244, %1085 : vector<8x128xf32>
    %1246 = arith.addf %1217, %1219 : vector<8x128xf32>
    %1247 = arith.addf %1246, %1221 : vector<8x128xf32>
    %1248 = arith.addf %1247, %1223 : vector<8x128xf32>
    %1249 = arith.addf %1248, %1225 : vector<8x128xf32>
    %1250 = arith.addf %1249, %1227 : vector<8x128xf32>
    %1251 = arith.addf %1250, %1229 : vector<8x128xf32>
    %1252 = arith.addf %1251, %1231 : vector<8x128xf32>
    %1253 = arith.addf %1252, %1233 : vector<8x128xf32>
    %1254 = arith.addf %1253, %1235 : vector<8x128xf32>
    %1255 = arith.addf %1254, %1237 : vector<8x128xf32>
    %1256 = arith.addf %1255, %1239 : vector<8x128xf32>
    %1257 = arith.addf %1256, %1241 : vector<8x128xf32>
    %1258 = arith.addf %1257, %1243 : vector<8x128xf32>
    %1259 = arith.addf %1258, %1245 : vector<8x128xf32>
    %1260 = vector.shape_cast %1259 : vector<8x128xf32> to vector<1x8x128xf32>
    %cst_275 = arith.constant dense<0.000000e+00> : vector<1xf32>
    %1261 = vector.multi_reduction <add>, %1260, %cst_275 [1, 2] : vector<1x8x128xf32> to vector<1xf32>
    %1262 = vector.shape_cast %1261 : vector<1xf32> to vector<1x1x1xf32>
    %1263 = vector.extract %1262[0, 0, 0] : f32 from vector<1x1x1xf32>
    %1264 = arith.mulf %1259, %1259 : vector<8x128xf32>
    %1265 = vector.shape_cast %1264 : vector<8x128xf32> to vector<1x8x128xf32>
    %cst_276 = arith.constant dense<0.000000e+00> : vector<1xf32>
    %1266 = vector.multi_reduction <add>, %1265, %cst_276 [1, 2] : vector<1x8x128xf32> to vector<1xf32>
    %1267 = vector.shape_cast %1266 : vector<1xf32> to vector<1x1x1xf32>
    %1268 = vector.extract %1267[0, 0, 0] : f32 from vector<1x1x1xf32>
    %cst_277 = arith.constant 9.765625E-4 : f32
    %1269 = arith.mulf %1263, %cst_277 : f32
    %cst_278 = arith.constant 9.765625E-4 : f32
    %1270 = arith.mulf %1268, %cst_278 : f32
    %1271 = arith.mulf %1269, %1269 : f32
    %1272 = arith.subf %1270, %1271 : f32
    %1273 = vector.broadcast %1269 : f32 to vector<8x128xf32>
    %1274 = arith.subf %1259, %1273 : vector<8x128xf32>
    %cst_279 = arith.constant 9.99999974E-6 : f32
    %1275 = arith.addf %1272, %cst_279 : f32
    %1276 = math.rsqrt %1275 : f32
    %1277 = vector.broadcast %1276 : f32 to vector<8x128xf32>
    %1278 = arith.mulf %1274, %1277 : vector<8x128xf32>
    %cst_280 = arith.constant 0.000000e+00 : f32
    %1279 = vector.broadcast %cst_280 : f32 to vector<8x128xf32>
    %1280 = arith.maximumf %1278, %1279 : vector<8x128xf32>
    %c2_i32_281 = arith.constant 2 : i32
    %1281 = tpu.dynamic_rotate %1150 by %c2_i32_281 dim 1 : vector<8x128xf32>, i32 -> vector<8x128xf32>
    %c2_i32_282 = arith.constant 2 : i32
    %1282 = vector.broadcast %c2_i32_282 : i32 to vector<8x128xi32>
    %1283 = arith.cmpi sge, %0, %1282 : vector<8x128xi32>
    %cst_283 = arith.constant 0.000000e+00 : f32
    %1284 = vector.broadcast %cst_283 : f32 to vector<8x128xf32>
    %1285 = arith.select %1283, %1281, %1284 : vector<8x128xi1>, vector<8x128xf32>
    %c126_i32_284 = arith.constant 126 : i32
    %1286 = tpu.dynamic_rotate %1150 by %c126_i32_284 dim 1 : vector<8x128xf32>, i32 -> vector<8x128xf32>
    %c126_i32_285 = arith.constant 126 : i32
    %1287 = vector.broadcast %c126_i32_285 : i32 to vector<8x128xi32>
    %1288 = arith.cmpi slt, %0, %1287 : vector<8x128xi32>
    %cst_286 = arith.constant 0.000000e+00 : f32
    %1289 = vector.broadcast %cst_286 : f32 to vector<8x128xf32>
    %1290 = arith.select %1288, %1286, %1289 : vector<8x128xi1>, vector<8x128xf32>
    %c2_i32_287 = arith.constant 2 : i32
    %1291 = tpu.dynamic_rotate %1215 by %c2_i32_287 dim 1 : vector<8x128xf32>, i32 -> vector<8x128xf32>
    %c2_i32_288 = arith.constant 2 : i32
    %1292 = vector.broadcast %c2_i32_288 : i32 to vector<8x128xi32>
    %1293 = arith.cmpi sge, %0, %1292 : vector<8x128xi32>
    %cst_289 = arith.constant 0.000000e+00 : f32
    %1294 = vector.broadcast %cst_289 : f32 to vector<8x128xf32>
    %1295 = arith.select %1293, %1291, %1294 : vector<8x128xi1>, vector<8x128xf32>
    %c126_i32_290 = arith.constant 126 : i32
    %1296 = tpu.dynamic_rotate %1215 by %c126_i32_290 dim 1 : vector<8x128xf32>, i32 -> vector<8x128xf32>
    %c126_i32_291 = arith.constant 126 : i32
    %1297 = vector.broadcast %c126_i32_291 : i32 to vector<8x128xi32>
    %1298 = arith.cmpi slt, %0, %1297 : vector<8x128xi32>
    %cst_292 = arith.constant 0.000000e+00 : f32
    %1299 = vector.broadcast %cst_292 : f32 to vector<8x128xf32>
    %1300 = arith.select %1298, %1296, %1299 : vector<8x128xi1>, vector<8x128xf32>
    %c2_i32_293 = arith.constant 2 : i32
    %1301 = tpu.dynamic_rotate %1280 by %c2_i32_293 dim 1 : vector<8x128xf32>, i32 -> vector<8x128xf32>
    %c2_i32_294 = arith.constant 2 : i32
    %1302 = vector.broadcast %c2_i32_294 : i32 to vector<8x128xi32>
    %1303 = arith.cmpi sge, %0, %1302 : vector<8x128xi32>
    %cst_295 = arith.constant 0.000000e+00 : f32
    %1304 = vector.broadcast %cst_295 : f32 to vector<8x128xf32>
    %1305 = arith.select %1303, %1301, %1304 : vector<8x128xi1>, vector<8x128xf32>
    %c126_i32_296 = arith.constant 126 : i32
    %1306 = tpu.dynamic_rotate %1280 by %c126_i32_296 dim 1 : vector<8x128xf32>, i32 -> vector<8x128xf32>
    %c126_i32_297 = arith.constant 126 : i32
    %1307 = vector.broadcast %c126_i32_297 : i32 to vector<8x128xi32>
    %1308 = arith.cmpi slt, %0, %1307 : vector<8x128xi32>
    %cst_298 = arith.constant 0.000000e+00 : f32
    %1309 = vector.broadcast %cst_298 : f32 to vector<8x128xf32>
    %1310 = arith.select %1308, %1306, %1309 : vector<8x128xi1>, vector<8x128xf32>
    %1311 = vector.broadcast %55 : f32 to vector<8x128xf32>
    %1312 = arith.mulf %1311, %1285 : vector<8x128xf32>
    %1313 = vector.broadcast %56 : f32 to vector<8x128xf32>
    %1314 = arith.mulf %1313, %1150 : vector<8x128xf32>
    %1315 = vector.broadcast %57 : f32 to vector<8x128xf32>
    %1316 = arith.mulf %1315, %1290 : vector<8x128xf32>
    %1317 = vector.broadcast %58 : f32 to vector<8x128xf32>
    %1318 = arith.mulf %1317, %1295 : vector<8x128xf32>
    %1319 = vector.broadcast %59 : f32 to vector<8x128xf32>
    %1320 = arith.mulf %1319, %1215 : vector<8x128xf32>
    %1321 = vector.broadcast %60 : f32 to vector<8x128xf32>
    %1322 = arith.mulf %1321, %1300 : vector<8x128xf32>
    %1323 = vector.broadcast %61 : f32 to vector<8x128xf32>
    %1324 = arith.mulf %1323, %1305 : vector<8x128xf32>
    %1325 = vector.broadcast %62 : f32 to vector<8x128xf32>
    %1326 = arith.mulf %1325, %1280 : vector<8x128xf32>
    %1327 = vector.broadcast %63 : f32 to vector<8x128xf32>
    %1328 = arith.mulf %1327, %1310 : vector<8x128xf32>
    %1329 = arith.addf %1312, %1314 : vector<8x128xf32>
    %1330 = arith.addf %1329, %1316 : vector<8x128xf32>
    %1331 = arith.addf %1330, %1318 : vector<8x128xf32>
    %1332 = arith.addf %1331, %1320 : vector<8x128xf32>
    %1333 = arith.addf %1332, %1322 : vector<8x128xf32>
    %1334 = arith.addf %1333, %1324 : vector<8x128xf32>
    %1335 = arith.addf %1334, %1326 : vector<8x128xf32>
    %1336 = arith.addf %1335, %1328 : vector<8x128xf32>
    %1337 = vector.shape_cast %1336 : vector<8x128xf32> to vector<1x8x128xf32>
    %cst_299 = arith.constant dense<0.000000e+00> : vector<1xf32>
    %1338 = vector.multi_reduction <add>, %1337, %cst_299 [1, 2] : vector<1x8x128xf32> to vector<1xf32>
    %1339 = vector.shape_cast %1338 : vector<1xf32> to vector<1x1x1xf32>
    %1340 = vector.extract %1339[0, 0, 0] : f32 from vector<1x1x1xf32>
    %1341 = arith.mulf %1336, %1336 : vector<8x128xf32>
    %1342 = vector.shape_cast %1341 : vector<8x128xf32> to vector<1x8x128xf32>
    %cst_300 = arith.constant dense<0.000000e+00> : vector<1xf32>
    %1343 = vector.multi_reduction <add>, %1342, %cst_300 [1, 2] : vector<1x8x128xf32> to vector<1xf32>
    %1344 = vector.shape_cast %1343 : vector<1xf32> to vector<1x1x1xf32>
    %1345 = vector.extract %1344[0, 0, 0] : f32 from vector<1x1x1xf32>
    %cst_301 = arith.constant 9.765625E-4 : f32
    %1346 = arith.mulf %1340, %cst_301 : f32
    %cst_302 = arith.constant 9.765625E-4 : f32
    %1347 = arith.mulf %1345, %cst_302 : f32
    %1348 = arith.mulf %1346, %1346 : f32
    %1349 = arith.subf %1347, %1348 : f32
    %1350 = vector.broadcast %1346 : f32 to vector<8x128xf32>
    %1351 = arith.subf %1336, %1350 : vector<8x128xf32>
    %cst_303 = arith.constant 9.99999974E-6 : f32
    %1352 = arith.addf %1349, %cst_303 : f32
    %1353 = math.rsqrt %1352 : f32
    %1354 = vector.broadcast %1353 : f32 to vector<8x128xf32>
    %1355 = arith.mulf %1351, %1354 : vector<8x128xf32>
    %cst_304 = arith.constant 0.000000e+00 : f32
    %1356 = vector.broadcast %cst_304 : f32 to vector<8x128xf32>
    %1357 = arith.maximumf %1355, %1356 : vector<8x128xf32>
    %1358 = arith.addf %1357, %928 : vector<8x128xf32>
    %cst_305 = arith.constant 0.000000e+00 : f32
    %1359 = vector.broadcast %cst_305 : f32 to vector<8x128xf32>
    %1360 = arith.maximumf %1358, %1359 : vector<8x128xf32>
    %c1_i32_306 = arith.constant 1 : i32
    %1361 = tpu.dynamic_rotate %1360 by %c1_i32_306 dim 1 : vector<8x128xf32>, i32 -> vector<8x128xf32>
    %c1_i32_307 = arith.constant 1 : i32
    %1362 = vector.broadcast %c1_i32_307 : i32 to vector<8x128xi32>
    %1363 = arith.cmpi sge, %0, %1362 : vector<8x128xi32>
    %cst_308 = arith.constant 0.000000e+00 : f32
    %1364 = vector.broadcast %cst_308 : f32 to vector<8x128xf32>
    %1365 = arith.select %1363, %1361, %1364 : vector<8x128xi1>, vector<8x128xf32>
    %c127_i32_309 = arith.constant 127 : i32
    %1366 = tpu.dynamic_rotate %1360 by %c127_i32_309 dim 1 : vector<8x128xf32>, i32 -> vector<8x128xf32>
    %c127_i32_310 = arith.constant 127 : i32
    %1367 = vector.broadcast %c127_i32_310 : i32 to vector<8x128xi32>
    %1368 = arith.cmpi slt, %0, %1367 : vector<8x128xi32>
    %cst_311 = arith.constant 0.000000e+00 : f32
    %1369 = vector.broadcast %cst_311 : f32 to vector<8x128xf32>
    %1370 = arith.select %1368, %1366, %1369 : vector<8x128xi1>, vector<8x128xf32>
    %1371 = vector.broadcast %1 : f32 to vector<8x128xf32>
    %1372 = arith.mulf %1371, %1365 : vector<8x128xf32>
    %1373 = vector.broadcast %2 : f32 to vector<8x128xf32>
    %1374 = arith.mulf %1373, %1360 : vector<8x128xf32>
    %1375 = vector.broadcast %3 : f32 to vector<8x128xf32>
    %1376 = arith.mulf %1375, %1370 : vector<8x128xf32>
    %1377 = arith.addf %1372, %1374 : vector<8x128xf32>
    %1378 = arith.addf %1377, %1376 : vector<8x128xf32>
    %1379 = vector.shape_cast %1378 : vector<8x128xf32> to vector<1x8x128xf32>
    %cst_312 = arith.constant dense<0.000000e+00> : vector<1xf32>
    %1380 = vector.multi_reduction <add>, %1379, %cst_312 [1, 2] : vector<1x8x128xf32> to vector<1xf32>
    %1381 = vector.shape_cast %1380 : vector<1xf32> to vector<1x1x1xf32>
    %1382 = vector.extract %1381[0, 0, 0] : f32 from vector<1x1x1xf32>
    %1383 = arith.mulf %1378, %1378 : vector<8x128xf32>
    %1384 = vector.shape_cast %1383 : vector<8x128xf32> to vector<1x8x128xf32>
    %cst_313 = arith.constant dense<0.000000e+00> : vector<1xf32>
    %1385 = vector.multi_reduction <add>, %1384, %cst_313 [1, 2] : vector<1x8x128xf32> to vector<1xf32>
    %1386 = vector.shape_cast %1385 : vector<1xf32> to vector<1x1x1xf32>
    %1387 = vector.extract %1386[0, 0, 0] : f32 from vector<1x1x1xf32>
    %cst_314 = arith.constant 9.765625E-4 : f32
    %1388 = arith.mulf %1382, %cst_314 : f32
    %cst_315 = arith.constant 9.765625E-4 : f32
    %1389 = arith.mulf %1387, %cst_315 : f32
    %1390 = arith.mulf %1388, %1388 : f32
    %1391 = arith.subf %1389, %1390 : f32
    %1392 = vector.broadcast %1388 : f32 to vector<8x128xf32>
    %1393 = arith.subf %1378, %1392 : vector<8x128xf32>
    %cst_316 = arith.constant 9.99999974E-6 : f32
    %1394 = arith.addf %1391, %cst_316 : f32
    %1395 = math.rsqrt %1394 : f32
    %1396 = vector.broadcast %1395 : f32 to vector<8x128xf32>
    %1397 = arith.mulf %1393, %1396 : vector<8x128xf32>
    %cst_317 = arith.constant 0.000000e+00 : f32
    %1398 = vector.broadcast %cst_317 : f32 to vector<8x128xf32>
    %1399 = arith.maximumf %1397, %1398 : vector<8x128xf32>
    %1400 = vector.broadcast %4 : f32 to vector<8x128xf32>
    %1401 = arith.mulf %1400, %1365 : vector<8x128xf32>
    %1402 = vector.broadcast %5 : f32 to vector<8x128xf32>
    %1403 = arith.mulf %1402, %1360 : vector<8x128xf32>
    %1404 = vector.broadcast %6 : f32 to vector<8x128xf32>
    %1405 = arith.mulf %1404, %1370 : vector<8x128xf32>
    %1406 = arith.addf %1401, %1403 : vector<8x128xf32>
    %1407 = arith.addf %1406, %1405 : vector<8x128xf32>
    %1408 = vector.shape_cast %1407 : vector<8x128xf32> to vector<1x8x128xf32>
    %cst_318 = arith.constant dense<0.000000e+00> : vector<1xf32>
    %1409 = vector.multi_reduction <add>, %1408, %cst_318 [1, 2] : vector<1x8x128xf32> to vector<1xf32>
    %1410 = vector.shape_cast %1409 : vector<1xf32> to vector<1x1x1xf32>
    %1411 = vector.extract %1410[0, 0, 0] : f32 from vector<1x1x1xf32>
    %1412 = arith.mulf %1407, %1407 : vector<8x128xf32>
    %1413 = vector.shape_cast %1412 : vector<8x128xf32> to vector<1x8x128xf32>
    %cst_319 = arith.constant dense<0.000000e+00> : vector<1xf32>
    %1414 = vector.multi_reduction <add>, %1413, %cst_319 [1, 2] : vector<1x8x128xf32> to vector<1xf32>
    %1415 = vector.shape_cast %1414 : vector<1xf32> to vector<1x1x1xf32>
    %1416 = vector.extract %1415[0, 0, 0] : f32 from vector<1x1x1xf32>
    %cst_320 = arith.constant 9.765625E-4 : f32
    %1417 = arith.mulf %1411, %cst_320 : f32
    %cst_321 = arith.constant 9.765625E-4 : f32
    %1418 = arith.mulf %1416, %cst_321 : f32
    %1419 = arith.mulf %1417, %1417 : f32
    %1420 = arith.subf %1418, %1419 : f32
    %1421 = vector.broadcast %1417 : f32 to vector<8x128xf32>
    %1422 = arith.subf %1407, %1421 : vector<8x128xf32>
    %cst_322 = arith.constant 9.99999974E-6 : f32
    %1423 = arith.addf %1420, %cst_322 : f32
    %1424 = math.rsqrt %1423 : f32
    %1425 = vector.broadcast %1424 : f32 to vector<8x128xf32>
    %1426 = arith.mulf %1422, %1425 : vector<8x128xf32>
    %cst_323 = arith.constant 0.000000e+00 : f32
    %1427 = vector.broadcast %cst_323 : f32 to vector<8x128xf32>
    %1428 = arith.maximumf %1426, %1427 : vector<8x128xf32>
    %1429 = vector.broadcast %7 : f32 to vector<8x128xf32>
    %1430 = arith.mulf %1429, %1365 : vector<8x128xf32>
    %1431 = vector.broadcast %8 : f32 to vector<8x128xf32>
    %1432 = arith.mulf %1431, %1360 : vector<8x128xf32>
    %1433 = vector.broadcast %9 : f32 to vector<8x128xf32>
    %1434 = arith.mulf %1433, %1370 : vector<8x128xf32>
    %1435 = arith.addf %1430, %1432 : vector<8x128xf32>
    %1436 = arith.addf %1435, %1434 : vector<8x128xf32>
    %1437 = vector.shape_cast %1436 : vector<8x128xf32> to vector<1x8x128xf32>
    %cst_324 = arith.constant dense<0.000000e+00> : vector<1xf32>
    %1438 = vector.multi_reduction <add>, %1437, %cst_324 [1, 2] : vector<1x8x128xf32> to vector<1xf32>
    %1439 = vector.shape_cast %1438 : vector<1xf32> to vector<1x1x1xf32>
    %1440 = vector.extract %1439[0, 0, 0] : f32 from vector<1x1x1xf32>
    %1441 = arith.mulf %1436, %1436 : vector<8x128xf32>
    %1442 = vector.shape_cast %1441 : vector<8x128xf32> to vector<1x8x128xf32>
    %cst_325 = arith.constant dense<0.000000e+00> : vector<1xf32>
    %1443 = vector.multi_reduction <add>, %1442, %cst_325 [1, 2] : vector<1x8x128xf32> to vector<1xf32>
    %1444 = vector.shape_cast %1443 : vector<1xf32> to vector<1x1x1xf32>
    %1445 = vector.extract %1444[0, 0, 0] : f32 from vector<1x1x1xf32>
    %cst_326 = arith.constant 9.765625E-4 : f32
    %1446 = arith.mulf %1440, %cst_326 : f32
    %cst_327 = arith.constant 9.765625E-4 : f32
    %1447 = arith.mulf %1445, %cst_327 : f32
    %1448 = arith.mulf %1446, %1446 : f32
    %1449 = arith.subf %1447, %1448 : f32
    %1450 = vector.broadcast %1446 : f32 to vector<8x128xf32>
    %1451 = arith.subf %1436, %1450 : vector<8x128xf32>
    %cst_328 = arith.constant 9.99999974E-6 : f32
    %1452 = arith.addf %1449, %cst_328 : f32
    %1453 = math.rsqrt %1452 : f32
    %1454 = vector.broadcast %1453 : f32 to vector<8x128xf32>
    %1455 = arith.mulf %1451, %1454 : vector<8x128xf32>
    %cst_329 = arith.constant 0.000000e+00 : f32
    %1456 = vector.broadcast %cst_329 : f32 to vector<8x128xf32>
    %1457 = arith.maximumf %1455, %1456 : vector<8x128xf32>
    %c2_i32_330 = arith.constant 2 : i32
    %1458 = tpu.dynamic_rotate %1399 by %c2_i32_330 dim 1 : vector<8x128xf32>, i32 -> vector<8x128xf32>
    %c2_i32_331 = arith.constant 2 : i32
    %1459 = vector.broadcast %c2_i32_331 : i32 to vector<8x128xi32>
    %1460 = arith.cmpi sge, %0, %1459 : vector<8x128xi32>
    %cst_332 = arith.constant 0.000000e+00 : f32
    %1461 = vector.broadcast %cst_332 : f32 to vector<8x128xf32>
    %1462 = arith.select %1460, %1458, %1461 : vector<8x128xi1>, vector<8x128xf32>
    %c1_i32_333 = arith.constant 1 : i32
    %1463 = tpu.dynamic_rotate %1399 by %c1_i32_333 dim 1 : vector<8x128xf32>, i32 -> vector<8x128xf32>
    %c1_i32_334 = arith.constant 1 : i32
    %1464 = vector.broadcast %c1_i32_334 : i32 to vector<8x128xi32>
    %1465 = arith.cmpi sge, %0, %1464 : vector<8x128xi32>
    %cst_335 = arith.constant 0.000000e+00 : f32
    %1466 = vector.broadcast %cst_335 : f32 to vector<8x128xf32>
    %1467 = arith.select %1465, %1463, %1466 : vector<8x128xi1>, vector<8x128xf32>
    %c127_i32_336 = arith.constant 127 : i32
    %1468 = tpu.dynamic_rotate %1399 by %c127_i32_336 dim 1 : vector<8x128xf32>, i32 -> vector<8x128xf32>
    %c127_i32_337 = arith.constant 127 : i32
    %1469 = vector.broadcast %c127_i32_337 : i32 to vector<8x128xi32>
    %1470 = arith.cmpi slt, %0, %1469 : vector<8x128xi32>
    %cst_338 = arith.constant 0.000000e+00 : f32
    %1471 = vector.broadcast %cst_338 : f32 to vector<8x128xf32>
    %1472 = arith.select %1470, %1468, %1471 : vector<8x128xi1>, vector<8x128xf32>
    %c126_i32_339 = arith.constant 126 : i32
    %1473 = tpu.dynamic_rotate %1399 by %c126_i32_339 dim 1 : vector<8x128xf32>, i32 -> vector<8x128xf32>
    %c126_i32_340 = arith.constant 126 : i32
    %1474 = vector.broadcast %c126_i32_340 : i32 to vector<8x128xi32>
    %1475 = arith.cmpi slt, %0, %1474 : vector<8x128xi32>
    %cst_341 = arith.constant 0.000000e+00 : f32
    %1476 = vector.broadcast %cst_341 : f32 to vector<8x128xf32>
    %1477 = arith.select %1475, %1473, %1476 : vector<8x128xi1>, vector<8x128xf32>
    %c2_i32_342 = arith.constant 2 : i32
    %1478 = tpu.dynamic_rotate %1428 by %c2_i32_342 dim 1 : vector<8x128xf32>, i32 -> vector<8x128xf32>
    %c2_i32_343 = arith.constant 2 : i32
    %1479 = vector.broadcast %c2_i32_343 : i32 to vector<8x128xi32>
    %1480 = arith.cmpi sge, %0, %1479 : vector<8x128xi32>
    %cst_344 = arith.constant 0.000000e+00 : f32
    %1481 = vector.broadcast %cst_344 : f32 to vector<8x128xf32>
    %1482 = arith.select %1480, %1478, %1481 : vector<8x128xi1>, vector<8x128xf32>
    %c1_i32_345 = arith.constant 1 : i32
    %1483 = tpu.dynamic_rotate %1428 by %c1_i32_345 dim 1 : vector<8x128xf32>, i32 -> vector<8x128xf32>
    %c1_i32_346 = arith.constant 1 : i32
    %1484 = vector.broadcast %c1_i32_346 : i32 to vector<8x128xi32>
    %1485 = arith.cmpi sge, %0, %1484 : vector<8x128xi32>
    %cst_347 = arith.constant 0.000000e+00 : f32
    %1486 = vector.broadcast %cst_347 : f32 to vector<8x128xf32>
    %1487 = arith.select %1485, %1483, %1486 : vector<8x128xi1>, vector<8x128xf32>
    %c127_i32_348 = arith.constant 127 : i32
    %1488 = tpu.dynamic_rotate %1428 by %c127_i32_348 dim 1 : vector<8x128xf32>, i32 -> vector<8x128xf32>
    %c127_i32_349 = arith.constant 127 : i32
    %1489 = vector.broadcast %c127_i32_349 : i32 to vector<8x128xi32>
    %1490 = arith.cmpi slt, %0, %1489 : vector<8x128xi32>
    %cst_350 = arith.constant 0.000000e+00 : f32
    %1491 = vector.broadcast %cst_350 : f32 to vector<8x128xf32>
    %1492 = arith.select %1490, %1488, %1491 : vector<8x128xi1>, vector<8x128xf32>
    %c126_i32_351 = arith.constant 126 : i32
    %1493 = tpu.dynamic_rotate %1428 by %c126_i32_351 dim 1 : vector<8x128xf32>, i32 -> vector<8x128xf32>
    %c126_i32_352 = arith.constant 126 : i32
    %1494 = vector.broadcast %c126_i32_352 : i32 to vector<8x128xi32>
    %1495 = arith.cmpi slt, %0, %1494 : vector<8x128xi32>
    %cst_353 = arith.constant 0.000000e+00 : f32
    %1496 = vector.broadcast %cst_353 : f32 to vector<8x128xf32>
    %1497 = arith.select %1495, %1493, %1496 : vector<8x128xi1>, vector<8x128xf32>
    %c2_i32_354 = arith.constant 2 : i32
    %1498 = tpu.dynamic_rotate %1457 by %c2_i32_354 dim 1 : vector<8x128xf32>, i32 -> vector<8x128xf32>
    %c2_i32_355 = arith.constant 2 : i32
    %1499 = vector.broadcast %c2_i32_355 : i32 to vector<8x128xi32>
    %1500 = arith.cmpi sge, %0, %1499 : vector<8x128xi32>
    %cst_356 = arith.constant 0.000000e+00 : f32
    %1501 = vector.broadcast %cst_356 : f32 to vector<8x128xf32>
    %1502 = arith.select %1500, %1498, %1501 : vector<8x128xi1>, vector<8x128xf32>
    %c1_i32_357 = arith.constant 1 : i32
    %1503 = tpu.dynamic_rotate %1457 by %c1_i32_357 dim 1 : vector<8x128xf32>, i32 -> vector<8x128xf32>
    %c1_i32_358 = arith.constant 1 : i32
    %1504 = vector.broadcast %c1_i32_358 : i32 to vector<8x128xi32>
    %1505 = arith.cmpi sge, %0, %1504 : vector<8x128xi32>
    %cst_359 = arith.constant 0.000000e+00 : f32
    %1506 = vector.broadcast %cst_359 : f32 to vector<8x128xf32>
    %1507 = arith.select %1505, %1503, %1506 : vector<8x128xi1>, vector<8x128xf32>
    %c127_i32_360 = arith.constant 127 : i32
    %1508 = tpu.dynamic_rotate %1457 by %c127_i32_360 dim 1 : vector<8x128xf32>, i32 -> vector<8x128xf32>
    %c127_i32_361 = arith.constant 127 : i32
    %1509 = vector.broadcast %c127_i32_361 : i32 to vector<8x128xi32>
    %1510 = arith.cmpi slt, %0, %1509 : vector<8x128xi32>
    %cst_362 = arith.constant 0.000000e+00 : f32
    %1511 = vector.broadcast %cst_362 : f32 to vector<8x128xf32>
    %1512 = arith.select %1510, %1508, %1511 : vector<8x128xi1>, vector<8x128xf32>
    %c126_i32_363 = arith.constant 126 : i32
    %1513 = tpu.dynamic_rotate %1457 by %c126_i32_363 dim 1 : vector<8x128xf32>, i32 -> vector<8x128xf32>
    %c126_i32_364 = arith.constant 126 : i32
    %1514 = vector.broadcast %c126_i32_364 : i32 to vector<8x128xi32>
    %1515 = arith.cmpi slt, %0, %1514 : vector<8x128xi32>
    %cst_365 = arith.constant 0.000000e+00 : f32
    %1516 = vector.broadcast %cst_365 : f32 to vector<8x128xf32>
    %1517 = arith.select %1515, %1513, %1516 : vector<8x128xi1>, vector<8x128xf32>
    %1518 = vector.broadcast %10 : f32 to vector<8x128xf32>
    %1519 = arith.mulf %1518, %1462 : vector<8x128xf32>
    %1520 = vector.broadcast %11 : f32 to vector<8x128xf32>
    %1521 = arith.mulf %1520, %1467 : vector<8x128xf32>
    %1522 = vector.broadcast %12 : f32 to vector<8x128xf32>
    %1523 = arith.mulf %1522, %1399 : vector<8x128xf32>
    %1524 = vector.broadcast %13 : f32 to vector<8x128xf32>
    %1525 = arith.mulf %1524, %1472 : vector<8x128xf32>
    %1526 = vector.broadcast %14 : f32 to vector<8x128xf32>
    %1527 = arith.mulf %1526, %1477 : vector<8x128xf32>
    %1528 = vector.broadcast %15 : f32 to vector<8x128xf32>
    %1529 = arith.mulf %1528, %1482 : vector<8x128xf32>
    %1530 = vector.broadcast %16 : f32 to vector<8x128xf32>
    %1531 = arith.mulf %1530, %1487 : vector<8x128xf32>
    %1532 = vector.broadcast %17 : f32 to vector<8x128xf32>
    %1533 = arith.mulf %1532, %1428 : vector<8x128xf32>
    %1534 = vector.broadcast %18 : f32 to vector<8x128xf32>
    %1535 = arith.mulf %1534, %1492 : vector<8x128xf32>
    %1536 = vector.broadcast %19 : f32 to vector<8x128xf32>
    %1537 = arith.mulf %1536, %1497 : vector<8x128xf32>
    %1538 = vector.broadcast %20 : f32 to vector<8x128xf32>
    %1539 = arith.mulf %1538, %1502 : vector<8x128xf32>
    %1540 = vector.broadcast %21 : f32 to vector<8x128xf32>
    %1541 = arith.mulf %1540, %1507 : vector<8x128xf32>
    %1542 = vector.broadcast %22 : f32 to vector<8x128xf32>
    %1543 = arith.mulf %1542, %1457 : vector<8x128xf32>
    %1544 = vector.broadcast %23 : f32 to vector<8x128xf32>
    %1545 = arith.mulf %1544, %1512 : vector<8x128xf32>
    %1546 = vector.broadcast %24 : f32 to vector<8x128xf32>
    %1547 = arith.mulf %1546, %1517 : vector<8x128xf32>
    %1548 = arith.addf %1519, %1521 : vector<8x128xf32>
    %1549 = arith.addf %1548, %1523 : vector<8x128xf32>
    %1550 = arith.addf %1549, %1525 : vector<8x128xf32>
    %1551 = arith.addf %1550, %1527 : vector<8x128xf32>
    %1552 = arith.addf %1551, %1529 : vector<8x128xf32>
    %1553 = arith.addf %1552, %1531 : vector<8x128xf32>
    %1554 = arith.addf %1553, %1533 : vector<8x128xf32>
    %1555 = arith.addf %1554, %1535 : vector<8x128xf32>
    %1556 = arith.addf %1555, %1537 : vector<8x128xf32>
    %1557 = arith.addf %1556, %1539 : vector<8x128xf32>
    %1558 = arith.addf %1557, %1541 : vector<8x128xf32>
    %1559 = arith.addf %1558, %1543 : vector<8x128xf32>
    %1560 = arith.addf %1559, %1545 : vector<8x128xf32>
    %1561 = arith.addf %1560, %1547 : vector<8x128xf32>
    %1562 = vector.shape_cast %1561 : vector<8x128xf32> to vector<1x8x128xf32>
    %cst_366 = arith.constant dense<0.000000e+00> : vector<1xf32>
    %1563 = vector.multi_reduction <add>, %1562, %cst_366 [1, 2] : vector<1x8x128xf32> to vector<1xf32>
    %1564 = vector.shape_cast %1563 : vector<1xf32> to vector<1x1x1xf32>
    %1565 = vector.extract %1564[0, 0, 0] : f32 from vector<1x1x1xf32>
    %1566 = arith.mulf %1561, %1561 : vector<8x128xf32>
    %1567 = vector.shape_cast %1566 : vector<8x128xf32> to vector<1x8x128xf32>
    %cst_367 = arith.constant dense<0.000000e+00> : vector<1xf32>
    %1568 = vector.multi_reduction <add>, %1567, %cst_367 [1, 2] : vector<1x8x128xf32> to vector<1xf32>
    %1569 = vector.shape_cast %1568 : vector<1xf32> to vector<1x1x1xf32>
    %1570 = vector.extract %1569[0, 0, 0] : f32 from vector<1x1x1xf32>
    %cst_368 = arith.constant 9.765625E-4 : f32
    %1571 = arith.mulf %1565, %cst_368 : f32
    %cst_369 = arith.constant 9.765625E-4 : f32
    %1572 = arith.mulf %1570, %cst_369 : f32
    %1573 = arith.mulf %1571, %1571 : f32
    %1574 = arith.subf %1572, %1573 : f32
    %1575 = vector.broadcast %1571 : f32 to vector<8x128xf32>
    %1576 = arith.subf %1561, %1575 : vector<8x128xf32>
    %cst_370 = arith.constant 9.99999974E-6 : f32
    %1577 = arith.addf %1574, %cst_370 : f32
    %1578 = math.rsqrt %1577 : f32
    %1579 = vector.broadcast %1578 : f32 to vector<8x128xf32>
    %1580 = arith.mulf %1576, %1579 : vector<8x128xf32>
    %cst_371 = arith.constant 0.000000e+00 : f32
    %1581 = vector.broadcast %cst_371 : f32 to vector<8x128xf32>
    %1582 = arith.maximumf %1580, %1581 : vector<8x128xf32>
    %1583 = vector.broadcast %25 : f32 to vector<8x128xf32>
    %1584 = arith.mulf %1583, %1462 : vector<8x128xf32>
    %1585 = vector.broadcast %26 : f32 to vector<8x128xf32>
    %1586 = arith.mulf %1585, %1467 : vector<8x128xf32>
    %1587 = vector.broadcast %27 : f32 to vector<8x128xf32>
    %1588 = arith.mulf %1587, %1399 : vector<8x128xf32>
    %1589 = vector.broadcast %28 : f32 to vector<8x128xf32>
    %1590 = arith.mulf %1589, %1472 : vector<8x128xf32>
    %1591 = vector.broadcast %29 : f32 to vector<8x128xf32>
    %1592 = arith.mulf %1591, %1477 : vector<8x128xf32>
    %1593 = vector.broadcast %30 : f32 to vector<8x128xf32>
    %1594 = arith.mulf %1593, %1482 : vector<8x128xf32>
    %1595 = vector.broadcast %31 : f32 to vector<8x128xf32>
    %1596 = arith.mulf %1595, %1487 : vector<8x128xf32>
    %1597 = vector.broadcast %32 : f32 to vector<8x128xf32>
    %1598 = arith.mulf %1597, %1428 : vector<8x128xf32>
    %1599 = vector.broadcast %33 : f32 to vector<8x128xf32>
    %1600 = arith.mulf %1599, %1492 : vector<8x128xf32>
    %1601 = vector.broadcast %34 : f32 to vector<8x128xf32>
    %1602 = arith.mulf %1601, %1497 : vector<8x128xf32>
    %1603 = vector.broadcast %35 : f32 to vector<8x128xf32>
    %1604 = arith.mulf %1603, %1502 : vector<8x128xf32>
    %1605 = vector.broadcast %36 : f32 to vector<8x128xf32>
    %1606 = arith.mulf %1605, %1507 : vector<8x128xf32>
    %1607 = vector.broadcast %37 : f32 to vector<8x128xf32>
    %1608 = arith.mulf %1607, %1457 : vector<8x128xf32>
    %1609 = vector.broadcast %38 : f32 to vector<8x128xf32>
    %1610 = arith.mulf %1609, %1512 : vector<8x128xf32>
    %1611 = vector.broadcast %39 : f32 to vector<8x128xf32>
    %1612 = arith.mulf %1611, %1517 : vector<8x128xf32>
    %1613 = arith.addf %1584, %1586 : vector<8x128xf32>
    %1614 = arith.addf %1613, %1588 : vector<8x128xf32>
    %1615 = arith.addf %1614, %1590 : vector<8x128xf32>
    %1616 = arith.addf %1615, %1592 : vector<8x128xf32>
    %1617 = arith.addf %1616, %1594 : vector<8x128xf32>
    %1618 = arith.addf %1617, %1596 : vector<8x128xf32>
    %1619 = arith.addf %1618, %1598 : vector<8x128xf32>
    %1620 = arith.addf %1619, %1600 : vector<8x128xf32>
    %1621 = arith.addf %1620, %1602 : vector<8x128xf32>
    %1622 = arith.addf %1621, %1604 : vector<8x128xf32>
    %1623 = arith.addf %1622, %1606 : vector<8x128xf32>
    %1624 = arith.addf %1623, %1608 : vector<8x128xf32>
    %1625 = arith.addf %1624, %1610 : vector<8x128xf32>
    %1626 = arith.addf %1625, %1612 : vector<8x128xf32>
    %1627 = vector.shape_cast %1626 : vector<8x128xf32> to vector<1x8x128xf32>
    %cst_372 = arith.constant dense<0.000000e+00> : vector<1xf32>
    %1628 = vector.multi_reduction <add>, %1627, %cst_372 [1, 2] : vector<1x8x128xf32> to vector<1xf32>
    %1629 = vector.shape_cast %1628 : vector<1xf32> to vector<1x1x1xf32>
    %1630 = vector.extract %1629[0, 0, 0] : f32 from vector<1x1x1xf32>
    %1631 = arith.mulf %1626, %1626 : vector<8x128xf32>
    %1632 = vector.shape_cast %1631 : vector<8x128xf32> to vector<1x8x128xf32>
    %cst_373 = arith.constant dense<0.000000e+00> : vector<1xf32>
    %1633 = vector.multi_reduction <add>, %1632, %cst_373 [1, 2] : vector<1x8x128xf32> to vector<1xf32>
    %1634 = vector.shape_cast %1633 : vector<1xf32> to vector<1x1x1xf32>
    %1635 = vector.extract %1634[0, 0, 0] : f32 from vector<1x1x1xf32>
    %cst_374 = arith.constant 9.765625E-4 : f32
    %1636 = arith.mulf %1630, %cst_374 : f32
    %cst_375 = arith.constant 9.765625E-4 : f32
    %1637 = arith.mulf %1635, %cst_375 : f32
    %1638 = arith.mulf %1636, %1636 : f32
    %1639 = arith.subf %1637, %1638 : f32
    %1640 = vector.broadcast %1636 : f32 to vector<8x128xf32>
    %1641 = arith.subf %1626, %1640 : vector<8x128xf32>
    %cst_376 = arith.constant 9.99999974E-6 : f32
    %1642 = arith.addf %1639, %cst_376 : f32
    %1643 = math.rsqrt %1642 : f32
    %1644 = vector.broadcast %1643 : f32 to vector<8x128xf32>
    %1645 = arith.mulf %1641, %1644 : vector<8x128xf32>
    %cst_377 = arith.constant 0.000000e+00 : f32
    %1646 = vector.broadcast %cst_377 : f32 to vector<8x128xf32>
    %1647 = arith.maximumf %1645, %1646 : vector<8x128xf32>
    %1648 = vector.broadcast %40 : f32 to vector<8x128xf32>
    %1649 = arith.mulf %1648, %1462 : vector<8x128xf32>
    %1650 = vector.broadcast %41 : f32 to vector<8x128xf32>
    %1651 = arith.mulf %1650, %1467 : vector<8x128xf32>
    %1652 = vector.broadcast %42 : f32 to vector<8x128xf32>
    %1653 = arith.mulf %1652, %1399 : vector<8x128xf32>
    %1654 = vector.broadcast %43 : f32 to vector<8x128xf32>
    %1655 = arith.mulf %1654, %1472 : vector<8x128xf32>
    %1656 = vector.broadcast %44 : f32 to vector<8x128xf32>
    %1657 = arith.mulf %1656, %1477 : vector<8x128xf32>
    %1658 = vector.broadcast %45 : f32 to vector<8x128xf32>
    %1659 = arith.mulf %1658, %1482 : vector<8x128xf32>
    %1660 = vector.broadcast %46 : f32 to vector<8x128xf32>
    %1661 = arith.mulf %1660, %1487 : vector<8x128xf32>
    %1662 = vector.broadcast %47 : f32 to vector<8x128xf32>
    %1663 = arith.mulf %1662, %1428 : vector<8x128xf32>
    %1664 = vector.broadcast %48 : f32 to vector<8x128xf32>
    %1665 = arith.mulf %1664, %1492 : vector<8x128xf32>
    %1666 = vector.broadcast %49 : f32 to vector<8x128xf32>
    %1667 = arith.mulf %1666, %1497 : vector<8x128xf32>
    %1668 = vector.broadcast %50 : f32 to vector<8x128xf32>
    %1669 = arith.mulf %1668, %1502 : vector<8x128xf32>
    %1670 = vector.broadcast %51 : f32 to vector<8x128xf32>
    %1671 = arith.mulf %1670, %1507 : vector<8x128xf32>
    %1672 = vector.broadcast %52 : f32 to vector<8x128xf32>
    %1673 = arith.mulf %1672, %1457 : vector<8x128xf32>
    %1674 = vector.broadcast %53 : f32 to vector<8x128xf32>
    %1675 = arith.mulf %1674, %1512 : vector<8x128xf32>
    %1676 = vector.broadcast %54 : f32 to vector<8x128xf32>
    %1677 = arith.mulf %1676, %1517 : vector<8x128xf32>
    %1678 = arith.addf %1649, %1651 : vector<8x128xf32>
    %1679 = arith.addf %1678, %1653 : vector<8x128xf32>
    %1680 = arith.addf %1679, %1655 : vector<8x128xf32>
    %1681 = arith.addf %1680, %1657 : vector<8x128xf32>
    %1682 = arith.addf %1681, %1659 : vector<8x128xf32>
    %1683 = arith.addf %1682, %1661 : vector<8x128xf32>
    %1684 = arith.addf %1683, %1663 : vector<8x128xf32>
    %1685 = arith.addf %1684, %1665 : vector<8x128xf32>
    %1686 = arith.addf %1685, %1667 : vector<8x128xf32>
    %1687 = arith.addf %1686, %1669 : vector<8x128xf32>
    %1688 = arith.addf %1687, %1671 : vector<8x128xf32>
    %1689 = arith.addf %1688, %1673 : vector<8x128xf32>
    %1690 = arith.addf %1689, %1675 : vector<8x128xf32>
    %1691 = arith.addf %1690, %1677 : vector<8x128xf32>
    %1692 = vector.shape_cast %1691 : vector<8x128xf32> to vector<1x8x128xf32>
    %cst_378 = arith.constant dense<0.000000e+00> : vector<1xf32>
    %1693 = vector.multi_reduction <add>, %1692, %cst_378 [1, 2] : vector<1x8x128xf32> to vector<1xf32>
    %1694 = vector.shape_cast %1693 : vector<1xf32> to vector<1x1x1xf32>
    %1695 = vector.extract %1694[0, 0, 0] : f32 from vector<1x1x1xf32>
    %1696 = arith.mulf %1691, %1691 : vector<8x128xf32>
    %1697 = vector.shape_cast %1696 : vector<8x128xf32> to vector<1x8x128xf32>
    %cst_379 = arith.constant dense<0.000000e+00> : vector<1xf32>
    %1698 = vector.multi_reduction <add>, %1697, %cst_379 [1, 2] : vector<1x8x128xf32> to vector<1xf32>
    %1699 = vector.shape_cast %1698 : vector<1xf32> to vector<1x1x1xf32>
    %1700 = vector.extract %1699[0, 0, 0] : f32 from vector<1x1x1xf32>
    %cst_380 = arith.constant 9.765625E-4 : f32
    %1701 = arith.mulf %1695, %cst_380 : f32
    %cst_381 = arith.constant 9.765625E-4 : f32
    %1702 = arith.mulf %1700, %cst_381 : f32
    %1703 = arith.mulf %1701, %1701 : f32
    %1704 = arith.subf %1702, %1703 : f32
    %1705 = vector.broadcast %1701 : f32 to vector<8x128xf32>
    %1706 = arith.subf %1691, %1705 : vector<8x128xf32>
    %cst_382 = arith.constant 9.99999974E-6 : f32
    %1707 = arith.addf %1704, %cst_382 : f32
    %1708 = math.rsqrt %1707 : f32
    %1709 = vector.broadcast %1708 : f32 to vector<8x128xf32>
    %1710 = arith.mulf %1706, %1709 : vector<8x128xf32>
    %cst_383 = arith.constant 0.000000e+00 : f32
    %1711 = vector.broadcast %cst_383 : f32 to vector<8x128xf32>
    %1712 = arith.maximumf %1710, %1711 : vector<8x128xf32>
    %c2_i32_384 = arith.constant 2 : i32
    %1713 = tpu.dynamic_rotate %1582 by %c2_i32_384 dim 1 : vector<8x128xf32>, i32 -> vector<8x128xf32>
    %c2_i32_385 = arith.constant 2 : i32
    %1714 = vector.broadcast %c2_i32_385 : i32 to vector<8x128xi32>
    %1715 = arith.cmpi sge, %0, %1714 : vector<8x128xi32>
    %cst_386 = arith.constant 0.000000e+00 : f32
    %1716 = vector.broadcast %cst_386 : f32 to vector<8x128xf32>
    %1717 = arith.select %1715, %1713, %1716 : vector<8x128xi1>, vector<8x128xf32>
    %c126_i32_387 = arith.constant 126 : i32
    %1718 = tpu.dynamic_rotate %1582 by %c126_i32_387 dim 1 : vector<8x128xf32>, i32 -> vector<8x128xf32>
    %c126_i32_388 = arith.constant 126 : i32
    %1719 = vector.broadcast %c126_i32_388 : i32 to vector<8x128xi32>
    %1720 = arith.cmpi slt, %0, %1719 : vector<8x128xi32>
    %cst_389 = arith.constant 0.000000e+00 : f32
    %1721 = vector.broadcast %cst_389 : f32 to vector<8x128xf32>
    %1722 = arith.select %1720, %1718, %1721 : vector<8x128xi1>, vector<8x128xf32>
    %c2_i32_390 = arith.constant 2 : i32
    %1723 = tpu.dynamic_rotate %1647 by %c2_i32_390 dim 1 : vector<8x128xf32>, i32 -> vector<8x128xf32>
    %c2_i32_391 = arith.constant 2 : i32
    %1724 = vector.broadcast %c2_i32_391 : i32 to vector<8x128xi32>
    %1725 = arith.cmpi sge, %0, %1724 : vector<8x128xi32>
    %cst_392 = arith.constant 0.000000e+00 : f32
    %1726 = vector.broadcast %cst_392 : f32 to vector<8x128xf32>
    %1727 = arith.select %1725, %1723, %1726 : vector<8x128xi1>, vector<8x128xf32>
    %c126_i32_393 = arith.constant 126 : i32
    %1728 = tpu.dynamic_rotate %1647 by %c126_i32_393 dim 1 : vector<8x128xf32>, i32 -> vector<8x128xf32>
    %c126_i32_394 = arith.constant 126 : i32
    %1729 = vector.broadcast %c126_i32_394 : i32 to vector<8x128xi32>
    %1730 = arith.cmpi slt, %0, %1729 : vector<8x128xi32>
    %cst_395 = arith.constant 0.000000e+00 : f32
    %1731 = vector.broadcast %cst_395 : f32 to vector<8x128xf32>
    %1732 = arith.select %1730, %1728, %1731 : vector<8x128xi1>, vector<8x128xf32>
    %c2_i32_396 = arith.constant 2 : i32
    %1733 = tpu.dynamic_rotate %1712 by %c2_i32_396 dim 1 : vector<8x128xf32>, i32 -> vector<8x128xf32>
    %c2_i32_397 = arith.constant 2 : i32
    %1734 = vector.broadcast %c2_i32_397 : i32 to vector<8x128xi32>
    %1735 = arith.cmpi sge, %0, %1734 : vector<8x128xi32>
    %cst_398 = arith.constant 0.000000e+00 : f32
    %1736 = vector.broadcast %cst_398 : f32 to vector<8x128xf32>
    %1737 = arith.select %1735, %1733, %1736 : vector<8x128xi1>, vector<8x128xf32>
    %c126_i32_399 = arith.constant 126 : i32
    %1738 = tpu.dynamic_rotate %1712 by %c126_i32_399 dim 1 : vector<8x128xf32>, i32 -> vector<8x128xf32>
    %c126_i32_400 = arith.constant 126 : i32
    %1739 = vector.broadcast %c126_i32_400 : i32 to vector<8x128xi32>
    %1740 = arith.cmpi slt, %0, %1739 : vector<8x128xi32>
    %cst_401 = arith.constant 0.000000e+00 : f32
    %1741 = vector.broadcast %cst_401 : f32 to vector<8x128xf32>
    %1742 = arith.select %1740, %1738, %1741 : vector<8x128xi1>, vector<8x128xf32>
    %1743 = vector.broadcast %55 : f32 to vector<8x128xf32>
    %1744 = arith.mulf %1743, %1717 : vector<8x128xf32>
    %1745 = vector.broadcast %56 : f32 to vector<8x128xf32>
    %1746 = arith.mulf %1745, %1582 : vector<8x128xf32>
    %1747 = vector.broadcast %57 : f32 to vector<8x128xf32>
    %1748 = arith.mulf %1747, %1722 : vector<8x128xf32>
    %1749 = vector.broadcast %58 : f32 to vector<8x128xf32>
    %1750 = arith.mulf %1749, %1727 : vector<8x128xf32>
    %1751 = vector.broadcast %59 : f32 to vector<8x128xf32>
    %1752 = arith.mulf %1751, %1647 : vector<8x128xf32>
    %1753 = vector.broadcast %60 : f32 to vector<8x128xf32>
    %1754 = arith.mulf %1753, %1732 : vector<8x128xf32>
    %1755 = vector.broadcast %61 : f32 to vector<8x128xf32>
    %1756 = arith.mulf %1755, %1737 : vector<8x128xf32>
    %1757 = vector.broadcast %62 : f32 to vector<8x128xf32>
    %1758 = arith.mulf %1757, %1712 : vector<8x128xf32>
    %1759 = vector.broadcast %63 : f32 to vector<8x128xf32>
    %1760 = arith.mulf %1759, %1742 : vector<8x128xf32>
    %1761 = arith.addf %1744, %1746 : vector<8x128xf32>
    %1762 = arith.addf %1761, %1748 : vector<8x128xf32>
    %1763 = arith.addf %1762, %1750 : vector<8x128xf32>
    %1764 = arith.addf %1763, %1752 : vector<8x128xf32>
    %1765 = arith.addf %1764, %1754 : vector<8x128xf32>
    %1766 = arith.addf %1765, %1756 : vector<8x128xf32>
    %1767 = arith.addf %1766, %1758 : vector<8x128xf32>
    %1768 = arith.addf %1767, %1760 : vector<8x128xf32>
    %1769 = vector.shape_cast %1768 : vector<8x128xf32> to vector<1x8x128xf32>
    %cst_402 = arith.constant dense<0.000000e+00> : vector<1xf32>
    %1770 = vector.multi_reduction <add>, %1769, %cst_402 [1, 2] : vector<1x8x128xf32> to vector<1xf32>
    %1771 = vector.shape_cast %1770 : vector<1xf32> to vector<1x1x1xf32>
    %1772 = vector.extract %1771[0, 0, 0] : f32 from vector<1x1x1xf32>
    %1773 = arith.mulf %1768, %1768 : vector<8x128xf32>
    %1774 = vector.shape_cast %1773 : vector<8x128xf32> to vector<1x8x128xf32>
    %cst_403 = arith.constant dense<0.000000e+00> : vector<1xf32>
    %1775 = vector.multi_reduction <add>, %1774, %cst_403 [1, 2] : vector<1x8x128xf32> to vector<1xf32>
    %1776 = vector.shape_cast %1775 : vector<1xf32> to vector<1x1x1xf32>
    %1777 = vector.extract %1776[0, 0, 0] : f32 from vector<1x1x1xf32>
    %cst_404 = arith.constant 9.765625E-4 : f32
    %1778 = arith.mulf %1772, %cst_404 : f32
    %cst_405 = arith.constant 9.765625E-4 : f32
    %1779 = arith.mulf %1777, %cst_405 : f32
    %1780 = arith.mulf %1778, %1778 : f32
    %1781 = arith.subf %1779, %1780 : f32
    %1782 = vector.broadcast %1778 : f32 to vector<8x128xf32>
    %1783 = arith.subf %1768, %1782 : vector<8x128xf32>
    %cst_406 = arith.constant 9.99999974E-6 : f32
    %1784 = arith.addf %1781, %cst_406 : f32
    %1785 = math.rsqrt %1784 : f32
    %1786 = vector.broadcast %1785 : f32 to vector<8x128xf32>
    %1787 = arith.mulf %1783, %1786 : vector<8x128xf32>
    %cst_407 = arith.constant 0.000000e+00 : f32
    %1788 = vector.broadcast %cst_407 : f32 to vector<8x128xf32>
    %1789 = arith.maximumf %1787, %1788 : vector<8x128xf32>
    %1790 = arith.addf %1789, %1360 : vector<8x128xf32>
    %cst_408 = arith.constant 0.000000e+00 : f32
    %1791 = vector.broadcast %cst_408 : f32 to vector<8x128xf32>
    %1792 = arith.maximumf %1790, %1791 : vector<8x128xf32>
    %c0_409 = arith.constant 0 : index
    %c0_410 = arith.constant 0 : index
    %1793 = vector.load %arg3[%c0_409, %c0_410] : memref<8x128xf32, #tpu.memory_space<vmem>>, vector<8x128xf32>
    tpu.vector_store %arg3[%c0_409, %c0_410], %1792 {strides = array<i32>} : memref<8x128xf32, #tpu.memory_space<vmem>>, vector<8x128xf32>,
    return
  }
  func.func @transform_0(%arg0: i32) -> (i32, i32) {
    %c0_i32 = arith.constant 0 : i32
    %c0_i32_0 = arith.constant 0 : i32
    %c0_i32_1 = arith.constant 0 : i32
    return %c0_i32, %c0_i32_0 : i32, i32
  }
  func.func @transform_1(%arg0: i32) -> i32 {
    %c0_i32 = arith.constant 0 : i32
    %c0_i32_0 = arith.constant 0 : i32
    return %c0_i32 : i32
  }
  func.func @transform_2(%arg0: i32) -> (i32, i32) {
    %c0_i32 = arith.constant 0 : i32
    %c0_i32_0 = arith.constant 0 : i32
    %c0_i32_1 = arith.constant 0 : i32
    return %c0_i32, %c0_i32_0 : i32, i32
  }
}

</mosaic_0001>

<bundles_post_ra>
// kernel: lstm_conv_pallas.1
= control target key start
LH: loop header
LB: loop body
LE: loop exit
PB: predicated region body
PF: predicated region fallthrough
CT: control target
= control target key end

     0   :  { %7 = vsyncpa [#allocation3], 0  ;;  %s3124_s0 = inlined_call_operand.hbm [shape: f32[8,128], index: 0, kind: input, shape index: {}]   ;;  %s3125_s1 = inlined_call_operand.vmem [shape: f32[64], index: 1, kind: input, shape index: {}]   ;;  %s3126_s2 = inlined_call_operand.hbm [shape: f32[8,128], index: 2, kind: output, shape index: {}]  }
   0x1   :  { %8 = vsyncpa [#allocation5], 0 }
   0x2   :  { %9 = vsyncpa [#allocation4], 0  ;;  %s26_s11 = sshll.u32 %s3125_s1, 4  ;;  %s2163_s12 = smov [#allocation2]   ;;  %s27_s11 = int_to_ptr.vmem [resolvable:$true] %s26_s11 }
   0x3   :  { %s16_s13 = sshll.u32 %s2163_s12, 4  ;;  %s2101_s16 = scalar_lea.hbm %s3124_s0, 128  ;;  %s17_s13 = int_to_ptr.vmem [resolvable:$true] %s16_s13 }
   0x4   :  { %p2102_p0 = scmp.ne.s32.totalorder %s3124_s0, %s2101_s16  ;;  %p2105_p1 = scmp.lt.u32.totalorder %s2101_s16, %s3124_s0 }
   0x6   :  { %p2107_p2 = pnand %p2105_p1, %p2102_p0 }
   0x8   :  { %2110 = shalt.err (!%p2107_p2)
}
   0x9   :  { %s2111_s21 = scalar_lea.vmem %s17_s13, 128  ;;  %p2116_p4 = scmp.lt.s32.totalorder %s17_s13, %s17_s13 }
   0xa   :  { %p2112_p3 = scmp.ne.s32.totalorder %s17_s13, %s2111_s21  ;;  %p2117_p5 = scmp.lt.s32.totalorder %s2111_s21, %s2111_s21 }
   0xc   :  { %p2118_p6 = por %p2117_p5, %p2116_p4 }
   0xe   :  { %p2119_p7 = pnand %p2118_p6, %p2112_p3 }
  0x10   :  { %2122 = shalt.err (!%p2119_p7)
}
  0x11   :  { %19 = dma.hbm_to_vmem [thread:$0]  %s3124_s0, 128, %s17_s13, [#allocation3]  }
  0x12   :  { %s2123_s23 = scalar_lea.vmem %s27_s11, 16  ;;  %p2128_p9 = scmp.lt.s32.totalorder %s27_s11, %s27_s11 }
  0x13   :  { %p2124_p8 = scmp.ne.s32.totalorder %s27_s11, %s2123_s23  ;;  %p2129_p10 = scmp.lt.s32.totalorder %s2123_s23, %s2123_s23 }
  0x15   :  { %p2130_p11 = por %p2129_p10, %p2128_p9 }
  0x17   :  { %p2131_p12 = pnand %p2130_p11, %p2124_p8 }
  0x19   :  { %2134 = shalt.err (!%p2131_p12)
}
  0x1a   :  { %s2164_s24 = smov [#allocation6]  }
  0x1b   :  { %29 = dma.vmem_to_smem %s27_s11, 16, %s2164_s24, [#allocation5]  }
  0x1c   :  { %2157 = dma.done.wait [#allocation3], 128  }
  0x1d   :  { %2158 = vsyncadd [#allocation3], 4294967168 }
  0x1e   :  { %2159 = dma.done.wait [#allocation5], 16  }
  0x1f   :  { %2160 = vsyncadd [#allocation5], 4294967280 }
  0x20   :  { %36 = sfence }
  0x21   :  { %v102_v0 = vld [vmem:[#allocation2] sm:$0xff]  ;;  %s2165_s25 = smov 1   ;;  %s2166_s26 = smov 127   ;;  %v37_v1 = vlaneseq }
  0x22   :  { %103 = vrot.lane.b32.xlu0 %v102_v0, %s2165_s25  ;;  %s39_s0 = sld [smem:[#allocation6]]  ;;  %s1809_s27 = sld [smem:[#allocation6 + $0x3]] }
  0x23   :  { %s1810_s28 = sld [smem:[#allocation6 + $0x4]]  ;;  %s1807_s29 = sld [smem:[#allocation6 + $0x1]]  ;;  %v2202_v2 = vand.u32 127, %v37_v1 }
  0x24   :  { %s1808_s30 = sld [smem:[#allocation6 + $0x2]]  ;;  %s1811_s3 = sld [smem:[#allocation6 + $0x5]] }
  0x25   :  { %vm105_vm0 = vcmp.ge.s32.totalorder %v2202_v2, 1  ;;  %vm109_vm1 = vcmp.lt.s32.totalorder %v2202_v2, 127  ;;  %s1812_s4 = sld [smem:[#allocation6 + $0x6]]  ;;  %s1813_s5 = sld [smem:[#allocation6 + $0x7]]  ;;  %vm233_vm2 = vcmp.ge.s32.totalorder %v2202_v2, 2  ;;  %vm243_vm3 = vcmp.lt.s32.totalorder %v2202_v2, 126 }
  0x26   :  { %107 = vrot.lane.b32.xlu0 %v102_v0, %s2166_s26  ;;  %s1814_s6 = sld [smem:[#allocation6 + $0x8]]  ;;  %s2167_s21 = smov 2  }
  0x27   :  { %s2168_s22 = smov 126  }
  0x28   :  { %v2205_v3 = vstv %s39_s0  ;;  %v2207_v4 = vstv %s1809_s27 }
  0x29   :  { %v2209_v5 = vstv %s1810_s28  ;;  %v2211_v6 = vstv %s1807_s29 }
  0x2a   :  { %v154_v11 = vmul.f32 %v2209_v5, %v102_v0  ;;  %v114_v12 = vmul.f32 %v2211_v6, %v102_v0  ;;  %v2220_v13 = vstv %s1808_s30  ;;  %v2222_v14 = vstv %s1811_s3 }
  0x2b   :  { %3190 = vst [vmem:[#allocation11_spill] sm:$0xff] %v2222_v14  ;;  %v2234_v23 = vstv %s1812_s4  ;;  %v2236_v24 = vstv %s1813_s5  ;;  %s1816_s5 = sld [smem:[#allocation6 + $0xa]] }
  0x2c   :  { %v2240_v26 = vstv %s1814_s6  ;;  %v194_v28 = vmul.f32 %v2236_v24, %v102_v0  ;;  %s1831_s6 = sld [smem:[#allocation6 + $0x19]] }
  0x2d   :  { %3191 = vst [vmem:[#allocation12_spill] sm:$0xff] %v2240_v26 }
  0x94   :  { %v104_v7 = vpop.permute.xlu0 %103 }
  0x95   :  { %v106_v8 = vsel %vm105_vm0, %v104_v7, 0.0 }
  0x96   :  { %v112_v9 = vmul.f32 %v2205_v3, %v106_v8  ;;  %v152_v10 = vmul.f32 %v2207_v4, %v106_v8  ;;  %v192_v27 = vmul.f32 %v2234_v23, %v106_v8 }
  0x98   :  { %v108_v15 = vpop.permute.xlu0 %107  ;;  %v157_v19 = vadd.f32 %v154_v11, %v152_v10  ;;  %v117_v20 = vadd.f32 %v114_v12, %v112_v9  ;;  %v197_v31 = vadd.f32 %v194_v28, %v192_v27 }
  0x99   :  { %v110_v16 = vsel %vm109_vm1, %v108_v15, 0.0 }
  0x9a   :  { %v116_v17 = vmul.f32 %v2220_v13, %v110_v16  ;;  %v156_v18 = vmul.f32 %v2222_v14, %v110_v16  ;;  %v196_v29 = vmul.f32 %v2240_v26, %v110_v16 }
  0x9c   :  { %v2228_v21 = vadd.f32 %v157_v19, %v156_v18  ;;  %v2230_v22 = vadd.f32 %v117_v20, %v116_v17  ;;  %v2247_v32 = vadd.f32 %v197_v31, %v196_v29 }
  0x9e   :  { %159 = vadd.xlane.f32.xlu0 %v2228_v21  ;;  %119 = vadd.xlane.f32.xlu1 %v2230_v22  ;;  %v128_v25 = vmul.f32 %v2230_v22, %v2230_v22  ;;  %v168_v30 = vmul.f32 %v2228_v21, %v2228_v21  ;;  %v208_v33 = vmul.f32 %v2247_v32, %v2247_v32 }
  0xa2   :  { %129 = vadd.xlane.f32.xlu1 %v128_v25 }
  0xa6   :  { %169 = vadd.xlane.f32.xlu1 %v168_v30 }
  0xaa   :  { %199 = vadd.xlane.f32.xlu1 %v2247_v32 }
  0xae   :  { %209 = vadd.xlane.f32.xlu1 %v208_v33 }
 0x12b   :  { %v120_v34 = vpop.xlane.xlu1 %119  ;;  %v160_v48 = vpop.xlane.xlu0 %159 }
 0x12c   :  { %v121_v35 = vrot.slane %v120_v34, 4  ;;  %v161_v50 = vrot.slane %v160_v48, 4 }
 0x12e   :  { %v122_v36 = vadd.f32 %v121_v35, %v120_v34  ;;  %v162_v52 = vadd.f32 %v161_v50, %v160_v48 }
 0x12f   :  { %v130_v37 = vpop.xlane.xlu1 %129 }
 0x130   :  { %v131_v38 = vrot.slane %v130_v37, 4  ;;  %v123_v39 = vrot.slane %v122_v36, 2  ;;  %v163_v54 = vrot.slane %v162_v52, 2 }
 0x132   :  { %v132_v40 = vadd.f32 %v131_v38, %v130_v37  ;;  %v124_v41 = vadd.f32 %v123_v39, %v122_v36  ;;  %v164_v57 = vadd.f32 %v163_v54, %v162_v52 }
 0x133   :  { %v170_v49 = vpop.xlane.xlu1 %169 }
 0x134   :  { %v125_v42 = vrot.slane %v124_v41, 1  ;;  %v133_v43 = vrot.slane %v132_v40, 2  ;;  %v171_v51 = vrot.slane %v170_v49, 4  ;;  %v165_v59 = vrot.slane %v164_v57, 1 }
 0x136   :  { %v126_v44 = vadd.f32 %v125_v42, %v124_v41  ;;  %v134_v45 = vadd.f32 %v133_v43, %v132_v40  ;;  %v172_v53 = vadd.f32 %v171_v51, %v170_v49  ;;  %v166_v62 = vadd.f32 %v165_v59, %v164_v57 }
 0x137   :  { %v200_v0 = vpop.xlane.xlu1 %199 }
 0x138   :  { %1869 = vpush %v126_v44  ;;  %v135_v46 = vrot.slane %v134_v45, 1  ;;  %v173_v56 = vrot.slane %v172_v53, 2  ;;  %v201_v9 = vrot.slane %v200_v0, 4 }
 0x13a   :  { %v136_v47 = vadd.f32 %v135_v46, %v134_v45  ;;  %v174_v58 = vadd.f32 %v173_v56, %v172_v53  ;;  %v202_v16 = vadd.f32 %v201_v9, %v200_v0  ;;  %v2286_v45 = vstv %s1816_s5  ;;  %s1853_s5 = sld [smem:[#allocation6 + $0x2f]] }
 0x13b   :  { %v210_v7 = vpop.xlane.xlu1 %209  ;;  %v2288_v46 = vstv %s1831_s6  ;;  %s1824_s6 = sld [smem:[#allocation6 + $0x12]] }
 0x13c   :  { %1871 = vpush %v136_v47  ;;  %v175_v60 = vrot.slane %v174_v58, 1  ;;  %v211_v11 = vrot.slane %v210_v7, 4  ;;  %v203_v18 = vrot.slane %v202_v16, 2 }
 0x13e   :  { %v176_v63 = vadd.f32 %v175_v60, %v174_v58  ;;  %v212_v17 = vadd.f32 %v211_v11, %v210_v7 }
 0x140   :  { %v213_v20 = vrot.slane %v212_v17, 2 }
 0x142   :  { %v214_v25 = vadd.f32 %v213_v20, %v212_v17 }
 0x144   :  { %v215_v28 = vrot.slane %v214_v25, 1 }
 0x146   :  { %v216_v31 = vadd.f32 %v215_v28, %v214_v25 }
 0x169   :  { %s1870_s7 = spop %1869 }
 0x16a   :  { %s138_s8 = smul.f32 0.0009765625, %s1870_s7  ;;  %s1846_s7 = sld [smem:[#allocation6 + $0x28]] }
 0x16c   :  { %s140_s9 = smul.f32 %s138_s8, %s138_s8  ;;  %v142_v1 = vstv %s138_s8  ;;  %s1815_s8 = sld [smem:[#allocation6 + $0x9]] }
 0x16d   :  { %s1872_s10 = spop %1871  ;;  %v143_v8 = vsub.f32 %v2230_v22, %v142_v1  ;;  %v204_v22 = vadd.f32 %v203_v18, %v202_v16 }
 0x16e   :  { %s139_s11 = smul.f32 0.0009765625, %s1872_s10  ;;  %s1845_s10 = sld [smem:[#allocation6 + $0x27]] }
 0x16f   :  { %v205_v27 = vrot.slane %v204_v22, 1 }
 0x170   :  { %s141_s12 = ssub.f32 %s139_s11, %s140_s9  ;;  %s1830_s9 = sld [smem:[#allocation6 + $0x18]]  ;;  %v2292_v48 = vstv %s1846_s7 }
 0x171   :  { %v206_v30 = vadd.f32 %v205_v27, %v204_v22  ;;  %s1817_s11 = sld [smem:[#allocation6 + $0xb]]  ;;  %s1839_s7 = sld [smem:[#allocation6 + $0x21]] }
 0x172   :  { %s144_s13 = sadd.f32 1e-05, %s141_s12  ;;  %s1832_s12 = sld [smem:[#allocation6 + $0x1a]]  ;;  %v2294_v49 = vstv %s1815_s8 }
 0x173   :  { %s1854_s8 = sld [smem:[#allocation6 + $0x30]] }
 0x174   :  { %v145_v55 = vstv %s144_s13  ;;  %s1847_s13 = sld [smem:[#allocation6 + $0x29]]  ;;  %v2300_v52 = vstv %s1845_s10  ;;  %s1842_s10 = sld [smem:[#allocation6 + $0x24]] }
 0x175   :  { %2044 = vrsqrt.f32 %v145_v55  ;;  %3193 = vst [vmem:[#allocation14_spill] sm:$0xff] %v2300_v52 }
 0x176   :  { %v2296_v50 = vstv %s1830_s9  ;;  %s1827_s9 = sld [smem:[#allocation6 + $0x15]] }
 0x177   :  { %3192 = vst [vmem:[#allocation13_spill] sm:$0xff] %v2296_v50  ;;  %v2312_v59 = vstv %s1817_s11  ;;  %s1825_s11 = sld [smem:[#allocation6 + $0x13]] }
 0x178   :  { %3194 = vst [vmem:[#allocation15_spill] sm:$0xff] %v2312_v59  ;;  %v2314_v60 = vstv %s1832_s12  ;;  %s1840_s12 = sld [smem:[#allocation6 + $0x22]] }
 0x179   :  { %3195 = vst [vmem:[#allocation16_spill] sm:$0xff] %v2314_v60 }
 0x17f   :  { %v2045_v61 = vpop.eup %2044 }
 0x180   :  { %1873 = vpush %v2045_v61 }
 0x181   :  { %1875 = vpush %v166_v62  ;;  %v2320_v62 = vstv %s1847_s13  ;;  %s1855_s13 = sld [smem:[#allocation6 + $0x31]] }
 0x182   :  { %1877 = vpush %v176_v63  ;;  %3196 = vst [vmem:[#allocation17_spill] sm:$0xff] %v2320_v62 }
 0x1b1   :  { %s1874_s14 = spop %1873 }
 0x1b2   :  { %v148_v10 = vstv %s1874_s14  ;;  %s1876_s15 = spop %1875  ;;  %s1818_s14 = sld [smem:[#allocation6 + $0xc]] }
 0x1b3   :  { %v149_v12 = vmul.f32 %v148_v10, %v143_v8  ;;  %s178_s16 = smul.f32 0.0009765625, %s1876_s15  ;;  %s1878_s17 = spop %1877 }
 0x1b4   :  { %s179_s18 = smul.f32 0.0009765625, %s1878_s17  ;;  %s1833_s15 = sld [smem:[#allocation6 + $0x1b]] }
 0x1b5   :  { %v2253_v15 = vmax.f32 %v149_v12, 0.0  ;;  %s180_s19 = smul.f32 %s178_s16, %s178_s16  ;;  %v182_v33 = vstv %s178_s16  ;;  %s1848_s16 = sld [smem:[#allocation6 + $0x2a]] }
 0x1b6   :  { %v183_v34 = vsub.f32 %v2228_v21, %v182_v33  ;;  %s2307_s17 = sld [smem:[#allocation6 + $0xd]] }
 0x1b7   :  { %s181_s20 = ssub.f32 %s179_s18, %s180_s19  ;;  %238 = vrot.lane.b32.xlu0 %v2253_v15, %s2166_s26  ;;  %231 = vrot.lane.b32.xlu1 %v2253_v15, %s2167_s21  ;;  %s2309_s18 = sld [smem:[#allocation6 + $0x1c]]  ;;  %v274_v7 = vmul.f32 %v2312_v59, %v2253_v15  ;;  %v350_v8 = vmul.f32 %v2314_v60, %v2253_v15  ;;  %v426_v12 = vmul.f32 %v2320_v62, %v2253_v15 }
 0x1b8   :  { %s2316_s19 = sld [smem:[#allocation6 + $0x2b]]  ;;  %v2332_v9 = vstv %s1818_s14  ;;  %s1826_s14 = sld [smem:[#allocation6 + $0x14]] }
 0x1b9   :  { %s184_s1 = sadd.f32 1e-05, %s181_s20  ;;  %s2318_s20 = sld [smem:[#allocation6 + $0xe]] }
 0x1ba   :  { %v2334_v10 = vstv %s1833_s15  ;;  %s1841_s15 = sld [smem:[#allocation6 + $0x23]] }
 0x1bb   :  { %v185_v19 = vstv %s184_s1  ;;  %235 = vrot.lane.b32.xlu1 %v2253_v15, %s2165_s25  ;;  %s2322_s1 = sld [smem:[#allocation6 + $0x1d]]  ;;  %v2341_v16 = vstv %s1848_s16  ;;  %s1856_s16 = sld [smem:[#allocation6 + $0x32]] }
 0x1bc   :  { %2046 = vrsqrt.f32 %v185_v19  ;;  %v2350_v25 = vstv %s2307_s17  ;;  %s2422_s17 = sld [smem:[#allocation6 + $0x33]] }
 0x1bd   :  { %v2353_v27 = vstv %s2309_s18  ;;  %s2427_s18 = sld [smem:[#allocation6 + $0x16]] }
 0x1bf   :  { %241 = vrot.lane.b32.xlu1 %v2253_v15, %s2168_s22 }
 0x1c6   :  { %v2047_v29 = vpop.eup %2046 }
 0x1c7   :  { %1879 = vpush %v2047_v29  ;;  %v2357_v29 = vstv %s2316_s19  ;;  %s2440_s19 = sld [smem:[#allocation6 + $0x25]] }
 0x1c8   :  { %1881 = vpush %v206_v30 }
 0x1c9   :  { %1883 = vpush %v216_v31  ;;  %v2362_v31 = vstv %s2318_s20  ;;  %s2442_s20 = sld [smem:[#allocation6 + $0x17]] }
 0x1f8   :  { %s1880_s23 = spop %1879 }
 0x1f9   :  { %v188_v35 = vstv %s1880_s23  ;;  %s1882_s24 = spop %1881  ;;  %s2324_s23 = sld [smem:[#allocation6 + $0x2c]] }
 0x1fa   :  { %v189_v36 = vmul.f32 %v188_v35, %v183_v34  ;;  %s218_s0 = smul.f32 0.0009765625, %s1882_s24  ;;  %s1884_s27 = spop %1883  ;;  %v2365_v35 = vstv %s2322_s1 }
 0x1fb   :  { %s219_s28 = smul.f32 0.0009765625, %s1884_s27  ;;  %s2330_s24 = sld [smem:[#allocation6 + $0xf]] }
 0x1fc   :  { %v2264_v37 = vmax.f32 %v189_v36, 0.0  ;;  %s220_s29 = smul.f32 %s218_s0, %s218_s0  ;;  %v222_v39 = vstv %s218_s0  ;;  %s1836_s0 = sld [smem:[#allocation6 + $0x1e]] }
 0x1fd   :  { %v223_v40 = vsub.f32 %v2247_v32, %v222_v39  ;;  %s1851_s27 = sld [smem:[#allocation6 + $0x2d]]  ;;  %s2454_s1 = sld [smem:[#allocation6 + $0x34]] }
 0x1fe   :  { %s221_s30 = ssub.f32 %s219_s28, %s220_s29  ;;  %245 = vrot.lane.b32.xlu1 %v2264_v37, %s2167_s21  ;;  %s2343_s28 = sld [smem:[#allocation6 + $0x10]] }
 0x1ff   :  { %s2345_s29 = sld [smem:[#allocation6 + $0x1f]]  ;;  %v2368_v36 = vstv %s2324_s23  ;;  %s1844_s23 = sld [smem:[#allocation6 + $0x26]] }
 0x200   :  { %s224_s3 = sadd.f32 1e-05, %s221_s30  ;;  %s1852_s30 = sld [smem:[#allocation6 + $0x2e]] }
 0x202   :  { %v225_v38 = vstv %s224_s3  ;;  %248 = vrot.lane.b32.xlu1 %v2264_v37, %s2165_s25  ;;  %s1823_s3 = sld [smem:[#allocation6 + $0x11]] }
 0x203   :  { %2048 = vrsqrt.f32 %v225_v38 }
 0x206   :  { %251 = vrot.lane.b32.xlu1 %v2264_v37, %s2166_s26 }
 0x20a   :  { %254 = vrot.lane.b32.xlu1 %v2264_v37, %s2168_s22 }
 0x20d   :  { %v2049_v21 = vpop.eup %2048 }
 0x20e   :  { %1885 = vpush %v2049_v21 }
 0x229   :  { %v232_v44 = vpop.permute.xlu1 %231  ;;  %v239_v61 = vpop.permute.xlu0 %238 }
 0x22a   :  { %v234_v51 = vsel %vm233_vm2, %v232_v44, 0.0  ;;  %v240_v11 = vsel %vm109_vm1, %v239_v61, 0.0  ;;  %v2386_v61 = vstv %s2343_s28 }
 0x22b   :  { %v270_v56 = vmul.f32 %v2294_v49, %v234_v51  ;;  %v346_v57 = vmul.f32 %v2296_v50, %v234_v51  ;;  %v422_v58 = vmul.f32 %v2300_v52, %v234_v51  ;;  %v276_v15 = vmul.f32 %v2332_v9, %v240_v11 }
 0x22c   :  { %v352_v22 = vmul.f32 %v2334_v10, %v240_v11  ;;  %v428_v28 = vmul.f32 %v2341_v16, %v240_v11 }
 0x22d   :  { %v236_v32 = vpop.permute.xlu1 %235 }
 0x22e   :  { %v237_v47 = vsel %vm105_vm0, %v236_v32, 0.0 }
 0x22f   :  { %v272_v53 = vmul.f32 %v2286_v45, %v237_v47  ;;  %v348_v54 = vmul.f32 %v2288_v46, %v237_v47  ;;  %v424_v55 = vmul.f32 %v2292_v48, %v237_v47 }
 0x231   :  { %v299_v63 = vadd.f32 %v272_v53, %v270_v56  ;;  %v375_v0 = vadd.f32 %v348_v54, %v346_v57  ;;  %v451_v1 = vadd.f32 %v424_v55, %v422_v58  ;;  %v242_v19 = vpop.permute.xlu1 %241  ;;  %v2381_v55 = vstv %s1836_s0 }
 0x232   :  { %v244_v30 = vsel %vm243_vm3, %v242_v19, 0.0  ;;  %v2383_v56 = vstv %s1851_s27  ;;  %v284_v19 = vmul.f32 %v2386_v61, %v2264_v37 }
 0x233   :  { %v300_v17 = vadd.f32 %v299_v63, %v274_v7  ;;  %v376_v18 = vadd.f32 %v375_v0, %v350_v8  ;;  %v452_v20 = vadd.f32 %v451_v1, %v426_v12  ;;  %v278_v39 = vmul.f32 %v2350_v25, %v244_v30 }
 0x234   :  { %v430_v44 = vmul.f32 %v2357_v29, %v244_v30  ;;  %v2389_v63 = vstv %s2345_s29  ;;  %v2393_v8 = vstv %s1852_s30 }
 0x235   :  { %v301_v33 = vadd.f32 %v300_v17, %v276_v15  ;;  %v377_v34 = vadd.f32 %v376_v18, %v352_v22  ;;  %v453_v38 = vadd.f32 %v452_v20, %v428_v28  ;;  %v360_v20 = vmul.f32 %v2389_v63, %v2264_v37 }
 0x237   :  { %v302_v53 = vadd.f32 %v301_v33, %v278_v39  ;;  %v454_v57 = vadd.f32 %v453_v38, %v430_v44  ;;  %v2410_v44 = vstv %s1853_s5 }
 0x238   :  { %3198 = vst [vmem:[#allocation19_spill] sm:$0xff] %v2410_v44 }
 0x23f   :  { %s1886_s4 = spop %1885 }
 0x240   :  { %v228_v41 = vstv %s1886_s4  ;;  %s1838_s4 = sld [smem:[#allocation6 + $0x20]] }
 0x241   :  { %v229_v42 = vmul.f32 %v228_v41, %v223_v40  ;;  %v354_v40 = vmul.f32 %v2353_v27, %v244_v30  ;;  %v436_v30 = vmul.f32 %v2393_v8, %v2264_v37 }
 0x243   :  { %v2275_v43 = vmax.f32 %v229_v42, 0.0  ;;  %v2375_v42 = vstv %s2330_s24  ;;  %v378_v54 = vadd.f32 %v377_v34, %v354_v40  ;;  %v2404_v40 = vstv %s1823_s3  ;;  %s1859_s24 = sld [smem:[#allocation6 + $0x35]] }
 0x245   :  { %260 = vrot.lane.b32.xlu1 %v2275_v43, %s2165_s25  ;;  %257 = vrot.lane.b32.xlu0 %v2275_v43, %s2167_s21 }
 0x246   :  { %v2406_v37 = vstv %s1838_s4 }
 0x247   :  { %3197 = vst [vmem:[#allocation18_spill] sm:$0xff] %v2406_v37 }
 0x249   :  { %266 = vrot.lane.b32.xlu1 %v2275_v43, %s2168_s22  ;;  %263 = vrot.lane.b32.xlu0 %v2275_v43, %s2166_s26 }
 0x270   :  { %v246_v21 = vpop.permute.xlu1 %245 }
 0x271   :  { %v247_v41 = vsel %vm233_vm2, %v246_v21, 0.0 }
 0x272   :  { %v280_v32 = vmul.f32 %v2362_v31, %v247_v41  ;;  %v356_v47 = vmul.f32 %v2365_v35, %v247_v41  ;;  %v432_v51 = vmul.f32 %v2368_v36, %v247_v41 }
 0x274   :  { %v249_v58 = vpop.permute.xlu1 %248  ;;  %v303_v0 = vadd.f32 %v302_v53, %v280_v32  ;;  %v379_v1 = vadd.f32 %v378_v54, %v356_v47  ;;  %v455_v11 = vadd.f32 %v454_v57, %v432_v51  ;;  %v2412_v32 = vstv %s1824_s6 }
 0x275   :  { %v250_v7 = vsel %vm105_vm0, %v249_v58, 0.0  ;;  %3199 = vst [vmem:[#allocation20_spill] sm:$0xff] %v2412_v32  ;;  %v2414_v47 = vstv %s1839_s7  ;;  %v2420_v57 = vstv %s1854_s8 }
 0x276   :  { %v282_v12 = vmul.f32 %v2375_v42, %v250_v7  ;;  %v358_v17 = vmul.f32 %v2381_v55, %v250_v7  ;;  %v434_v18 = vmul.f32 %v2383_v56, %v250_v7  ;;  %3200 = vst [vmem:[#allocation21_spill] sm:$0xff] %v2414_v47  ;;  %3201 = vst [vmem:[#allocation22_spill] sm:$0xff] %v2420_v57 }
 0x278   :  { %v304_v15 = vadd.f32 %v303_v0, %v282_v12  ;;  %v380_v22 = vadd.f32 %v379_v1, %v358_v17  ;;  %v456_v28 = vadd.f32 %v455_v11, %v434_v18  ;;  %v252_v21 = vpop.permute.xlu1 %251  ;;  %v2430_v11 = vstv %s1825_s11 }
 0x279   :  { %v253_v41 = vsel %vm109_vm1, %v252_v21, 0.0  ;;  %3202 = vst [vmem:[#allocation23_spill] sm:$0xff] %v2430_v11  ;;  %v2432_v12 = vstv %s1827_s9  ;;  %v2434_v17 = vstv %s1842_s10  ;;  %v2446_v21 = vstv %s1841_s15 }
 0x27a   :  { %v305_v33 = vadd.f32 %v304_v15, %v284_v19  ;;  %v381_v34 = vadd.f32 %v380_v22, %v360_v20  ;;  %v457_v38 = vadd.f32 %v456_v28, %v436_v30  ;;  %v286_v53 = vmul.f32 %v2404_v40, %v253_v41  ;;  %3203 = vst [vmem:[#allocation24_spill] sm:$0xff] %v2432_v12 }
 0x27b   :  { %v362_v54 = vmul.f32 %v2406_v37, %v253_v41  ;;  %v438_v58 = vmul.f32 %v2410_v44, %v253_v41  ;;  %3204 = vst [vmem:[#allocation25_spill] sm:$0xff] %v2434_v17  ;;  %v2436_v20 = vstv %s1840_s12  ;;  %v2438_v15 = vstv %s1855_s13  ;;  %3208 = vst [vmem:[#allocation29_spill] sm:$0xff] %v2446_v21 }
 0x27c   :  { %v255_v39 = vpop.permute.xlu1 %254  ;;  %v306_v18 = vadd.f32 %v305_v33, %v286_v53  ;;  %3205 = vst [vmem:[#allocation26_spill] sm:$0xff] %v2436_v20  ;;  %3206 = vst [vmem:[#allocation27_spill] sm:$0xff] %v2438_v15  ;;  %v2444_v30 = vstv %s1826_s14 }
 0x27d   :  { %v256_v51 = vsel %vm243_vm3, %v255_v39, 0.0  ;;  %v382_v19 = vadd.f32 %v381_v34, %v362_v54  ;;  %v458_v22 = vadd.f32 %v457_v38, %v438_v58  ;;  %3207 = vst [vmem:[#allocation28_spill] sm:$0xff] %v2444_v30  ;;  %v2448_v39 = vstv %s1856_s16 }
 0x27e   :  { %v288_v0 = vmul.f32 %v2412_v32, %v256_v51  ;;  %v364_v1 = vmul.f32 %v2414_v47, %v256_v51  ;;  %v440_v7 = vmul.f32 %v2420_v57, %v256_v51  ;;  %3209 = vst [vmem:[#allocation30_spill] sm:$0xff] %v2448_v39 }
 0x280   :  { %v307_v33 = vadd.f32 %v306_v18, %v288_v0  ;;  %v383_v34 = vadd.f32 %v382_v19, %v364_v1  ;;  %v459_v38 = vadd.f32 %v458_v22, %v440_v7  ;;  %v2462_v1 = vstv %s2422_s17 }
 0x281   :  { %3210 = vst [vmem:[#allocation31_spill] sm:$0xff] %v2462_v1 }
 0x2b7   :  { %v258_v28 = vpop.permute.xlu0 %257  ;;  %v261_v41 = vpop.permute.xlu1 %260 }
 0x2b8   :  { %v259_v51 = vsel %vm233_vm2, %v258_v28, 0.0  ;;  %v262_v53 = vsel %vm105_vm0, %v261_v41, 0.0 }
 0x2b9   :  { %v290_v54 = vmul.f32 %v2430_v11, %v259_v51  ;;  %v366_v58 = vmul.f32 %v2436_v20, %v259_v51  ;;  %v442_v57 = vmul.f32 %v2438_v15, %v259_v51  ;;  %v292_v47 = vmul.f32 %v2444_v30, %v262_v53 }
 0x2ba   :  { %v368_v0 = vmul.f32 %v2446_v21, %v262_v53  ;;  %v444_v7 = vmul.f32 %v2448_v39, %v262_v53  ;;  %v2466_v11 = vstv %s2427_s18  ;;  %v294_v21 = vmul.f32 %v2432_v12, %v2275_v43 }
 0x2bb   :  { %v308_v18 = vadd.f32 %v307_v33, %v290_v54  ;;  %v384_v19 = vadd.f32 %v383_v34, %v366_v58  ;;  %v460_v28 = vadd.f32 %v459_v38, %v442_v57  ;;  %v264_v22 = vpop.permute.xlu0 %263  ;;  %v267_v41 = vpop.permute.xlu1 %266  ;;  %v370_v33 = vmul.f32 %v2434_v17, %v2275_v43 }
 0x2bc   :  { %v265_v51 = vsel %vm109_vm1, %v264_v22, 0.0  ;;  %v446_v53 = vmul.f32 %v2462_v1, %v2275_v43  ;;  %v2477_v38 = vstv %s2440_s19  ;;  %v2480_v58 = vstv %s2442_s20 }
 0x2bd   :  { %v309_v54 = vadd.f32 %v308_v18, %v292_v47  ;;  %v385_v34 = vadd.f32 %v384_v19, %v368_v0  ;;  %v461_v57 = vadd.f32 %v460_v28, %v444_v7  ;;  %3211 = vst [vmem:[#allocation32_spill] sm:$0xff] %v2477_v38  ;;  %3212 = vst [vmem:[#allocation33_spill] sm:$0xff] %v2480_v58  ;;  %v268_v22 = vsel %vm243_vm3, %v267_v41, 0.0 }
 0x2be   :  { %v296_v39 = vmul.f32 %v2466_v11, %v265_v51  ;;  %v2486_v20 = vstv %s2454_s1  ;;  %v372_v47 = vmul.f32 %v2477_v38, %v265_v51  ;;  %v298_v0 = vmul.f32 %v2480_v58, %v268_v22 }
 0x2bf   :  { %v310_v30 = vadd.f32 %v309_v54, %v294_v21  ;;  %v386_v12 = vadd.f32 %v385_v34, %v370_v33  ;;  %v462_v15 = vadd.f32 %v461_v57, %v446_v53  ;;  %3213 = vst [vmem:[#allocation34_spill] sm:$0xff] %v2486_v20  ;;  %v2490_v43 = vstv %s1844_s23  ;;  %s1860_s23 = sld [smem:[#allocation6 + $0x36]] }
 0x2c0   :  { %3214 = vst [vmem:[#allocation35_spill] sm:$0xff] %v2490_v43  ;;  %v448_v19 = vmul.f32 %v2486_v20, %v265_v51  ;;  %v2495_v41 = vstv %s1859_s24  ;;  %v374_v21 = vmul.f32 %v2490_v43, %v268_v22  ;;  %s1861_s24 = sld [smem:[#allocation6 + $0x37]] }
 0x2c1   :  { %v311_v18 = vadd.f32 %v310_v30, %v296_v39  ;;  %v387_v7 = vadd.f32 %v386_v12, %v372_v47  ;;  %3215 = vst [vmem:[#allocation36_spill] sm:$0xff] %v2495_v41  ;;  %v450_v34 = vmul.f32 %v2495_v41, %v268_v22 }
 0x2c2   :  { %v463_v54 = vadd.f32 %v462_v15, %v448_v19 }
 0x2c3   :  { %v2493_v28 = vadd.f32 %v311_v18, %v298_v0  ;;  %v2502_v30 = vadd.f32 %v387_v7, %v374_v21 }
 0x2c4   :  { %v2505_v39 = vadd.f32 %v463_v54, %v450_v34 }
 0x2c5   :  { %313 = vadd.xlane.f32.xlu0 %v2493_v28  ;;  %v322_v33 = vmul.f32 %v2493_v28, %v2493_v28  ;;  %v398_v12 = vmul.f32 %v2502_v30, %v2502_v30 }
 0x2c6   :  { %v474_v51 = vmul.f32 %v2505_v39, %v2505_v39 }
 0x2c7   :  { %323 = vadd.xlane.f32.xlu1 %v322_v33 }
 0x2c9   :  { %389 = vadd.xlane.f32.xlu0 %v2502_v30 }
 0x2cb   :  { %465 = vadd.xlane.f32.xlu1 %v2505_v39 }
 0x2cd   :  { %399 = vadd.xlane.f32.xlu0 %v398_v12 }
 0x2d1   :  { %475 = vadd.xlane.f32.xlu0 %v474_v51 }
 0x352   :  { %v314_v15 = vpop.xlane.xlu0 %313 }
 0x353   :  { %v315_v57 = vrot.slane %v314_v15, 4 }
 0x354   :  { %v324_v53 = vpop.xlane.xlu1 %323 }
 0x355   :  { %v316_v22 = vadd.f32 %v315_v57, %v314_v15  ;;  %v325_v47 = vrot.slane %v324_v53, 4 }
 0x356   :  { %v390_v12 = vpop.xlane.xlu0 %389 }
 0x357   :  { %v326_v0 = vadd.f32 %v325_v47, %v324_v53  ;;  %v317_v18 = vrot.slane %v316_v22, 2  ;;  %v391_v51 = vrot.slane %v390_v12, 4 }
 0x359   :  { %v318_v19 = vadd.f32 %v317_v18, %v316_v22  ;;  %v327_v7 = vrot.slane %v326_v0, 2  ;;  %v392_v15 = vadd.f32 %v391_v51, %v390_v12 }
 0x35a   :  { %v400_v43 = vpop.xlane.xlu0 %399 }
 0x35b   :  { %v319_v21 = vrot.slane %v318_v19, 1  ;;  %v328_v33 = vadd.f32 %v327_v7, %v326_v0  ;;  %v401_v20 = vrot.slane %v400_v43, 4  ;;  %v393_v53 = vrot.slane %v392_v15, 2 }
 0x35d   :  { %v320_v54 = vadd.f32 %v319_v21, %v318_v19  ;;  %v329_v34 = vrot.slane %v328_v33, 1  ;;  %v402_v57 = vadd.f32 %v401_v20, %v400_v43  ;;  %v394_v0 = vadd.f32 %v393_v53, %v392_v15 }
 0x35e   :  { %v476_v12 = vpop.xlane.xlu0 %475 }
 0x35f   :  { %1887 = vpush %v320_v54  ;;  %v330_v41 = vadd.f32 %v329_v34, %v328_v33  ;;  %v403_v47 = vrot.slane %v402_v57, 2  ;;  %v466_v34 = vpop.xlane.xlu1 %465 }
 0x360   :  { %v467_v43 = vrot.slane %v466_v34, 4 }
 0x361   :  { %1889 = vpush %v330_v41  ;;  %v404_v18 = vadd.f32 %v403_v47, %v402_v57  ;;  %v395_v41 = vrot.slane %v394_v0, 1 }
 0x362   :  { %v468_v53 = vadd.f32 %v467_v43, %v466_v34 }
 0x363   :  { %v405_v19 = vrot.slane %v404_v18, 1  ;;  %v396_v21 = vadd.f32 %v395_v41, %v394_v0 }
 0x365   :  { %v406_v33 = vadd.f32 %v405_v19, %v404_v18 }
 0x390   :  { %s1888_s0 = spop %1887 }
 0x391   :  { %s332_s27 = smul.f32 0.0009765625, %s1888_s0  ;;  %s1862_s0 = sld [smem:[#allocation6 + $0x38]] }
 0x392   :  { %s1890_s28 = spop %1889 }
 0x393   :  { %s334_s29 = smul.f32 %s332_s27, %s332_s27  ;;  %v336_v54 = vstv %s332_s27  ;;  %s1863_s27 = sld [smem:[#allocation6 + $0x39]] }
 0x394   :  { %s333_s30 = smul.f32 0.0009765625, %s1890_s28  ;;  %v337_v20 = vsub.f32 %v2493_v28, %v336_v54  ;;  %v469_v28 = vrot.slane %v468_v53, 2  ;;  %s1864_s28 = sld [smem:[#allocation6 + $0x3a]] }
 0x396   :  { %s335_s3 = ssub.f32 %s333_s30, %s334_s29  ;;  %v470_v41 = vadd.f32 %v469_v28, %v468_v53  ;;  %s1865_s29 = sld [smem:[#allocation6 + $0x3b]] }
 0x397   :  { %s1866_s30 = sld [smem:[#allocation6 + $0x3c]] }
 0x398   :  { %s338_s4 = sadd.f32 1e-05, %s335_s3  ;;  %s1867_s3 = sld [smem:[#allocation6 + $0x3d]] }
 0x39a   :  { %v339_v22 = vstv %s338_s4  ;;  %s1868_s4 = sld [smem:[#allocation6 + $0x3e]] }
 0x39b   :  { %2050 = vrsqrt.f32 %v339_v22  ;;  %v477_v22 = vrot.slane %v476_v12, 4 }
 0x39d   :  { %v478_v47 = vadd.f32 %v477_v22, %v476_v12 }
 0x39f   :  { %v479_v18 = vrot.slane %v478_v47, 2 }
 0x3a1   :  { %v480_v19 = vadd.f32 %v479_v18, %v478_v47 }
 0x3a5   :  { %v2051_v7 = vpop.eup %2050 }
 0x3a6   :  { %1891 = vpush %v2051_v7  ;;  %v471_v7 = vrot.slane %v470_v41, 1 }
 0x3a7   :  { %1893 = vpush %v396_v21  ;;  %v481_v21 = vrot.slane %v480_v19, 1 }
 0x3a8   :  { %1895 = vpush %v406_v33  ;;  %v472_v54 = vadd.f32 %v471_v7, %v470_v41 }
 0x3d7   :  { %s1892_s5 = spop %1891 }
 0x3d8   :  { %v342_v51 = vstv %s1892_s5  ;;  %s1894_s6 = spop %1893 }
 0x3d9   :  { %v343_v15 = vmul.f32 %v342_v51, %v337_v20  ;;  %s408_s7 = smul.f32 0.0009765625, %s1894_s6  ;;  %s1896_s8 = spop %1895  ;;  %v482_v20 = vadd.f32 %v481_v21, %v480_v19  ;;  %v2521_v19 = vstv %s1860_s23  ;;  %v2525_v21 = vstv %s1861_s24 }
 0x3da   :  { %s409_s9 = smul.f32 0.0009765625, %s1896_s8  ;;  %3216 = vst [vmem:[#allocation37_spill] sm:$0xff] %v2521_v19  ;;  %3217 = vst [vmem:[#allocation38_spill] sm:$0xff] %v2525_v21 }
 0x3db   :  { %v344_v57 = vmax.f32 %v343_v15, 0.0  ;;  %s410_s10 = smul.f32 %s408_s7, %s408_s7  ;;  %v412_v34 = vstv %s408_s7 }
 0x3dc   :  { %v413_v12 = vsub.f32 %v2502_v30, %v412_v34 }
 0x3dd   :  { %s411_s11 = ssub.f32 %s409_s9, %s410_s10  ;;  %500 = vrot.lane.b32.xlu0 %v344_v57, %s2168_s22  ;;  %497 = vrot.lane.b32.xlu1 %v344_v57, %s2167_s21 }
 0x3df   :  { %s414_s12 = sadd.f32 1e-05, %s411_s11 }
 0x3e1   :  { %v415_v0 = vstv %s414_s12 }
 0x3e2   :  { %2052 = vrsqrt.f32 %v415_v0 }
 0x3ec   :  { %v2053_v33 = vpop.eup %2052 }
 0x3ed   :  { %1897 = vpush %v2053_v33 }
 0x3ee   :  { %1899 = vpush %v472_v54  ;;  %v518_v54 = vmul.f32 %v2525_v21, %v344_v57 }
 0x3ef   :  { %1901 = vpush %v482_v20  ;;  %v2529_v20 = vstv %s1862_s0 }
 0x3f0   :  { %3218 = vst [vmem:[#allocation39_spill] sm:$0xff] %v2529_v20 }
 0x41e   :  { %s1898_s13 = spop %1897 }
 0x41f   :  { %v418_v43 = vstv %s1898_s13  ;;  %s1900_s14 = spop %1899 }
 0x420   :  { %v419_v51 = vmul.f32 %v418_v43, %v413_v12  ;;  %s484_s15 = smul.f32 0.0009765625, %s1900_s14  ;;  %s1902_s16 = spop %1901  ;;  %v2533_v43 = vstv %s1863_s27 }
 0x421   :  { %s485_s17 = smul.f32 0.0009765625, %s1902_s16  ;;  %3219 = vst [vmem:[#allocation40_spill] sm:$0xff] %v2533_v43 }
 0x422   :  { %v420_v22 = vmax.f32 %v419_v51, 0.0  ;;  %s486_s18 = smul.f32 %s484_s15, %s484_s15  ;;  %v488_v30 = vstv %s484_s15 }
 0x423   :  { %v489_v47 = vsub.f32 %v2505_v39, %v488_v30 }
 0x424   :  { %s487_s19 = ssub.f32 %s485_s17, %s486_s18  ;;  %503 = vrot.lane.b32.xlu1 %v420_v22, %s2167_s21 }
 0x426   :  { %s490_s20 = sadd.f32 1e-05, %s487_s19 }
 0x428   :  { %v491_v15 = vstv %s490_s20  ;;  %506 = vrot.lane.b32.xlu1 %v420_v22, %s2168_s22 }
 0x429   :  { %2054 = vrsqrt.f32 %v491_v15 }
 0x433   :  { %v2055_v53 = vpop.eup %2054 }
 0x434   :  { %1903 = vpush %v2055_v53  ;;  %v2536_v53 = vstv %s1864_s28 }
 0x435   :  { %3220 = vst [vmem:[#allocation41_spill] sm:$0xff] %v2536_v53  ;;  %v524_v57 = vmul.f32 %v2536_v53, %v420_v22 }
 0x44f   :  { %v498_v41 = vpop.permute.xlu1 %497  ;;  %v501_v39 = vpop.permute.xlu0 %500 }
 0x450   :  { %v499_v7 = vsel %vm233_vm2, %v498_v41, 0.0  ;;  %v502_v34 = vsel %vm243_vm3, %v501_v39, 0.0  ;;  %v2542_v39 = vstv %s1865_s29 }
 0x451   :  { %v516_v33 = vmul.f32 %v2521_v19, %v499_v7  ;;  %v520_v51 = vmul.f32 %v2529_v20, %v502_v34  ;;  %3221 = vst [vmem:[#allocation42_spill] sm:$0xff] %v2542_v39  ;;  %v2547_v34 = vstv %s1866_s30 }
 0x452   :  { %3222 = vst [vmem:[#allocation43_spill] sm:$0xff] %v2547_v34 }
 0x453   :  { %v533_v12 = vadd.f32 %v518_v54, %v516_v33 }
 0x465   :  { %s1904_s1 = spop %1903 }
 0x466   :  { %v494_v28 = vstv %s1904_s1 }
 0x467   :  { %v495_v0 = vmul.f32 %v494_v28, %v489_v47  ;;  %v534_v47 = vadd.f32 %v533_v12, %v520_v51 }
 0x469   :  { %v496_v18 = vmax.f32 %v495_v0, 0.0 }
 0x46b   :  { %512 = vrot.lane.b32.xlu1 %v496_v18, %s2168_s22  ;;  %509 = vrot.lane.b32.xlu0 %v496_v18, %s2167_s21 }
 0x496   :  { %v504_v15 = vpop.permute.xlu1 %503 }
 0x497   :  { %v505_v30 = vsel %vm233_vm2, %v504_v15, 0.0  ;;  %v2549_v15 = vstv %s1867_s3 }
 0x498   :  { %v522_v28 = vmul.f32 %v2533_v43, %v505_v30 }
 0x49a   :  { %v535_v0 = vadd.f32 %v534_v47, %v522_v28  ;;  %v507_v7 = vpop.permute.xlu1 %506  ;;  %v2554_v28 = vstv %s1868_s4 }
 0x49b   :  { %v508_v33 = vsel %vm243_vm3, %v507_v7, 0.0 }
 0x49c   :  { %v536_v41 = vadd.f32 %v535_v0, %v524_v57  ;;  %v526_v54 = vmul.f32 %v2542_v39, %v508_v33  ;;  %v530_v0 = vmul.f32 %v2549_v15, %v496_v18 }
 0x49e   :  { %v537_v30 = vadd.f32 %v536_v41, %v526_v54 }
 0x4dd   :  { %v510_v12 = vpop.permute.xlu0 %509  ;;  %v513_v51 = vpop.permute.xlu1 %512 }
 0x4de   :  { %v511_v22 = vsel %vm233_vm2, %v510_v12, 0.0  ;;  %v514_v57 = vsel %vm243_vm3, %v513_v51, 0.0 }
 0x4df   :  { %v528_v47 = vmul.f32 %v2547_v34, %v511_v22  ;;  %v532_v33 = vmul.f32 %v2554_v28, %v514_v57  ;;  %v2100_v57 = vld [vmem:[#allocation2] sm:$0xff] }
 0x4e1   :  { %v538_v7 = vadd.f32 %v537_v30, %v528_v47 }
 0x4e3   :  { %v539_v39 = vadd.f32 %v538_v7, %v530_v0 }
 0x4e5   :  { %v540_v53 = vadd.f32 %v539_v39, %v532_v33 }
 0x4e7   :  { %541 = vadd.xlane.f32.xlu0 %v540_v53  ;;  %v550_v43 = vmul.f32 %v540_v53, %v540_v53 }
 0x4e9   :  { %551 = vadd.xlane.f32.xlu1 %v550_v43 }
 0x574   :  { %v542_v20 = vpop.xlane.xlu0 %541 }
 0x575   :  { %v543_v12 = vrot.slane %v542_v20, 4 }
 0x576   :  { %v552_v41 = vpop.xlane.xlu1 %551 }
 0x577   :  { %v544_v54 = vadd.f32 %v543_v12, %v542_v20  ;;  %v553_v22 = vrot.slane %v552_v41, 4 }
 0x579   :  { %v554_v34 = vadd.f32 %v553_v22, %v552_v41  ;;  %v545_v21 = vrot.slane %v544_v54, 2 }
 0x57b   :  { %v546_v19 = vadd.f32 %v545_v21, %v544_v54  ;;  %v555_v58 = vrot.slane %v554_v34, 2 }
 0x57d   :  { %v547_v51 = vrot.slane %v546_v19, 1  ;;  %v556_v38 = vadd.f32 %v555_v58, %v554_v34 }
 0x57f   :  { %v548_v18 = vadd.f32 %v547_v51, %v546_v19  ;;  %v557_v30 = vrot.slane %v556_v38, 1 }
 0x581   :  { %1905 = vpush %v548_v18  ;;  %v558_v47 = vadd.f32 %v557_v30, %v556_v38 }
 0x583   :  { %1907 = vpush %v558_v47 }
 0x5b2   :  { %s1906_s5 = spop %1905 }
 0x5b3   :  { %s560_s6 = smul.f32 0.0009765625, %s1906_s5 }
 0x5b4   :  { %s1908_s7 = spop %1907 }
 0x5b5   :  { %s562_s8 = smul.f32 %s560_s6, %s560_s6  ;;  %v564_v21 = vstv %s560_s6 }
 0x5b6   :  { %s561_s9 = smul.f32 0.0009765625, %s1908_s7  ;;  %v565_v39 = vsub.f32 %v540_v53, %v564_v21 }
 0x5b8   :  { %s563_s10 = ssub.f32 %s561_s9, %s562_s8 }
 0x5ba   :  { %s566_s11 = sadd.f32 1e-05, %s563_s10 }
 0x5bc   :  { %v567_v20 = vstv %s566_s11 }
 0x5bd   :  { %2056 = vrsqrt.f32 %v567_v20 }
 0x5c7   :  { %v2057_v43 = vpop.eup %2056 }
 0x5c8   :  { %1909 = vpush %v2057_v43 }
 0x5f9   :  { %s1910_s12 = spop %1909 }
 0x5fa   :  { %v570_v58 = vstv %s1910_s12 }
 0x5fb   :  { %v571_v19 = vmul.f32 %v570_v58, %v565_v39 }
 0x5fd   :  { %v572_v34 = vmax.f32 %v571_v19, 0.0 }
 0x5ff   :  { %v573_v38 = vadd.f32 %v2100_v57, %v572_v34 }
 0x601   :  { %v2560_v0 = vmax.f32 %v573_v38, 0.0 }
 0x603   :  { %578 = vrot.lane.b32.xlu1 %v2560_v0, %s2166_s26  ;;  %575 = vrot.lane.b32.xlu0 %v2560_v0, %s2165_s25  ;;  %v582_v54 = vmul.f32 %v2560_v0, %v2211_v6  ;;  %v619_v47 = vmul.f32 %v2560_v0, %v2209_v5  ;;  %v656_v21 = vmul.f32 %v2560_v0, %v2236_v24 }
 0x675   :  { %v579_v7 = vpop.permute.xlu1 %578  ;;  %v576_v33 = vpop.permute.xlu0 %575 }
 0x676   :  { %v580_v12 = vsel %vm109_vm1, %v579_v7, 0.0  ;;  %v577_v53 = vsel %vm105_vm0, %v576_v33, 0.0 }
 0x677   :  { %v581_v41 = vmul.f32 %v577_v53, %v2205_v3  ;;  %v618_v22 = vmul.f32 %v577_v53, %v2207_v4  ;;  %v583_v51 = vmul.f32 %v580_v12, %v2220_v13  ;;  %v655_v18 = vmul.f32 %v577_v53, %v2234_v23 }
 0x678   :  { %v620_v39 = vmul.f32 %v580_v12, %v2222_v14  ;;  %v657_v34 = vmul.f32 %v580_v12, %v2240_v26 }
 0x679   :  { %v584_v30 = vadd.f32 %v582_v54, %v581_v41  ;;  %v621_v43 = vadd.f32 %v619_v47, %v618_v22  ;;  %v658_v19 = vadd.f32 %v656_v21, %v655_v18 }
 0x67b   :  { %v2578_v20 = vadd.f32 %v584_v30, %v583_v51  ;;  %v2587_v57 = vadd.f32 %v621_v43, %v620_v39  ;;  %v2590_v38 = vadd.f32 %v658_v19, %v657_v34 }
 0x67d   :  { %586 = vadd.xlane.f32.xlu0 %v2578_v20  ;;  %v595_v58 = vmul.f32 %v2578_v20, %v2578_v20  ;;  %v632_v7 = vmul.f32 %v2587_v57, %v2587_v57  ;;  %v669_v33 = vmul.f32 %v2590_v38, %v2590_v38 }
 0x67f   :  { %596 = vadd.xlane.f32.xlu1 %v595_v58 }
 0x681   :  { %623 = vadd.xlane.f32.xlu0 %v2587_v57 }
 0x683   :  { %660 = vadd.xlane.f32.xlu1 %v2590_v38 }
 0x685   :  { %633 = vadd.xlane.f32.xlu0 %v632_v7 }
 0x689   :  { %670 = vadd.xlane.f32.xlu0 %v669_v33 }
 0x70a   :  { %v587_v53 = vpop.xlane.xlu0 %586 }
 0x70b   :  { %v588_v41 = vrot.slane %v587_v53, 4 }
 0x70c   :  { %v597_v12 = vpop.xlane.xlu1 %596 }
 0x70d   :  { %v589_v54 = vadd.f32 %v588_v41, %v587_v53  ;;  %v598_v22 = vrot.slane %v597_v12, 4 }
 0x70e   :  { %v624_v34 = vpop.xlane.xlu0 %623 }
 0x70f   :  { %v599_v51 = vadd.f32 %v598_v22, %v597_v12  ;;  %v590_v18 = vrot.slane %v589_v54, 2  ;;  %v625_v33 = vrot.slane %v624_v34, 4 }
 0x711   :  { %v591_v30 = vadd.f32 %v590_v18, %v589_v54  ;;  %v600_v47 = vrot.slane %v599_v51, 2  ;;  %v626_v53 = vadd.f32 %v625_v33, %v624_v34 }
 0x712   :  { %v634_v7 = vpop.xlane.xlu0 %633 }
 0x713   :  { %v592_v43 = vrot.slane %v591_v30, 1  ;;  %v601_v21 = vadd.f32 %v600_v47, %v599_v51  ;;  %v635_v26 = vrot.slane %v634_v7, 4  ;;  %v627_v12 = vrot.slane %v626_v53, 2 }
 0x715   :  { %v593_v39 = vadd.f32 %v592_v43, %v591_v30  ;;  %v602_v58 = vrot.slane %v601_v21, 1  ;;  %v636_v41 = vadd.f32 %v635_v26, %v634_v7  ;;  %v628_v51 = vadd.f32 %v627_v12, %v626_v53 }
 0x716   :  { %v671_v34 = vpop.xlane.xlu0 %670 }
 0x717   :  { %1911 = vpush %v593_v39  ;;  %v603_v19 = vadd.f32 %v602_v58, %v601_v21  ;;  %v637_v54 = vrot.slane %v636_v41, 2  ;;  %v629_v30 = vrot.slane %v628_v51, 1 }
 0x719   :  { %1913 = vpush %v603_v19  ;;  %v638_v18 = vadd.f32 %v637_v54, %v636_v41  ;;  %v630_v21 = vadd.f32 %v629_v30, %v628_v51  ;;  %v661_v19 = vpop.xlane.xlu1 %660 }
 0x71a   :  { %v662_v7 = vrot.slane %v661_v19, 4 }
 0x71b   :  { %v639_v47 = vrot.slane %v638_v18, 1 }
 0x71c   :  { %v663_v12 = vadd.f32 %v662_v7, %v661_v19 }
 0x71d   :  { %v640_v39 = vadd.f32 %v639_v47, %v638_v18 }
 0x748   :  { %s1912_s13 = spop %1911 }
 0x749   :  { %s605_s14 = smul.f32 0.0009765625, %s1912_s13 }
 0x74a   :  { %s1914_s16 = spop %1913 }
 0x74b   :  { %s607_s15 = smul.f32 %s605_s14, %s605_s14  ;;  %v609_v58 = vstv %s605_s14 }
 0x74c   :  { %s606_s17 = smul.f32 0.0009765625, %s1914_s16  ;;  %v610_v26 = vsub.f32 %v2578_v20, %v609_v58  ;;  %v664_v20 = vrot.slane %v663_v12, 2 }
 0x74e   :  { %s608_s18 = ssub.f32 %s606_s17, %s607_s15  ;;  %v665_v30 = vadd.f32 %v664_v20, %v663_v12 }
 0x750   :  { %s611_s19 = sadd.f32 1e-05, %s608_s18 }
 0x752   :  { %v612_v22 = vstv %s611_s19 }
 0x753   :  { %2058 = vrsqrt.f32 %v612_v22  ;;  %v672_v22 = vrot.slane %v671_v34, 4 }
 0x755   :  { %v673_v54 = vadd.f32 %v672_v22, %v671_v34 }
 0x757   :  { %v674_v51 = vrot.slane %v673_v54, 2 }
 0x759   :  { %v675_v47 = vadd.f32 %v674_v51, %v673_v54 }
 0x75d   :  { %v2059_v43 = vpop.eup %2058 }
 0x75e   :  { %1915 = vpush %v2059_v43  ;;  %v666_v43 = vrot.slane %v665_v30, 1 }
 0x75f   :  { %1917 = vpush %v630_v21  ;;  %v676_v21 = vrot.slane %v675_v47, 1 }
 0x760   :  { %1919 = vpush %v640_v39  ;;  %v667_v58 = vadd.f32 %v666_v43, %v665_v30 }
 0x761   :  { %v677_v19 = vadd.f32 %v676_v21, %v675_v47 }
 0x78f   :  { %s1916_s20 = spop %1915 }
 0x790   :  { %v615_v33 = vstv %s1916_s20  ;;  %s1918_s1 = spop %1917 }
 0x791   :  { %v616_v53 = vmul.f32 %v615_v33, %v610_v26  ;;  %s642_s23 = smul.f32 0.0009765625, %s1918_s1  ;;  %s1920_s24 = spop %1919 }
 0x792   :  { %s643_s0 = smul.f32 0.0009765625, %s1920_s24 }
 0x793   :  { %v2598_v41 = vmax.f32 %v616_v53, 0.0  ;;  %s644_s27 = smul.f32 %s642_s23, %s642_s23  ;;  %v646_v34 = vstv %s642_s23 }
 0x794   :  { %v647_v26 = vsub.f32 %v2587_v57, %v646_v34 }
 0x795   :  { %s645_s28 = ssub.f32 %s643_s0, %s644_s27  ;;  %695 = vrot.lane.b32.xlu0 %v2598_v41, %s2165_s25  ;;  %692 = vrot.lane.b32.xlu1 %v2598_v41, %s2167_s21 }
 0x797   :  { %s648_s29 = sadd.f32 1e-05, %s645_s28 }
 0x799   :  { %v649_v18 = vstv %s648_s29  ;;  %698 = vrot.lane.b32.xlu1 %v2598_v41, %s2166_s26 }
 0x79a   :  { %2060 = vrsqrt.f32 %v649_v18 }
 0x79d   :  { %701 = vrot.lane.b32.xlu1 %v2598_v41, %s2168_s22 }
 0x7a4   :  { %v2061_v39 = vpop.eup %2060 }
 0x7a5   :  { %1921 = vpush %v2061_v39 }
 0x7a6   :  { %1923 = vpush %v667_v58 }
 0x7a7   :  { %1925 = vpush %v677_v19 }
 0x7d6   :  { %s1922_s30 = spop %1921 }
 0x7d7   :  { %v652_v7 = vstv %s1922_s30  ;;  %s1924_s3 = spop %1923 }
 0x7d8   :  { %v653_v33 = vmul.f32 %v652_v7, %v647_v26  ;;  %s679_s4 = smul.f32 0.0009765625, %s1924_s3  ;;  %s1926_s5 = spop %1925 }
 0x7d9   :  { %s680_s6 = smul.f32 0.0009765625, %s1926_s5 }
 0x7da   :  { %v2609_v22 = vmax.f32 %v653_v33, 0.0  ;;  %s681_s7 = smul.f32 %s679_s4, %s679_s4  ;;  %v683_v12 = vstv %s679_s4 }
 0x7db   :  { %v684_v54 = vsub.f32 %v2590_v38, %v683_v12 }
 0x7dc   :  { %s682_s8 = ssub.f32 %s680_s6, %s681_s7  ;;  %704 = vrot.lane.b32.xlu0 %v2609_v22, %s2167_s21  ;;  %707 = vrot.lane.b32.xlu1 %v2609_v22, %s2165_s25 }
 0x7de   :  { %s685_s9 = sadd.f32 1e-05, %s682_s8 }
 0x7e0   :  { %v686_v53 = vstv %s685_s9  ;;  %710 = vrot.lane.b32.xlu0 %v2609_v22, %s2166_s26  ;;  %713 = vrot.lane.b32.xlu1 %v2609_v22, %s2168_s22 }
 0x7e1   :  { %2062 = vrsqrt.f32 %v686_v53 }
 0x7eb   :  { %v2063_v57 = vpop.eup %2062 }
 0x7ec   :  { %1927 = vpush %v2063_v57 }
 0x807   :  { %v693_v30 = vpop.permute.xlu1 %692  ;;  %v696_v47 = vpop.permute.xlu0 %695 }
 0x808   :  { %v697_v38 = vsel %vm105_vm0, %v696_v47, 0.0  ;;  %v694_v43 = vsel %vm233_vm2, %v693_v30, 0.0  ;;  %v852_v30 = vmul.f32 %v2598_v41, %v2320_v62 }
 0x809   :  { %v729_v39 = vmul.f32 %v697_v38, %v2286_v45  ;;  %v790_v58 = vmul.f32 %v697_v38, %v2288_v46  ;;  %v728_v19 = vmul.f32 %v694_v43, %v2294_v49  ;;  %v789_v34 = vmul.f32 %v694_v43, %v2296_v50 }
 0x80a   :  { %v851_v26 = vmul.f32 %v697_v38, %v2292_v48  ;;  %v850_v7 = vmul.f32 %v694_v43, %v2300_v52 }
 0x80b   :  { %v699_v21 = vpop.permute.xlu1 %698  ;;  %v743_v33 = vadd.f32 %v729_v39, %v728_v19  ;;  %v804_v53 = vadd.f32 %v790_v58, %v789_v34 }
 0x80c   :  { %v865_v12 = vadd.f32 %v851_v26, %v850_v7 }
 0x80e   :  { %v866_v19 = vadd.f32 %v865_v12, %v852_v30 }
 0x80f   :  { %v702_v57 = vpop.permute.xlu1 %701 }
 0x810   :  { %v703_v47 = vsel %vm243_vm3, %v702_v57, 0.0 }
 0x811   :  { %v732_v34 = vmul.f32 %v703_v47, %v2350_v25  ;;  %v793_v26 = vmul.f32 %v703_v47, %v2353_v27  ;;  %v854_v7 = vmul.f32 %v703_v47, %v2357_v29 }
 0x81d   :  { %s1928_s10 = spop %1927 }
 0x81e   :  { %v689_v20 = vstv %s1928_s10 }
 0x81f   :  { %v690_v51 = vmul.f32 %v689_v20, %v684_v54  ;;  %v700_v54 = vsel %vm109_vm1, %v699_v21, 0.0  ;;  %v730_v20 = vmul.f32 %v2598_v41, %v2312_v59 }
 0x820   :  { %v731_v39 = vmul.f32 %v700_v54, %v2332_v9  ;;  %v792_v58 = vmul.f32 %v700_v54, %v2334_v10  ;;  %v853_v21 = vmul.f32 %v700_v54, %v2341_v16 }
 0x821   :  { %v2620_v18 = vmax.f32 %v690_v51, 0.0  ;;  %v791_v51 = vmul.f32 %v2598_v41, %v2314_v60  ;;  %v744_v38 = vadd.f32 %v743_v33, %v730_v20 }
 0x822   :  { %v867_v62 = vadd.f32 %v866_v19, %v853_v21 }
 0x823   :  { %719 = vrot.lane.b32.xlu1 %v2620_v18, %s2165_s25  ;;  %716 = vrot.lane.b32.xlu0 %v2620_v18, %s2167_s21  ;;  %v805_v43 = vadd.f32 %v804_v53, %v791_v51  ;;  %v745_v60 = vadd.f32 %v744_v38, %v731_v39 }
 0x824   :  { %v868_v54 = vadd.f32 %v867_v62, %v854_v7  ;;  %v796_v62 = vmul.f32 %v2609_v22, %v2389_v63  ;;  %v857_v7 = vmul.f32 %v2609_v22, %v2393_v8 }
 0x825   :  { %v806_v41 = vadd.f32 %v805_v43, %v792_v58  ;;  %v746_v33 = vadd.f32 %v745_v60, %v732_v34 }
 0x827   :  { %725 = vrot.lane.b32.xlu1 %v2620_v18, %s2168_s22  ;;  %722 = vrot.lane.b32.xlu0 %v2620_v18, %s2166_s26  ;;  %v807_v53 = vadd.f32 %v806_v41, %v793_v26 }
 0x84e   :  { %v705_v59 = vpop.permute.xlu0 %704  ;;  %v708_v57 = vpop.permute.xlu1 %707 }
 0x84f   :  { %v706_v20 = vsel %vm233_vm2, %v705_v59, 0.0  ;;  %v709_v12 = vsel %vm105_vm0, %v708_v57, 0.0  ;;  %v735_v59 = vmul.f32 %v2609_v22, %v2386_v61 }
 0x850   :  { %v733_v51 = vmul.f32 %v706_v20, %v2362_v31  ;;  %v794_v30 = vmul.f32 %v706_v20, %v2365_v35  ;;  %v855_v47 = vmul.f32 %v706_v20, %v2368_v36  ;;  %v734_v38 = vmul.f32 %v709_v12, %v2375_v42 }
 0x851   :  { %v795_v43 = vmul.f32 %v709_v12, %v2381_v55  ;;  %v856_v19 = vmul.f32 %v709_v12, %v2383_v56 }
 0x852   :  { %v747_v39 = vadd.f32 %v746_v33, %v733_v51  ;;  %v808_v60 = vadd.f32 %v807_v53, %v794_v30  ;;  %v869_v58 = vadd.f32 %v868_v54, %v855_v47  ;;  %v711_v33 = vpop.permute.xlu0 %710  ;;  %v714_v12 = vpop.permute.xlu1 %713 }
 0x853   :  { %v712_v53 = vsel %vm109_vm1, %v711_v33, 0.0  ;;  %v715_v47 = vsel %vm243_vm3, %v714_v12, 0.0 }
 0x854   :  { %v748_v21 = vadd.f32 %v747_v39, %v734_v38  ;;  %v809_v34 = vadd.f32 %v808_v60, %v795_v43  ;;  %v870_v26 = vadd.f32 %v869_v58, %v856_v19  ;;  %v736_v54 = vmul.f32 %v712_v53, %v2404_v40  ;;  %v3223_v60 = vld [vmem:[#allocation21_spill] sm:$0xff]  ;;  %v3224_v19 = vld [vmem:[#allocation22_spill] sm:$0xff] }
 0x855   :  { %v797_v51 = vmul.f32 %v712_v53, %v2406_v37  ;;  %v858_v30 = vmul.f32 %v712_v53, %v2410_v44  ;;  %v737_v39 = vmul.f32 %v715_v47, %v2412_v32  ;;  %v798_v58 = vmul.f32 %v715_v47, %v3223_v60 }
 0x856   :  { %v749_v41 = vadd.f32 %v748_v21, %v735_v59  ;;  %v810_v57 = vadd.f32 %v809_v34, %v796_v62  ;;  %v871_v20 = vadd.f32 %v870_v26, %v857_v7  ;;  %v859_v59 = vmul.f32 %v715_v47, %v3224_v19  ;;  %v3229_v47 = vld [vmem:[#allocation29_spill] sm:$0xff] }
 0x858   :  { %v750_v38 = vadd.f32 %v749_v41, %v736_v54  ;;  %v811_v43 = vadd.f32 %v810_v57, %v797_v51  ;;  %v872_v22 = vadd.f32 %v871_v20, %v858_v30  ;;  %v3225_v41 = vld [vmem:[#allocation23_spill] sm:$0xff]  ;;  %v3226_v20 = vld [vmem:[#allocation26_spill] sm:$0xff]  ;;  %v3228_v30 = vld [vmem:[#allocation28_spill] sm:$0xff] }
 0x859   :  { %v3227_v54 = vld [vmem:[#allocation27_spill] sm:$0xff] }
 0x85a   :  { %v751_v34 = vadd.f32 %v750_v38, %v737_v39  ;;  %v812_v26 = vadd.f32 %v811_v43, %v798_v58  ;;  %v873_v53 = vadd.f32 %v872_v22, %v859_v59  ;;  %v3230_v39 = vld [vmem:[#allocation30_spill] sm:$0xff]  ;;  %v3231_v59 = vld [vmem:[#allocation24_spill] sm:$0xff] }
 0x895   :  { %v717_v62 = vpop.permute.xlu0 %716  ;;  %v720_v21 = vpop.permute.xlu1 %719 }
 0x896   :  { %v718_v7 = vsel %vm233_vm2, %v717_v62, 0.0  ;;  %v721_v33 = vsel %vm105_vm0, %v720_v21, 0.0  ;;  %v740_v21 = vmul.f32 %v2620_v18, %v3231_v59 }
 0x897   :  { %v738_v57 = vmul.f32 %v718_v7, %v3225_v41  ;;  %v799_v12 = vmul.f32 %v718_v7, %v3226_v20  ;;  %v860_v51 = vmul.f32 %v718_v7, %v3227_v54  ;;  %v739_v60 = vmul.f32 %v721_v33, %v3228_v30 }
 0x898   :  { %v800_v19 = vmul.f32 %v721_v33, %v3229_v47  ;;  %v861_v58 = vmul.f32 %v721_v33, %v3230_v39  ;;  %v801_v7 = vmul.f32 %v2620_v18, %v2434_v17  ;;  %v3233_v39 = vld [vmem:[#allocation33_spill] sm:$0xff] }
 0x899   :  { %v752_v32 = vadd.f32 %v751_v34, %v738_v57  ;;  %v813_v38 = vadd.f32 %v812_v26, %v799_v12  ;;  %v874_v43 = vadd.f32 %v873_v53, %v860_v51  ;;  %v723_v62 = vpop.permute.xlu0 %722  ;;  %v726_v44 = vpop.permute.xlu1 %725  ;;  %v862_v34 = vmul.f32 %v2620_v18, %v2462_v1 }
 0x89a   :  { %v724_v22 = vsel %vm109_vm1, %v723_v62, 0.0  ;;  %v727_v26 = vsel %vm243_vm3, %v726_v44, 0.0  ;;  %v3232_v62 = vld [vmem:[#allocation32_spill] sm:$0xff] }
 0x89b   :  { %v753_v54 = vadd.f32 %v752_v32, %v739_v60  ;;  %v814_v30 = vadd.f32 %v813_v38, %v800_v19  ;;  %v875_v20 = vadd.f32 %v874_v43, %v861_v58  ;;  %v741_v33 = vmul.f32 %v724_v22, %v2466_v11  ;;  %v3234_v32 = vld [vmem:[#allocation34_spill] sm:$0xff]  ;;  %v3235_v43 = vld [vmem:[#allocation35_spill] sm:$0xff]  ;;  %v3236_v44 = vld [vmem:[#allocation36_spill] sm:$0xff] }
 0x89c   :  { %v802_v59 = vmul.f32 %v724_v22, %v3232_v62  ;;  %v742_v47 = vmul.f32 %v727_v26, %v3233_v39  ;;  %v863_v60 = vmul.f32 %v724_v22, %v3234_v32  ;;  %v803_v18 = vmul.f32 %v727_v26, %v3235_v43 }
 0x89d   :  { %v754_v53 = vadd.f32 %v753_v54, %v740_v21  ;;  %v815_v57 = vadd.f32 %v814_v30, %v801_v7  ;;  %v876_v12 = vadd.f32 %v875_v20, %v862_v34  ;;  %v864_v1 = vmul.f32 %v727_v26, %v3236_v44 }
 0x89f   :  { %v755_v51 = vadd.f32 %v754_v53, %v741_v33  ;;  %v816_v17 = vadd.f32 %v815_v57, %v802_v59  ;;  %v877_v38 = vadd.f32 %v876_v12, %v863_v60 }
 0x8a1   :  { %v756_v19 = vadd.f32 %v755_v51, %v742_v47  ;;  %v2708_v54 = vadd.f32 %v816_v17, %v803_v18  ;;  %v2711_v20 = vadd.f32 %v877_v38, %v864_v1 }
 0x8a3   :  { %757 = vadd.xlane.f32.xlu0 %v756_v19  ;;  %v766_v58 = vmul.f32 %v756_v19, %v756_v19  ;;  %v827_v30 = vmul.f32 %v2708_v54, %v2708_v54  ;;  %v888_v47 = vmul.f32 %v2711_v20, %v2711_v20 }
 0x8a5   :  { %767 = vadd.xlane.f32.xlu1 %v766_v58 }
 0x8a7   :  { %818 = vadd.xlane.f32.xlu0 %v2708_v54 }
 0x8a9   :  { %879 = vadd.xlane.f32.xlu1 %v2711_v20 }
 0x8ab   :  { %828 = vadd.xlane.f32.xlu0 %v827_v30 }
 0x8af   :  { %889 = vadd.xlane.f32.xlu0 %v888_v47 }
 0x930   :  { %v758_v22 = vpop.xlane.xlu0 %757 }
 0x931   :  { %v759_v59 = vrot.slane %v758_v22, 4 }
 0x932   :  { %v768_v21 = vpop.xlane.xlu1 %767 }
 0x933   :  { %v760_v7 = vadd.f32 %v759_v59, %v758_v22  ;;  %v769_v17 = vrot.slane %v768_v21, 4 }
 0x934   :  { %v819_v38 = vpop.xlane.xlu0 %818 }
 0x935   :  { %v761_v34 = vrot.slane %v760_v7, 2  ;;  %v770_v26 = vadd.f32 %v769_v17, %v768_v21  ;;  %v820_v58 = vrot.slane %v819_v38, 4 }
 0x937   :  { %v771_v33 = vrot.slane %v770_v26, 2  ;;  %v762_v1 = vadd.f32 %v761_v34, %v760_v7  ;;  %v821_v47 = vadd.f32 %v820_v58, %v819_v38 }
 0x938   :  { %v829_v18 = vpop.xlane.xlu0 %828 }
 0x939   :  { %v763_v53 = vrot.slane %v762_v1, 1  ;;  %v772_v57 = vadd.f32 %v771_v33, %v770_v26  ;;  %v830_v30 = vrot.slane %v829_v18, 4  ;;  %v822_v59 = vrot.slane %v821_v47, 2 }
 0x93b   :  { %v764_v12 = vadd.f32 %v763_v53, %v762_v1  ;;  %v773_v51 = vrot.slane %v772_v57, 1  ;;  %v831_v22 = vadd.f32 %v830_v30, %v829_v18  ;;  %v823_v17 = vadd.f32 %v822_v59, %v821_v47 }
 0x93d   :  { %1929 = vpush %v764_v12  ;;  %v774_v60 = vadd.f32 %v773_v51, %v772_v57  ;;  %v832_v21 = vrot.slane %v831_v22, 2  ;;  %v824_v26 = vrot.slane %v823_v17, 1  ;;  %v880_v51 = vpop.xlane.xlu1 %879 }
 0x93e   :  { %v881_v18 = vrot.slane %v880_v51, 4 }
 0x93f   :  { %1931 = vpush %v774_v60  ;;  %v833_v34 = vadd.f32 %v832_v21, %v831_v22  ;;  %v825_v53 = vadd.f32 %v824_v26, %v823_v17  ;;  %v890_v60 = vpop.xlane.xlu0 %889 }
 0x940   :  { %v891_v30 = vrot.slane %v890_v60, 4  ;;  %v882_v22 = vadd.f32 %v881_v18, %v880_v51 }
 0x941   :  { %v834_v33 = vrot.slane %v833_v34, 1 }
 0x942   :  { %v892_v59 = vadd.f32 %v891_v30, %v890_v60 }
 0x943   :  { %v835_v57 = vadd.f32 %v834_v33, %v833_v34 }
 0x944   :  { %v893_v21 = vrot.slane %v892_v59, 2 }
 0x946   :  { %v894_v26 = vadd.f32 %v893_v21, %v892_v59 }
 0x96e   :  { %s1930_s11 = spop %1929 }
 0x96f   :  { %s776_s12 = smul.f32 0.0009765625, %s1930_s11 }
 0x970   :  { %s1932_s14 = spop %1931 }
 0x971   :  { %s778_s13 = smul.f32 %s776_s12, %s776_s12  ;;  %v780_v12 = vstv %s776_s12 }
 0x972   :  { %s777_s15 = smul.f32 0.0009765625, %s1932_s14  ;;  %v781_v38 = vsub.f32 %v756_v19, %v780_v12  ;;  %v883_v19 = vrot.slane %v882_v22, 2 }
 0x974   :  { %s779_s16 = ssub.f32 %s777_s15, %s778_s13  ;;  %v884_v34 = vadd.f32 %v883_v19, %v882_v22 }
 0x976   :  { %s782_s17 = sadd.f32 1e-05, %s779_s16  ;;  %v885_v33 = vrot.slane %v884_v34, 1 }
 0x978   :  { %v783_v7 = vstv %s782_s17 }
 0x979   :  { %2064 = vrsqrt.f32 %v783_v7 }
 0x983   :  { %v2065_v1 = vpop.eup %2064 }
 0x984   :  { %1933 = vpush %v2065_v1  ;;  %v895_v1 = vrot.slane %v894_v26, 1 }
 0x985   :  { %1935 = vpush %v825_v53 }
 0x986   :  { %1937 = vpush %v835_v57  ;;  %v886_v57 = vadd.f32 %v885_v33, %v884_v34  ;;  %v896_v12 = vadd.f32 %v895_v1, %v894_v26  ;;  %v3237_v33 = vld [vmem:[#allocation37_spill] sm:$0xff] }
 0x9b5   :  { %s1934_s18 = spop %1933 }
 0x9b6   :  { %v786_v58 = vstv %s1934_s18  ;;  %s1936_s19 = spop %1935 }
 0x9b7   :  { %v787_v7 = vmul.f32 %v786_v58, %v781_v38  ;;  %s837_s20 = smul.f32 0.0009765625, %s1936_s19  ;;  %s1938_s1 = spop %1937 }
 0x9b8   :  { %s838_s23 = smul.f32 0.0009765625, %s1938_s1 }
 0x9b9   :  { %v788_v47 = vmax.f32 %v787_v7, 0.0  ;;  %s839_s24 = smul.f32 %s837_s20, %s837_s20  ;;  %v841_v51 = vstv %s837_s20 }
 0x9ba   :  { %v842_v60 = vsub.f32 %v2708_v54, %v841_v51  ;;  %v3239_v51 = vld [vmem:[#allocation39_spill] sm:$0xff] }
 0x9bb   :  { %s840_s0 = ssub.f32 %s838_s23, %s839_s24  ;;  %914 = vrot.lane.b32.xlu0 %v788_v47, %s2168_s22  ;;  %911 = vrot.lane.b32.xlu1 %v788_v47, %s2167_s21 }
 0x9bd   :  { %s843_s27 = sadd.f32 1e-05, %s840_s0 }
 0x9bf   :  { %v844_v17 = vstv %s843_s27 }
 0x9c0   :  { %2066 = vrsqrt.f32 %v844_v17 }
 0x9ca   :  { %v2067_v53 = vpop.eup %2066 }
 0x9cb   :  { %1939 = vpush %v2067_v53  ;;  %v3238_v53 = vld [vmem:[#allocation38_spill] sm:$0xff] }
 0x9cc   :  { %1941 = vpush %v886_v57  ;;  %v930_v57 = vmul.f32 %v788_v47, %v3238_v53  ;;  %v3242_v53 = vld [vmem:[#allocation42_spill] sm:$0xff] }
 0x9cd   :  { %1943 = vpush %v896_v12 }
 0x9fc   :  { %s1940_s28 = spop %1939 }
 0x9fd   :  { %v847_v38 = vstv %s1940_s28  ;;  %s1942_s29 = spop %1941 }
 0x9fe   :  { %v848_v18 = vmul.f32 %v847_v38, %v842_v60  ;;  %s898_s30 = smul.f32 0.0009765625, %s1942_s29  ;;  %s1944_s3 = spop %1943 }
 0x9ff   :  { %s899_s4 = smul.f32 0.0009765625, %s1944_s3 }
 0xa00   :  { %v849_v58 = vmax.f32 %v848_v18, 0.0  ;;  %s900_s5 = smul.f32 %s898_s30, %s898_s30  ;;  %v902_v54 = vstv %s898_s30 }
 0xa01   :  { %v903_v22 = vsub.f32 %v2711_v20, %v902_v54 }
 0xa02   :  { %s901_s6 = ssub.f32 %s899_s4, %s900_s5  ;;  %917 = vrot.lane.b32.xlu1 %v849_v58, %s2167_s21 }
 0xa04   :  { %s904_s7 = sadd.f32 1e-05, %s901_s6 }
 0xa06   :  { %v905_v30 = vstv %s904_s7  ;;  %920 = vrot.lane.b32.xlu1 %v849_v58, %s2168_s22 }
 0xa07   :  { %2068 = vrsqrt.f32 %v905_v30 }
 0xa11   :  { %v2069_v7 = vpop.eup %2068 }
 0xa12   :  { %1945 = vpush %v2069_v7  ;;  %v3240_v7 = vld [vmem:[#allocation40_spill] sm:$0xff] }
 0xa2d   :  { %v912_v17 = vpop.permute.xlu1 %911  ;;  %v915_v26 = vpop.permute.xlu0 %914 }
 0xa2e   :  { %v913_v34 = vsel %vm233_vm2, %v912_v17, 0.0  ;;  %v916_v20 = vsel %vm243_vm3, %v915_v26, 0.0 }
 0xa2f   :  { %v929_v1 = vmul.f32 %v913_v34, %v3237_v33  ;;  %v931_v60 = vmul.f32 %v916_v20, %v3239_v51 }
 0xa31   :  { %v938_v12 = vadd.f32 %v930_v57, %v929_v1 }
 0xa33   :  { %v939_v30 = vadd.f32 %v938_v12, %v931_v60 }
 0xa43   :  { %s1946_s8 = spop %1945 }
 0xa44   :  { %v908_v59 = vstv %s1946_s8 }
 0xa45   :  { %v909_v19 = vmul.f32 %v908_v59, %v903_v22  ;;  %v3241_v22 = vld [vmem:[#allocation41_spill] sm:$0xff] }
 0xa46   :  { %v933_v59 = vmul.f32 %v849_v58, %v3241_v22 }
 0xa47   :  { %v910_v21 = vmax.f32 %v909_v19, 0.0 }
 0xa49   :  { %926 = vrot.lane.b32.xlu1 %v910_v21, %s2168_s22  ;;  %923 = vrot.lane.b32.xlu0 %v910_v21, %s2167_s21  ;;  %v936_v58 = vmul.f32 %v910_v21, %v2549_v15 }
 0xa74   :  { %v918_v38 = vpop.permute.xlu1 %917 }
 0xa75   :  { %v919_v18 = vsel %vm233_vm2, %v918_v38, 0.0  ;;  %v3243_v38 = vld [vmem:[#allocation43_spill] sm:$0xff] }
 0xa76   :  { %v932_v54 = vmul.f32 %v919_v18, %v3240_v7 }
 0xa78   :  { %v940_v19 = vadd.f32 %v939_v30, %v932_v54  ;;  %v921_v34 = vpop.permute.xlu1 %920 }
 0xa79   :  { %v922_v47 = vsel %vm243_vm3, %v921_v34, 0.0 }
 0xa7a   :  { %v941_v17 = vadd.f32 %v940_v19, %v933_v59  ;;  %v934_v26 = vmul.f32 %v922_v47, %v3242_v53 }
 0xa7c   :  { %v942_v51 = vadd.f32 %v941_v17, %v934_v26 }
 0xabb   :  { %v924_v1 = vpop.permute.xlu0 %923  ;;  %v927_v57 = vpop.permute.xlu1 %926 }
 0xabc   :  { %v925_v20 = vsel %vm233_vm2, %v924_v1, 0.0  ;;  %v928_v60 = vsel %vm243_vm3, %v927_v57, 0.0 }
 0xabd   :  { %v935_v12 = vmul.f32 %v925_v20, %v3243_v38  ;;  %v937_v54 = vmul.f32 %v928_v60, %v2554_v28 }
 0xabf   :  { %v943_v18 = vadd.f32 %v942_v51, %v935_v12 }
 0xac1   :  { %v944_v30 = vadd.f32 %v943_v18, %v936_v58 }
 0xac3   :  { %v945_v59 = vadd.f32 %v944_v30, %v937_v54 }
 0xac5   :  { %946 = vadd.xlane.f32.xlu0 %v945_v59  ;;  %v955_v19 = vmul.f32 %v945_v59, %v945_v59 }
 0xac7   :  { %956 = vadd.xlane.f32.xlu1 %v955_v19 }
 0xb52   :  { %v947_v34 = vpop.xlane.xlu0 %946 }
 0xb53   :  { %v948_v47 = vrot.slane %v947_v34, 4 }
 0xb54   :  { %v957_v53 = vpop.xlane.xlu1 %956 }
 0xb55   :  { %v949_v1 = vadd.f32 %v948_v47, %v947_v34  ;;  %v958_v17 = vrot.slane %v957_v53, 4 }
 0xb57   :  { %v950_v26 = vrot.slane %v949_v1, 2  ;;  %v959_v20 = vadd.f32 %v958_v17, %v957_v53 }
 0xb59   :  { %v960_v38 = vrot.slane %v959_v20, 2  ;;  %v951_v22 = vadd.f32 %v950_v26, %v949_v1 }
 0xb5b   :  { %v952_v57 = vrot.slane %v951_v22, 1  ;;  %v961_v7 = vadd.f32 %v960_v38, %v959_v20 }
 0xb5d   :  { %v953_v21 = vadd.f32 %v952_v57, %v951_v22  ;;  %v962_v51 = vrot.slane %v961_v7, 1 }
 0xb5f   :  { %1947 = vpush %v953_v21  ;;  %v963_v12 = vadd.f32 %v962_v51, %v961_v7 }
 0xb61   :  { %1949 = vpush %v963_v12 }
 0xb90   :  { %s1948_s9 = spop %1947 }
 0xb91   :  { %s965_s10 = smul.f32 0.0009765625, %s1948_s9 }
 0xb92   :  { %s1950_s11 = spop %1949 }
 0xb93   :  { %s967_s12 = smul.f32 %s965_s10, %s965_s10  ;;  %v969_v53 = vstv %s965_s10 }
 0xb94   :  { %s966_s13 = smul.f32 0.0009765625, %s1950_s11  ;;  %v970_v18 = vsub.f32 %v945_v59, %v969_v53 }
 0xb96   :  { %s968_s14 = ssub.f32 %s966_s13, %s967_s12 }
 0xb98   :  { %s971_s15 = sadd.f32 1e-05, %s968_s14 }
 0xb9a   :  { %v972_v60 = vstv %s971_s15 }
 0xb9b   :  { %2070 = vrsqrt.f32 %v972_v60 }
 0xba5   :  { %v2071_v58 = vpop.eup %2070 }
 0xba6   :  { %1951 = vpush %v2071_v58 }
 0xbd7   :  { %s1952_s16 = spop %1951 }
 0xbd8   :  { %v975_v38 = vstv %s1952_s16 }
 0xbd9   :  { %v976_v22 = vmul.f32 %v975_v38, %v970_v18  ;;  %v3244_v38 = vld [vmem:[#allocation12_spill] sm:$0xff] }
 0xbdb   :  { %v977_v30 = vmax.f32 %v976_v22, 0.0 }
 0xbdd   :  { %v978_v7 = vadd.f32 %v977_v30, %v2560_v0 }
 0xbdf   :  { %v2748_v54 = vmax.f32 %v978_v7, 0.0 }
 0xbe1   :  { %983 = vrot.lane.b32.xlu1 %v2748_v54, %s2166_s26  ;;  %980 = vrot.lane.b32.xlu0 %v2748_v54, %s2165_s25  ;;  %v987_v0 = vmul.f32 %v2748_v54, %v2211_v6  ;;  %v1024_v57 = vmul.f32 %v2748_v54, %v2209_v5  ;;  %v1061_v12 = vmul.f32 %v2748_v54, %v2236_v24 }
 0xc53   :  { %v984_v19 = vpop.permute.xlu1 %983  ;;  %v981_v34 = vpop.permute.xlu0 %980 }
 0xc54   :  { %v985_v47 = vsel %vm109_vm1, %v984_v19, 0.0  ;;  %v982_v59 = vsel %vm105_vm0, %v981_v34, 0.0 }
 0xc55   :  { %v986_v1 = vmul.f32 %v982_v59, %v2205_v3  ;;  %v1023_v17 = vmul.f32 %v982_v59, %v2207_v4  ;;  %v988_v26 = vmul.f32 %v985_v47, %v2220_v13  ;;  %v1060_v21 = vmul.f32 %v982_v59, %v2234_v23 }
 0xc56   :  { %v1025_v58 = vmul.f32 %v985_v47, %v2222_v14  ;;  %v1062_v22 = vmul.f32 %v985_v47, %v3244_v38 }
 0xc57   :  { %v989_v20 = vadd.f32 %v987_v0, %v986_v1  ;;  %v1026_v51 = vadd.f32 %v1024_v57, %v1023_v17  ;;  %v1063_v53 = vadd.f32 %v1061_v12, %v1060_v21 }
 0xc59   :  { %v990_v60 = vadd.f32 %v989_v20, %v988_v26  ;;  %v2770_v30 = vadd.f32 %v1026_v51, %v1025_v58  ;;  %v2773_v7 = vadd.f32 %v1063_v53, %v1062_v22 }
 0xc5b   :  { %991 = vadd.xlane.f32.xlu0 %v990_v60  ;;  %v1000_v18 = vmul.f32 %v990_v60, %v990_v60  ;;  %v1037_v19 = vmul.f32 %v2770_v30, %v2770_v30  ;;  %v1074_v34 = vmul.f32 %v2773_v7, %v2773_v7 }
 0xc5d   :  { %1001 = vadd.xlane.f32.xlu1 %v1000_v18 }
 0xc5f   :  { %1028 = vadd.xlane.f32.xlu0 %v2770_v30 }
 0xc61   :  { %1065 = vadd.xlane.f32.xlu1 %v2773_v7 }
 0xc63   :  { %1038 = vadd.xlane.f32.xlu0 %v1037_v19 }
 0xc67   :  { %1075 = vadd.xlane.f32.xlu0 %v1074_v34 }
 0xce8   :  { %v992_v59 = vpop.xlane.xlu0 %991 }
 0xce9   :  { %v993_v1 = vrot.slane %v992_v59, 4 }
 0xcea   :  { %v1002_v47 = vpop.xlane.xlu1 %1001 }
 0xceb   :  { %v994_v0 = vadd.f32 %v993_v1, %v992_v59  ;;  %v1003_v17 = vrot.slane %v1002_v47, 4 }
 0xcec   :  { %v1029_v22 = vpop.xlane.xlu0 %1028 }
 0xced   :  { %v995_v26 = vrot.slane %v994_v0, 2  ;;  %v1004_v20 = vadd.f32 %v1003_v17, %v1002_v47  ;;  %v1030_v34 = vrot.slane %v1029_v22, 4 }
 0xcef   :  { %v1005_v57 = vrot.slane %v1004_v20, 2  ;;  %v996_v21 = vadd.f32 %v995_v26, %v994_v0  ;;  %v1031_v59 = vadd.f32 %v1030_v34, %v1029_v22 }
 0xcf0   :  { %v1039_v19 = vpop.xlane.xlu0 %1038 }
 0xcf1   :  { %v997_v51 = vrot.slane %v996_v21, 1  ;;  %v1006_v12 = vadd.f32 %v1005_v57, %v1004_v20  ;;  %v1040_v38 = vrot.slane %v1039_v19, 4  ;;  %v1032_v47 = vrot.slane %v1031_v59, 2 }
 0xcf3   :  { %v998_v58 = vadd.f32 %v997_v51, %v996_v21  ;;  %v1007_v53 = vrot.slane %v1006_v12, 1  ;;  %v1041_v1 = vadd.f32 %v1040_v38, %v1039_v19  ;;  %v1033_v26 = vadd.f32 %v1032_v47, %v1031_v59 }
 0xcf4   :  { %v1076_v22 = vpop.xlane.xlu0 %1075 }
 0xcf5   :  { %1953 = vpush %v998_v58  ;;  %v1008_v18 = vadd.f32 %v1007_v53, %v1006_v12  ;;  %v1042_v0 = vrot.slane %v1041_v1, 2  ;;  %v1034_v57 = vrot.slane %v1033_v26, 1  ;;  %v1077_v14 = vrot.slane %v1076_v22, 4 }
 0xcf7   :  { %1955 = vpush %v1008_v18  ;;  %v1043_v20 = vadd.f32 %v1042_v0, %v1041_v1  ;;  %v1035_v12 = vadd.f32 %v1034_v57, %v1033_v26  ;;  %v1066_v18 = vpop.xlane.xlu1 %1065  ;;  %v1078_v47 = vadd.f32 %v1077_v14, %v1076_v22 }
 0xcf8   :  { %v1067_v19 = vrot.slane %v1066_v18, 4 }
 0xcf9   :  { %v1044_v21 = vrot.slane %v1043_v20, 1  ;;  %v1079_v0 = vrot.slane %v1078_v47, 2 }
 0xcfa   :  { %v1068_v1 = vadd.f32 %v1067_v19, %v1066_v18 }
 0xcfb   :  { %v1045_v58 = vadd.f32 %v1044_v21, %v1043_v20  ;;  %v1080_v14 = vadd.f32 %v1079_v0, %v1078_v47 }
 0xcfd   :  { %v1081_v21 = vrot.slane %v1080_v14, 1 }
 0xd26   :  { %s1954_s17 = spop %1953 }
 0xd27   :  { %s1010_s18 = smul.f32 0.0009765625, %s1954_s17 }
 0xd28   :  { %s1956_s20 = spop %1955 }
 0xd29   :  { %s1012_s19 = smul.f32 %s1010_s18, %s1010_s18  ;;  %v1014_v53 = vstv %s1010_s18 }
 0xd2a   :  { %s1011_s1 = smul.f32 0.0009765625, %s1956_s20  ;;  %v1015_v38 = vsub.f32 %v990_v60, %v1014_v53  ;;  %v1069_v60 = vrot.slane %v1068_v1, 2 }
 0xd2c   :  { %s1013_s23 = ssub.f32 %s1011_s1, %s1012_s19  ;;  %v1070_v20 = vadd.f32 %v1069_v60, %v1068_v1 }
 0xd2e   :  { %s1016_s24 = sadd.f32 1e-05, %s1013_s23  ;;  %v1071_v57 = vrot.slane %v1070_v20, 1 }
 0xd30   :  { %v1017_v17 = vstv %s1016_s24 }
 0xd31   :  { %2072 = vrsqrt.f32 %v1017_v17 }
 0xd3b   :  { %v2073_v51 = vpop.eup %2072 }
 0xd3c   :  { %1957 = vpush %v2073_v51 }
 0xd3d   :  { %1959 = vpush %v1035_v12  ;;  %v1072_v12 = vadd.f32 %v1071_v57, %v1070_v20 }
 0xd3e   :  { %1961 = vpush %v1045_v58  ;;  %v1082_v58 = vadd.f32 %v1081_v21, %v1080_v14 }
 0xd6d   :  { %s1958_s0 = spop %1957 }
 0xd6e   :  { %v1020_v34 = vstv %s1958_s0  ;;  %s1960_s27 = spop %1959 }
 0xd6f   :  { %v1021_v17 = vmul.f32 %v1020_v34, %v1015_v38  ;;  %s1047_s28 = smul.f32 0.0009765625, %s1960_s27  ;;  %s1962_s29 = spop %1961 }
 0xd70   :  { %s1048_s30 = smul.f32 0.0009765625, %s1962_s29 }
 0xd71   :  { %v2780_v59 = vmax.f32 %v1021_v17, 0.0  ;;  %s1049_s3 = smul.f32 %s1047_s28, %s1047_s28  ;;  %v1051_v53 = vstv %s1047_s28 }
 0xd72   :  { %v1052_v18 = vsub.f32 %v2770_v30, %v1051_v53 }
 0xd73   :  { %s1050_s4 = ssub.f32 %s1048_s30, %s1049_s3  ;;  %1100 = vrot.lane.b32.xlu0 %v2780_v59, %s2165_s25  ;;  %1097 = vrot.lane.b32.xlu1 %v2780_v59, %s2167_s21 }
 0xd75   :  { %s1053_s5 = sadd.f32 1e-05, %s1050_s4 }
 0xd77   :  { %v1054_v26 = vstv %s1053_s5  ;;  %1103 = vrot.lane.b32.xlu1 %v2780_v59, %s2166_s26 }
 0xd78   :  { %2074 = vrsqrt.f32 %v1054_v26 }
 0xd7b   :  { %1106 = vrot.lane.b32.xlu1 %v2780_v59, %s2168_s22 }
 0xd82   :  { %v2075_v51 = vpop.eup %2074 }
 0xd83   :  { %1963 = vpush %v2075_v51 }
 0xd84   :  { %1965 = vpush %v1072_v12 }
 0xd85   :  { %1967 = vpush %v1082_v58 }
 0xdb4   :  { %s1964_s6 = spop %1963 }
 0xdb5   :  { %v1057_v22 = vstv %s1964_s6  ;;  %s1966_s7 = spop %1965 }
 0xdb6   :  { %v1058_v38 = vmul.f32 %v1057_v22, %v1052_v18  ;;  %s1084_s8 = smul.f32 0.0009765625, %s1966_s7  ;;  %s1968_s9 = spop %1967 }
 0xdb7   :  { %s1085_s10 = smul.f32 0.0009765625, %s1968_s9 }
 0xdb8   :  { %v2791_v19 = vmax.f32 %v1058_v38, 0.0  ;;  %s1086_s11 = smul.f32 %s1084_s8, %s1084_s8  ;;  %v1088_v17 = vstv %s1084_s8 }
 0xdb9   :  { %v1089_v1 = vsub.f32 %v2773_v7, %v1088_v17 }
 0xdba   :  { %s1087_s12 = ssub.f32 %s1085_s10, %s1086_s11  ;;  %1109 = vrot.lane.b32.xlu0 %v2791_v19, %s2167_s21  ;;  %1112 = vrot.lane.b32.xlu1 %v2791_v19, %s2165_s25 }
 0xdbc   :  { %s1090_s13 = sadd.f32 1e-05, %s1087_s12 }
 0xdbe   :  { %v1091_v34 = vstv %s1090_s13  ;;  %1115 = vrot.lane.b32.xlu0 %v2791_v19, %s2166_s26  ;;  %1118 = vrot.lane.b32.xlu1 %v2791_v19, %s2168_s22 }
 0xdbf   :  { %2076 = vrsqrt.f32 %v1091_v34 }
 0xdc9   :  { %v2077_v30 = vpop.eup %2076 }
 0xdca   :  { %1969 = vpush %v2077_v30 }
 0xde5   :  { %v1098_v26 = vpop.permute.xlu1 %1097  ;;  %v1101_v20 = vpop.permute.xlu0 %1100 }
 0xde6   :  { %v1102_v7 = vsel %vm105_vm0, %v1101_v20, 0.0  ;;  %v1099_v14 = vsel %vm233_vm2, %v1098_v26, 0.0  ;;  %v3247_v20 = vld [vmem:[#allocation17_spill] sm:$0xff] }
 0xde7   :  { %v1134_v21 = vmul.f32 %v1102_v7, %v2286_v45  ;;  %v1195_v51 = vmul.f32 %v1102_v7, %v2288_v46  ;;  %v1133_v12 = vmul.f32 %v1099_v14, %v2294_v49  ;;  %v1194_v58 = vmul.f32 %v1099_v14, %v2296_v50 }
 0xde8   :  { %v1256_v53 = vmul.f32 %v1102_v7, %v2292_v48  ;;  %v1255_v18 = vmul.f32 %v1099_v14, %v2300_v52  ;;  %v1257_v50 = vmul.f32 %v2780_v59, %v3247_v20 }
 0xde9   :  { %v1104_v57 = vpop.permute.xlu1 %1103  ;;  %v1148_v22 = vadd.f32 %v1134_v21, %v1133_v12  ;;  %v1209_v38 = vadd.f32 %v1195_v51, %v1194_v58 }
 0xdea   :  { %v1270_v30 = vadd.f32 %v1256_v53, %v1255_v18  ;;  %v1105_v17 = vsel %vm109_vm1, %v1104_v57, 0.0 }
 0xdeb   :  { %v1136_v51 = vmul.f32 %v1105_v17, %v2332_v9  ;;  %v1197_v12 = vmul.f32 %v1105_v17, %v2334_v10  ;;  %v1258_v57 = vmul.f32 %v1105_v17, %v2341_v16 }
 0xdec   :  { %v1271_v58 = vadd.f32 %v1270_v30, %v1257_v50 }
 0xded   :  { %v1107_v34 = vpop.permute.xlu1 %1106 }
 0xdee   :  { %v1108_v7 = vsel %vm243_vm3, %v1107_v34, 0.0  ;;  %v1272_v20 = vadd.f32 %v1271_v58, %v1258_v57 }
 0xdef   :  { %v1137_v53 = vmul.f32 %v1108_v7, %v2350_v25  ;;  %v1198_v18 = vmul.f32 %v1108_v7, %v2353_v27 }
 0xdfb   :  { %s1970_s14 = spop %1969 }
 0xdfc   :  { %v1094_v47 = vstv %s1970_s14 }
 0xdfd   :  { %v1095_v60 = vmul.f32 %v1094_v47, %v1089_v1  ;;  %v3245_v1 = vld [vmem:[#allocation15_spill] sm:$0xff] }
 0xdfe   :  { %v1135_v47 = vmul.f32 %v2780_v59, %v3245_v1 }
 0xdff   :  { %v2802_v0 = vmax.f32 %v1095_v60, 0.0  ;;  %v3246_v60 = vld [vmem:[#allocation16_spill] sm:$0xff] }
 0xe00   :  { %v1196_v26 = vmul.f32 %v2780_v59, %v3246_v60  ;;  %v1149_v14 = vadd.f32 %v1148_v22, %v1135_v47  ;;  %v1259_v60 = vmul.f32 %v1108_v7, %v2357_v29 }
 0xe01   :  { %1124 = vrot.lane.b32.xlu1 %v2802_v0, %s2165_s25  ;;  %1121 = vrot.lane.b32.xlu0 %v2802_v0, %s2167_s21 }
 0xe02   :  { %v1210_v21 = vadd.f32 %v1209_v38, %v1196_v26  ;;  %v1150_v1 = vadd.f32 %v1149_v14, %v1136_v51  ;;  %v1273_v30 = vadd.f32 %v1272_v20, %v1259_v60  ;;  %v1201_v60 = vmul.f32 %v2791_v19, %v2389_v63 }
 0xe04   :  { %v1211_v59 = vadd.f32 %v1210_v21, %v1197_v12  ;;  %v1151_v22 = vadd.f32 %v1150_v1, %v1137_v53 }
 0xe05   :  { %1130 = vrot.lane.b32.xlu1 %v2802_v0, %s2168_s22  ;;  %1127 = vrot.lane.b32.xlu0 %v2802_v0, %s2166_s26 }
 0xe06   :  { %v1212_v38 = vadd.f32 %v1211_v59, %v1198_v18  ;;  %v1262_v18 = vmul.f32 %v2791_v19, %v2393_v8 }
 0xe2c   :  { %v1110_v52 = vpop.permute.xlu0 %1109  ;;  %v1113_v34 = vpop.permute.xlu1 %1112 }
 0xe2d   :  { %v1111_v47 = vsel %vm233_vm2, %v1110_v52, 0.0  ;;  %v1114_v50 = vsel %vm105_vm0, %v1113_v34, 0.0  ;;  %v1140_v52 = vmul.f32 %v2791_v19, %v2386_v61 }
 0xe2e   :  { %v1138_v17 = vmul.f32 %v1111_v47, %v2362_v31  ;;  %v1199_v26 = vmul.f32 %v1111_v47, %v2365_v35  ;;  %v1260_v7 = vmul.f32 %v1111_v47, %v2368_v36  ;;  %v1139_v14 = vmul.f32 %v1114_v50, %v2375_v42 }
 0xe2f   :  { %v1200_v21 = vmul.f32 %v1114_v50, %v2381_v55  ;;  %v1261_v58 = vmul.f32 %v1114_v50, %v2383_v56 }
 0xe30   :  { %v1152_v51 = vadd.f32 %v1151_v22, %v1138_v17  ;;  %v1213_v1 = vadd.f32 %v1212_v38, %v1199_v26  ;;  %v1274_v12 = vadd.f32 %v1273_v30, %v1260_v7  ;;  %v1116_v22 = vpop.permute.xlu0 %1115  ;;  %v1119_v50 = vpop.permute.xlu1 %1118  ;;  %v3248_v26 = vld [vmem:[#allocation19_spill] sm:$0xff] }
 0xe31   :  { %v1117_v38 = vsel %vm109_vm1, %v1116_v22, 0.0 }
 0xe32   :  { %v1153_v20 = vadd.f32 %v1152_v51, %v1139_v14  ;;  %v1214_v57 = vadd.f32 %v1213_v1, %v1200_v21  ;;  %v1275_v53 = vadd.f32 %v1274_v12, %v1261_v58  ;;  %v1141_v30 = vmul.f32 %v1117_v38, %v2404_v40  ;;  %v3249_v1 = vld [vmem:[#allocation20_spill] sm:$0xff]  ;;  %v3250_v58 = vld [vmem:[#allocation21_spill] sm:$0xff] }
 0xe33   :  { %v1202_v17 = vmul.f32 %v1117_v38, %v2406_v37  ;;  %v1263_v7 = vmul.f32 %v1117_v38, %v3248_v26  ;;  %v1120_v14 = vsel %vm243_vm3, %v1119_v50, 0.0 }
 0xe34   :  { %v1154_v59 = vadd.f32 %v1153_v20, %v1140_v52  ;;  %v1215_v34 = vadd.f32 %v1214_v57, %v1201_v60  ;;  %v1276_v47 = vadd.f32 %v1275_v53, %v1262_v18  ;;  %v1142_v12 = vmul.f32 %v1120_v14, %v3249_v1  ;;  %v3251_v60 = vld [vmem:[#allocation22_spill] sm:$0xff] }
 0xe35   :  { %v1203_v52 = vmul.f32 %v1120_v14, %v3250_v58  ;;  %v1264_v20 = vmul.f32 %v1120_v14, %v3251_v60  ;;  %v3255_v14 = vld [vmem:[#allocation29_spill] sm:$0xff] }
 0xe36   :  { %v1155_v21 = vadd.f32 %v1154_v59, %v1141_v30  ;;  %v1216_v51 = vadd.f32 %v1215_v34, %v1202_v17  ;;  %v1277_v19 = vadd.f32 %v1276_v47, %v1263_v7  ;;  %v3252_v34 = vld [vmem:[#allocation26_spill] sm:$0xff]  ;;  %v3253_v30 = vld [vmem:[#allocation27_spill] sm:$0xff]  ;;  %v3254_v7 = vld [vmem:[#allocation28_spill] sm:$0xff] }
 0xe38   :  { %v1156_v18 = vadd.f32 %v1155_v21, %v1142_v12  ;;  %v1217_v22 = vadd.f32 %v1216_v51, %v1203_v52  ;;  %v1278_v50 = vadd.f32 %v1277_v19, %v1264_v20  ;;  %v3256_v12 = vld [vmem:[#allocation30_spill] sm:$0xff]  ;;  %v3257_v20 = vld [vmem:[#allocation24_spill] sm:$0xff] }
 0xe73   :  { %v1122_v57 = vpop.permute.xlu0 %1121  ;;  %v1125_v53 = vpop.permute.xlu1 %1124 }
 0xe74   :  { %v1123_v37 = vsel %vm233_vm2, %v1122_v57, 0.0  ;;  %v1126_v38 = vsel %vm105_vm0, %v1125_v53, 0.0  ;;  %v1145_v53 = vmul.f32 %v2802_v0, %v3257_v20 }
 0xe75   :  { %v1143_v59 = vmul.f32 %v1123_v37, %v3225_v41  ;;  %v1204_v47 = vmul.f32 %v1123_v37, %v3252_v34  ;;  %v1265_v17 = vmul.f32 %v1123_v37, %v3253_v30  ;;  %v1144_v58 = vmul.f32 %v1126_v38, %v3254_v7  ;;  %v3258_v34 = vld [vmem:[#allocation25_spill] sm:$0xff] }
 0xe76   :  { %v1205_v60 = vmul.f32 %v1126_v38, %v3255_v14  ;;  %v1266_v52 = vmul.f32 %v1126_v38, %v3256_v12  ;;  %v1206_v37 = vmul.f32 %v2802_v0, %v3258_v34  ;;  %v3259_v14 = vld [vmem:[#allocation31_spill] sm:$0xff] }
 0xe77   :  { %v1157_v1 = vadd.f32 %v1156_v18, %v1143_v59  ;;  %v1218_v21 = vadd.f32 %v1217_v22, %v1204_v47  ;;  %v1279_v51 = vadd.f32 %v1278_v50, %v1265_v17  ;;  %v1128_v57 = vpop.permute.xlu0 %1127  ;;  %v1131_v26 = vpop.permute.xlu1 %1130  ;;  %v1267_v18 = vmul.f32 %v2802_v0, %v3259_v14 }
 0xe78   :  { %v1129_v19 = vsel %vm109_vm1, %v1128_v57, 0.0  ;;  %v1132_v22 = vsel %vm243_vm3, %v1131_v26, 0.0 }
 0xe79   :  { %v1158_v30 = vadd.f32 %v1157_v1, %v1144_v58  ;;  %v1219_v7 = vadd.f32 %v1218_v21, %v1205_v60  ;;  %v1280_v41 = vadd.f32 %v1279_v51, %v1266_v52  ;;  %v1146_v38 = vmul.f32 %v1129_v19, %v2466_v11 }
 0xe7a   :  { %v1207_v57 = vmul.f32 %v1129_v19, %v3232_v62  ;;  %v1147_v20 = vmul.f32 %v1132_v22, %v3233_v39  ;;  %v1268_v1 = vmul.f32 %v1129_v19, %v3234_v32  ;;  %v1208_v0 = vmul.f32 %v1132_v22, %v3235_v43 }
 0xe7b   :  { %v1159_v50 = vadd.f32 %v1158_v30, %v1145_v53  ;;  %v1220_v59 = vadd.f32 %v1219_v7, %v1206_v37  ;;  %v1281_v47 = vadd.f32 %v1280_v41, %v1267_v18  ;;  %v1269_v26 = vmul.f32 %v1132_v22, %v3236_v44 }
 0xe7d   :  { %v1160_v17 = vadd.f32 %v1159_v50, %v1146_v38  ;;  %v1221_v34 = vadd.f32 %v1220_v59, %v1207_v57  ;;  %v1282_v60 = vadd.f32 %v1281_v47, %v1268_v1 }
 0xe7f   :  { %v1161_v58 = vadd.f32 %v1160_v17, %v1147_v20  ;;  %v2890_v30 = vadd.f32 %v1221_v34, %v1208_v0  ;;  %v2893_v41 = vadd.f32 %v1282_v60, %v1269_v26 }
 0xe81   :  { %1162 = vadd.xlane.f32.xlu0 %v1161_v58  ;;  %v1171_v21 = vmul.f32 %v1161_v58, %v1161_v58  ;;  %v1232_v7 = vmul.f32 %v2890_v30, %v2890_v30  ;;  %v1293_v51 = vmul.f32 %v2893_v41, %v2893_v41 }
 0xe83   :  { %1172 = vadd.xlane.f32.xlu1 %v1171_v21 }
 0xe85   :  { %1223 = vadd.xlane.f32.xlu0 %v2890_v30 }
 0xe87   :  { %1284 = vadd.xlane.f32.xlu1 %v2893_v41 }
 0xe89   :  { %1233 = vadd.xlane.f32.xlu0 %v1232_v7 }
 0xe8d   :  { %1294 = vadd.xlane.f32.xlu0 %v1293_v51 }
 0xf0e   :  { %v1163_v52 = vpop.xlane.xlu0 %1162 }
 0xf0f   :  { %v1164_v19 = vrot.slane %v1163_v52, 4 }
 0xf10   :  { %v1173_v20 = vpop.xlane.xlu1 %1172 }
 0xf11   :  { %v1165_v53 = vadd.f32 %v1164_v19, %v1163_v52  ;;  %v1174_v34 = vrot.slane %v1173_v20, 4 }
 0xf12   :  { %v1224_v1 = vpop.xlane.xlu0 %1223 }
 0xf13   :  { %v1166_v37 = vrot.slane %v1165_v53, 2  ;;  %v1175_v18 = vadd.f32 %v1174_v34, %v1173_v20  ;;  %v1225_v0 = vrot.slane %v1224_v1, 4 }
 0xf15   :  { %v1176_v22 = vrot.slane %v1175_v18, 2  ;;  %v1167_v38 = vadd.f32 %v1166_v37, %v1165_v53  ;;  %v1226_v26 = vadd.f32 %v1225_v0, %v1224_v1 }
 0xf16   :  { %v1234_v60 = vpop.xlane.xlu0 %1233 }
 0xf17   :  { %v1168_v50 = vrot.slane %v1167_v38, 1  ;;  %v1177_v59 = vadd.f32 %v1176_v22, %v1175_v18  ;;  %v1235_v21 = vrot.slane %v1234_v60, 4  ;;  %v1227_v51 = vrot.slane %v1226_v26, 2 }
 0xf19   :  { %v1169_v47 = vadd.f32 %v1168_v50, %v1167_v38  ;;  %v1178_v17 = vrot.slane %v1177_v59, 1  ;;  %v1236_v7 = vadd.f32 %v1235_v21, %v1234_v60  ;;  %v1228_v20 = vadd.f32 %v1227_v51, %v1226_v26 }
 0xf1b   :  { %1971 = vpush %v1169_v47  ;;  %v1179_v57 = vadd.f32 %v1178_v17, %v1177_v59  ;;  %v1237_v52 = vrot.slane %v1236_v7, 2  ;;  %v1229_v34 = vrot.slane %v1228_v20, 1  ;;  %v1285_v59 = vpop.xlane.xlu1 %1284  ;;  %v1295_v47 = vpop.xlane.xlu0 %1294 }
 0xf1c   :  { %v1296_v60 = vrot.slane %v1295_v47, 4 }
 0xf1d   :  { %1973 = vpush %v1179_v57  ;;  %v1238_v53 = vadd.f32 %v1237_v52, %v1236_v7  ;;  %v1230_v22 = vadd.f32 %v1229_v34, %v1228_v20  ;;  %v1286_v57 = vrot.slane %v1285_v59, 4 }
 0xf1e   :  { %v1297_v7 = vadd.f32 %v1296_v60, %v1295_v47 }
 0xf1f   :  { %v1239_v37 = vrot.slane %v1238_v53, 1  ;;  %v1287_v26 = vadd.f32 %v1286_v57, %v1285_v59 }
 0xf20   :  { %v1298_v51 = vrot.slane %v1297_v7, 2 }
 0xf21   :  { %v1240_v38 = vadd.f32 %v1239_v37, %v1238_v53 }
 0xf22   :  { %v1299_v20 = vadd.f32 %v1298_v51, %v1297_v7 }
 0xf24   :  { %v1300_v34 = vrot.slane %v1299_v20, 1 }
 0xf4c   :  { %s1972_s15 = spop %1971 }
 0xf4d   :  { %s1181_s16 = smul.f32 0.0009765625, %s1972_s15 }
 0xf4e   :  { %s1974_s18 = spop %1973 }
 0xf4f   :  { %s1183_s17 = smul.f32 %s1181_s16, %s1181_s16  ;;  %v1185_v50 = vstv %s1181_s16 }
 0xf50   :  { %s1182_s19 = smul.f32 0.0009765625, %s1974_s18  ;;  %v1186_v17 = vsub.f32 %v1161_v58, %v1185_v50  ;;  %v1288_v58 = vrot.slane %v1287_v26, 2 }
 0xf52   :  { %s1184_s20 = ssub.f32 %s1182_s19, %s1183_s17 }
 0xf54   :  { %s1187_s1 = sadd.f32 1e-05, %s1184_s20 }
 0xf56   :  { %v1188_v19 = vstv %s1187_s1 }
 0xf57   :  { %2078 = vrsqrt.f32 %v1188_v19  ;;  %v1289_v19 = vadd.f32 %v1288_v58, %v1287_v26 }
 0xf59   :  { %v1290_v53 = vrot.slane %v1289_v19, 1 }
 0xf61   :  { %v2079_v18 = vpop.eup %2078 }
 0xf62   :  { %1975 = vpush %v2079_v18  ;;  %v1291_v18 = vadd.f32 %v1290_v53, %v1289_v19 }
 0xf63   :  { %1977 = vpush %v1230_v22  ;;  %v1301_v22 = vadd.f32 %v1300_v34, %v1299_v20  ;;  %v3260_v20 = vld [vmem:[#allocation38_spill] sm:$0xff] }
 0xf64   :  { %1979 = vpush %v1240_v38 }
 0xf93   :  { %s1976_s23 = spop %1975 }
 0xf94   :  { %v1191_v1 = vstv %s1976_s23  ;;  %s1978_s24 = spop %1977 }
 0xf95   :  { %v1192_v0 = vmul.f32 %v1191_v1, %v1186_v17  ;;  %s1242_s0 = smul.f32 0.0009765625, %s1978_s24  ;;  %s1980_s27 = spop %1979 }
 0xf96   :  { %s1243_s28 = smul.f32 0.0009765625, %s1980_s27 }
 0xf97   :  { %v1193_v21 = vmax.f32 %v1192_v0, 0.0  ;;  %s1244_s29 = smul.f32 %s1242_s0, %s1242_s0  ;;  %v1246_v38 = vstv %s1242_s0 }
 0xf98   :  { %v1247_v50 = vsub.f32 %v2890_v30, %v1246_v38 }
 0xf99   :  { %s1245_s30 = ssub.f32 %s1243_s28, %s1244_s29  ;;  %1319 = vrot.lane.b32.xlu0 %v1193_v21, %s2168_s22  ;;  %1316 = vrot.lane.b32.xlu1 %v1193_v21, %s2167_s21  ;;  %v1335_v53 = vmul.f32 %v1193_v21, %v3260_v20 }
 0xf9b   :  { %s1248_s3 = sadd.f32 1e-05, %s1245_s30 }
 0xf9d   :  { %v1249_v52 = vstv %s1248_s3 }
 0xf9e   :  { %2080 = vrsqrt.f32 %v1249_v52 }
 0xfa8   :  { %v2081_v37 = vpop.eup %2080 }
 0xfa9   :  { %1981 = vpush %v2081_v37  ;;  %v3261_v37 = vld [vmem:[#allocation39_spill] sm:$0xff] }
 0xfaa   :  { %1983 = vpush %v1291_v18 }
 0xfab   :  { %1985 = vpush %v1301_v22 }
 0xfda   :  { %s1982_s4 = spop %1981 }
 0xfdb   :  { %v1252_v59 = vstv %s1982_s4  ;;  %s1984_s5 = spop %1983 }
 0xfdc   :  { %v1253_v47 = vmul.f32 %v1252_v59, %v1247_v50  ;;  %s1303_s6 = smul.f32 0.0009765625, %s1984_s5  ;;  %s1986_s7 = spop %1985  ;;  %v3262_v59 = vld [vmem:[#allocation40_spill] sm:$0xff] }
 0xfdd   :  { %s1304_s8 = smul.f32 0.0009765625, %s1986_s7 }
 0xfde   :  { %v1254_v17 = vmax.f32 %v1253_v47, 0.0  ;;  %s1305_s9 = smul.f32 %s1303_s6, %s1303_s6  ;;  %v1307_v30 = vstv %s1303_s6 }
 0xfdf   :  { %v1308_v60 = vsub.f32 %v2893_v41, %v1307_v30 }
 0xfe0   :  { %s1306_s10 = ssub.f32 %s1304_s8, %s1305_s9  ;;  %1322 = vrot.lane.b32.xlu1 %v1254_v17, %s2167_s21 }
 0xfe2   :  { %s1309_s11 = sadd.f32 1e-05, %s1306_s10 }
 0xfe4   :  { %v1310_v57 = vstv %s1309_s11  ;;  %1325 = vrot.lane.b32.xlu1 %v1254_v17, %s2168_s22 }
 0xfe5   :  { %2082 = vrsqrt.f32 %v1310_v57  ;;  %v3263_v57 = vld [vmem:[#allocation41_spill] sm:$0xff] }
 0xfef   :  { %v2083_v1 = vpop.eup %2082 }
 0xff0   :  { %1987 = vpush %v2083_v1  ;;  %v1338_v1 = vmul.f32 %v1254_v17, %v3263_v57 }
0x100b   :  { %v1317_v58 = vpop.permute.xlu1 %1316  ;;  %v1320_v52 = vpop.permute.xlu0 %1319 }
0x100c   :  { %v1318_v51 = vsel %vm233_vm2, %v1317_v58, 0.0  ;;  %v1321_v41 = vsel %vm243_vm3, %v1320_v52, 0.0 }
0x100d   :  { %v1334_v19 = vmul.f32 %v1318_v51, %v3237_v33  ;;  %v1336_v18 = vmul.f32 %v1321_v41, %v3261_v37  ;;  %v3265_v41 = vld [vmem:[#allocation43_spill] sm:$0xff] }
0x100f   :  { %v1343_v34 = vadd.f32 %v1335_v53, %v1334_v19 }
0x1011   :  { %v1344_v50 = vadd.f32 %v1343_v34, %v1336_v18 }
0x1021   :  { %s1988_s12 = spop %1987 }
0x1022   :  { %v1313_v0 = vstv %s1988_s12 }
0x1023   :  { %v1314_v26 = vmul.f32 %v1313_v0, %v1308_v60 }
0x1025   :  { %v1315_v7 = vmax.f32 %v1314_v26, 0.0  ;;  %v3264_v26 = vld [vmem:[#allocation42_spill] sm:$0xff] }
0x1027   :  { %1331 = vrot.lane.b32.xlu1 %v1315_v7, %s2168_s22  ;;  %1328 = vrot.lane.b32.xlu0 %v1315_v7, %s2167_s21  ;;  %v1341_v17 = vmul.f32 %v1315_v7, %v2549_v15 }
0x1052   :  { %v1323_v22 = vpop.permute.xlu1 %1322 }
0x1053   :  { %v1324_v38 = vsel %vm233_vm2, %v1323_v22, 0.0 }
0x1054   :  { %v1337_v47 = vmul.f32 %v1324_v38, %v3262_v59 }
0x1056   :  { %v1345_v30 = vadd.f32 %v1344_v50, %v1337_v47  ;;  %v1326_v0 = vpop.permute.xlu1 %1325 }
0x1057   :  { %v1327_v21 = vsel %vm243_vm3, %v1326_v0, 0.0 }
0x1058   :  { %v1346_v60 = vadd.f32 %v1345_v30, %v1338_v1  ;;  %v1339_v58 = vmul.f32 %v1327_v21, %v3264_v26 }
0x105a   :  { %v1347_v53 = vadd.f32 %v1346_v60, %v1339_v58 }
0x1099   :  { %v1329_v51 = vpop.permute.xlu0 %1328  ;;  %v1332_v52 = vpop.permute.xlu1 %1331 }
0x109a   :  { %v1330_v19 = vsel %vm233_vm2, %v1329_v51, 0.0  ;;  %v1333_v18 = vsel %vm243_vm3, %v1332_v52, 0.0 }
0x109b   :  { %v1340_v34 = vmul.f32 %v1330_v19, %v3265_v41  ;;  %v1342_v50 = vmul.f32 %v1333_v18, %v2554_v28 }
0x109d   :  { %v1348_v22 = vadd.f32 %v1347_v53, %v1340_v34 }
0x109f   :  { %v1349_v38 = vadd.f32 %v1348_v22, %v1341_v17 }
0x10a1   :  { %v1350_v47 = vadd.f32 %v1349_v38, %v1342_v50 }
0x10a3   :  { %1351 = vadd.xlane.f32.xlu0 %v1350_v47  ;;  %v1360_v1 = vmul.f32 %v1350_v47, %v1350_v47 }
0x10a5   :  { %1361 = vadd.xlane.f32.xlu1 %v1360_v1 }
0x1130   :  { %v1352_v30 = vpop.xlane.xlu0 %1351 }
0x1131   :  { %v1353_v0 = vrot.slane %v1352_v30, 4 }
0x1132   :  { %v1362_v21 = vpop.xlane.xlu1 %1361 }
0x1133   :  { %v1354_v51 = vadd.f32 %v1353_v0, %v1352_v30  ;;  %v1363_v60 = vrot.slane %v1362_v21, 4 }
0x1135   :  { %v1355_v58 = vrot.slane %v1354_v51, 2  ;;  %v1364_v19 = vadd.f32 %v1363_v60, %v1362_v21 }
0x1137   :  { %v1365_v41 = vrot.slane %v1364_v19, 2  ;;  %v1356_v26 = vadd.f32 %v1355_v58, %v1354_v51 }
0x1139   :  { %v1357_v52 = vrot.slane %v1356_v26, 1  ;;  %v1366_v57 = vadd.f32 %v1365_v41, %v1364_v19 }
0x113b   :  { %v1358_v7 = vadd.f32 %v1357_v52, %v1356_v26  ;;  %v1367_v53 = vrot.slane %v1366_v57, 1 }
0x113d   :  { %1989 = vpush %v1358_v7  ;;  %v1368_v34 = vadd.f32 %v1367_v53, %v1366_v57 }
0x113f   :  { %1991 = vpush %v1368_v34 }
0x116e   :  { %s1990_s13 = spop %1989 }
0x116f   :  { %s1370_s14 = smul.f32 0.0009765625, %s1990_s13 }
0x1170   :  { %s1992_s15 = spop %1991 }
0x1171   :  { %s1372_s16 = smul.f32 %s1370_s14, %s1370_s14  ;;  %v1374_v22 = vstv %s1370_s14 }
0x1172   :  { %s1371_s17 = smul.f32 0.0009765625, %s1992_s15  ;;  %v1375_v38 = vsub.f32 %v1350_v47, %v1374_v22 }
0x1174   :  { %s1373_s18 = ssub.f32 %s1371_s17, %s1372_s16 }
0x1176   :  { %s1376_s19 = sadd.f32 1e-05, %s1373_s18 }
0x1178   :  { %v1377_v18 = vstv %s1376_s19 }
0x1179   :  { %2084 = vrsqrt.f32 %v1377_v18 }
0x1183   :  { %v2085_v17 = vpop.eup %2084 }
0x1184   :  { %1993 = vpush %v2085_v17  ;;  %v3266_v17 = vld [vmem:[#allocation11_spill] sm:$0xff] }
0x11b5   :  { %s1994_s20 = spop %1993 }
0x11b6   :  { %v1380_v41 = vstv %s1994_s20 }
0x11b7   :  { %v1381_v26 = vmul.f32 %v1380_v41, %v1375_v38  ;;  %v3267_v38 = vld [vmem:[#allocation12_spill] sm:$0xff] }
0x11b9   :  { %v1382_v50 = vmax.f32 %v1381_v26, 0.0 }
0x11bb   :  { %v1383_v57 = vadd.f32 %v1382_v50, %v2748_v54 }
0x11bd   :  { %v2930_v1 = vmax.f32 %v1383_v57, 0.0 }
0x11bf   :  { %1388 = vrot.lane.b32.xlu1 %v2930_v1, %s2166_s26  ;;  %1385 = vrot.lane.b32.xlu0 %v2930_v1, %s2165_s25  ;;  %v1392_v54 = vmul.f32 %v2930_v1, %v2211_v6  ;;  %v1429_v52 = vmul.f32 %v2930_v1, %v2209_v5  ;;  %v1466_v34 = vmul.f32 %v2930_v1, %v2236_v24 }
0x1231   :  { %v1389_v30 = vpop.permute.xlu1 %1388  ;;  %v1386_v0 = vpop.permute.xlu0 %1385 }
0x1232   :  { %v1390_v21 = vsel %vm109_vm1, %v1389_v30, 0.0  ;;  %v1387_v47 = vsel %vm105_vm0, %v1386_v0, 0.0 }
0x1233   :  { %v1391_v51 = vmul.f32 %v1387_v47, %v2205_v3  ;;  %v1428_v60 = vmul.f32 %v1387_v47, %v2207_v4  ;;  %v1393_v58 = vmul.f32 %v1390_v21, %v2220_v13  ;;  %v1465_v7 = vmul.f32 %v1387_v47, %v2234_v23 }
0x1234   :  { %v1430_v3 = vmul.f32 %v1390_v21, %v3266_v17  ;;  %v1467_v4 = vmul.f32 %v1390_v21, %v3267_v38 }
0x1235   :  { %v1394_v19 = vadd.f32 %v1392_v54, %v1391_v51  ;;  %v1431_v53 = vadd.f32 %v1429_v52, %v1428_v60  ;;  %v1468_v22 = vadd.f32 %v1466_v34, %v1465_v7 }
0x1237   :  { %v1395_v18 = vadd.f32 %v1394_v19, %v1393_v58  ;;  %v2952_v13 = vadd.f32 %v1431_v53, %v1430_v3  ;;  %v2955_v5 = vadd.f32 %v1468_v22, %v1467_v4 }
0x1239   :  { %1396 = vadd.xlane.f32.xlu0 %v1395_v18  ;;  %v1405_v6 = vmul.f32 %v1395_v18, %v1395_v18  ;;  %v1442_v23 = vmul.f32 %v2952_v13, %v2952_v13  ;;  %v1479_v24 = vmul.f32 %v2955_v5, %v2955_v5 }
0x123b   :  { %1406 = vadd.xlane.f32.xlu1 %v1405_v6 }
0x123d   :  { %1433 = vadd.xlane.f32.xlu0 %v2952_v13 }
0x123f   :  { %1470 = vadd.xlane.f32.xlu1 %v2955_v5 }
0x1241   :  { %1443 = vadd.xlane.f32.xlu0 %v1442_v23 }
0x1245   :  { %1480 = vadd.xlane.f32.xlu0 %v1479_v24 }
0x12c6   :  { %v1397_v41 = vpop.xlane.xlu0 %1396 }
0x12c7   :  { %v1398_v26 = vrot.slane %v1397_v41, 4 }
0x12c8   :  { %v1407_v50 = vpop.xlane.xlu1 %1406 }
0x12c9   :  { %v1399_v57 = vadd.f32 %v1398_v26, %v1397_v41  ;;  %v1408_v30 = vrot.slane %v1407_v50, 4 }
0x12ca   :  { %v1434_v7 = vpop.xlane.xlu0 %1433 }
0x12cb   :  { %v1400_v0 = vrot.slane %v1399_v57, 2  ;;  %v1409_v21 = vadd.f32 %v1408_v30, %v1407_v50  ;;  %v1435_v34 = vrot.slane %v1434_v7, 4 }
0x12cd   :  { %v1410_v47 = vrot.slane %v1409_v21, 2  ;;  %v1401_v51 = vadd.f32 %v1400_v0, %v1399_v57  ;;  %v1436_v3 = vadd.f32 %v1435_v34, %v1434_v7 }
0x12ce   :  { %v1444_v53 = vpop.xlane.xlu0 %1443 }
0x12cf   :  { %v1402_v54 = vrot.slane %v1401_v51, 1  ;;  %v1411_v60 = vadd.f32 %v1410_v47, %v1409_v21  ;;  %v1445_v17 = vrot.slane %v1444_v53, 4  ;;  %v1437_v6 = vrot.slane %v1436_v3, 2  ;;  %v1471_v21 = vpop.xlane.xlu1 %1470 }
0x12d1   :  { %v1403_v58 = vadd.f32 %v1402_v54, %v1401_v51  ;;  %v1412_v19 = vrot.slane %v1411_v60, 1  ;;  %v1446_v22 = vadd.f32 %v1445_v17, %v1444_v53  ;;  %v1438_v23 = vadd.f32 %v1437_v6, %v1436_v3 }
0x12d2   :  { %v1481_v47 = vpop.xlane.xlu0 %1480  ;;  %v1472_v54 = vrot.slane %v1471_v21, 4 }
0x12d3   :  { %1995 = vpush %v1403_v58  ;;  %v1413_v52 = vadd.f32 %v1412_v19, %v1411_v60  ;;  %v1447_v38 = vrot.slane %v1446_v22, 2  ;;  %v1439_v41 = vrot.slane %v1438_v23, 1  ;;  %v1482_v58 = vrot.slane %v1481_v47, 4 }
0x12d4   :  { %v1473_v7 = vadd.f32 %v1472_v54, %v1471_v21 }
0x12d5   :  { %1997 = vpush %v1413_v52  ;;  %v1448_v24 = vadd.f32 %v1447_v38, %v1446_v22  ;;  %v1440_v57 = vadd.f32 %v1439_v41, %v1438_v23  ;;  %v1483_v53 = vadd.f32 %v1482_v58, %v1481_v47 }
0x12d7   :  { %v1449_v26 = vrot.slane %v1448_v24, 1  ;;  %v1484_v34 = vrot.slane %v1483_v53, 2 }
0x12d9   :  { %v1450_v30 = vadd.f32 %v1449_v26, %v1448_v24  ;;  %v1485_v22 = vadd.f32 %v1484_v34, %v1483_v53 }
0x12db   :  { %v1486_v38 = vrot.slane %v1485_v22, 1 }
0x12dd   :  { %v1487_v24 = vadd.f32 %v1486_v38, %v1485_v22  ;;  %v3269_v38 = vld [vmem:[#allocation14_spill] sm:$0xff] }
0x1304   :  { %s1996_s1 = spop %1995 }
0x1305   :  { %s1415_s23 = smul.f32 0.0009765625, %s1996_s1 }
0x1306   :  { %s1998_s0 = spop %1997 }
0x1307   :  { %s1417_s24 = smul.f32 %s1415_s23, %s1415_s23  ;;  %v1419_v0 = vstv %s1415_s23 }
0x1308   :  { %s1416_s27 = smul.f32 0.0009765625, %s1998_s0  ;;  %v1420_v51 = vsub.f32 %v1395_v18, %v1419_v0  ;;  %v1474_v18 = vrot.slane %v1473_v7, 2 }
0x130a   :  { %s1418_s28 = ssub.f32 %s1416_s27, %s1417_s24  ;;  %v1475_v3 = vadd.f32 %v1474_v18, %v1473_v7 }
0x130c   :  { %s1421_s29 = sadd.f32 1e-05, %s1418_s28  ;;  %v1476_v6 = vrot.slane %v1475_v3, 1 }
0x130e   :  { %v1422_v4 = vstv %s1421_s29  ;;  %v1477_v23 = vadd.f32 %v1476_v6, %v1475_v3  ;;  %v3268_v3 = vld [vmem:[#allocation13_spill] sm:$0xff] }
0x130f   :  { %2086 = vrsqrt.f32 %v1422_v4 }
0x1319   :  { %v2087_v50 = vpop.eup %2086 }
0x131a   :  { %1999 = vpush %v2087_v50 }
0x131b   :  { %2001 = vpush %v1440_v57 }
0x131c   :  { %2003 = vpush %v1450_v30 }
0x134b   :  { %s2000_s30 = spop %1999 }
0x134c   :  { %v1425_v60 = vstv %s2000_s30  ;;  %s2002_s3 = spop %2001 }
0x134d   :  { %v1426_v19 = vmul.f32 %v1425_v60, %v1420_v51  ;;  %s1452_s4 = smul.f32 0.0009765625, %s2002_s3  ;;  %s2004_s5 = spop %2003 }
0x134e   :  { %s1453_s6 = smul.f32 0.0009765625, %s2004_s5 }
0x134f   :  { %v2962_v52 = vmax.f32 %v1426_v19, 0.0  ;;  %s1454_s7 = smul.f32 %s1452_s4, %s1452_s4  ;;  %v1456_v41 = vstv %s1452_s4 }
0x1350   :  { %v1457_v26 = vsub.f32 %v2952_v13, %v1456_v41 }
0x1351   :  { %s1455_s8 = ssub.f32 %s1453_s6, %s1454_s7  ;;  %1505 = vrot.lane.b32.xlu0 %v2962_v52, %s2165_s25  ;;  %1502 = vrot.lane.b32.xlu1 %v2962_v52, %s2167_s21 }
0x1353   :  { %s1458_s9 = sadd.f32 1e-05, %s1455_s8 }
0x1355   :  { %v1459_v17 = vstv %s1458_s9  ;;  %1508 = vrot.lane.b32.xlu1 %v2962_v52, %s2166_s26 }
0x1356   :  { %2088 = vrsqrt.f32 %v1459_v17 }
0x1359   :  { %1511 = vrot.lane.b32.xlu1 %v2962_v52, %s2168_s22 }
0x1360   :  { %v2089_v4 = vpop.eup %2088 }
0x1361   :  { %2005 = vpush %v2089_v4 }
0x1362   :  { %2007 = vpush %v1477_v23 }
0x1363   :  { %2009 = vpush %v1487_v24 }
0x1392   :  { %s2006_s10 = spop %2005 }
0x1393   :  { %v1462_v50 = vstv %s2006_s10  ;;  %s2008_s11 = spop %2007 }
0x1394   :  { %v1463_v57 = vmul.f32 %v1462_v50, %v1457_v26  ;;  %s1489_s12 = smul.f32 0.0009765625, %s2008_s11  ;;  %s2010_s13 = spop %2009 }
0x1395   :  { %s1490_s14 = smul.f32 0.0009765625, %s2010_s13 }
0x1396   :  { %v2973_v30 = vmax.f32 %v1463_v57, 0.0  ;;  %s1491_s15 = smul.f32 %s1489_s12, %s1489_s12  ;;  %v1493_v21 = vstv %s1489_s12  ;;  %v3270_v57 = vld [vmem:[#allocation15_spill] sm:$0xff] }
0x1397   :  { %v1494_v47 = vsub.f32 %v2955_v5, %v1493_v21 }
0x1398   :  { %s1492_s16 = ssub.f32 %s1490_s14, %s1491_s15  ;;  %1514 = vrot.lane.b32.xlu0 %v2973_v30, %s2167_s21  ;;  %1517 = vrot.lane.b32.xlu1 %v2973_v30, %s2165_s25 }
0x139a   :  { %s1495_s17 = sadd.f32 1e-05, %s1492_s16 }
0x139c   :  { %v1496_v0 = vstv %s1495_s17  ;;  %1520 = vrot.lane.b32.xlu0 %v2973_v30, %s2166_s26  ;;  %1523 = vrot.lane.b32.xlu1 %v2973_v30, %s2168_s22 }
0x139d   :  { %2090 = vrsqrt.f32 %v1496_v0  ;;  %v3271_v0 = vld [vmem:[#allocation16_spill] sm:$0xff] }
0x13a7   :  { %v2091_v13 = vpop.eup %2090 }
0x13a8   :  { %2011 = vpush %v2091_v13 }
0x13c3   :  { %v1503_v58 = vpop.permute.xlu1 %1502  ;;  %v1506_v19 = vpop.permute.xlu0 %1505 }
0x13c4   :  { %v1507_v5 = vsel %vm105_vm0, %v1506_v19, 0.0  ;;  %v1504_v7 = vsel %vm233_vm2, %v1503_v58, 0.0 }
0x13c5   :  { %v1539_v18 = vmul.f32 %v1507_v5, %v2286_v45  ;;  %v1600_v34 = vmul.f32 %v1507_v5, %v2288_v46  ;;  %v1538_v17 = vmul.f32 %v1504_v7, %v2294_v49  ;;  %v1599_v22 = vmul.f32 %v1504_v7, %v3268_v3  ;;  %v3272_v49 = vld [vmem:[#allocation17_spill] sm:$0xff] }
0x13c6   :  { %v1661_v6 = vmul.f32 %v1507_v5, %v2292_v48  ;;  %v1660_v4 = vmul.f32 %v1504_v7, %v3269_v38  ;;  %v1540_v45 = vmul.f32 %v2962_v52, %v3270_v57  ;;  %v1601_v46 = vmul.f32 %v2962_v52, %v3271_v0 }
0x13c7   :  { %v1509_v53 = vpop.permute.xlu1 %1508  ;;  %v1553_v23 = vadd.f32 %v1539_v18, %v1538_v17  ;;  %v1614_v24 = vadd.f32 %v1600_v34, %v1599_v22  ;;  %v1662_v13 = vmul.f32 %v2962_v52, %v3272_v49  ;;  %v1606_v57 = vmul.f32 %v2973_v30, %v2389_v63 }
0x13c8   :  { %v1675_v26 = vadd.f32 %v1661_v6, %v1660_v4  ;;  %v1510_v50 = vsel %vm109_vm1, %v1509_v53, 0.0 }
0x13c9   :  { %v1554_v21 = vadd.f32 %v1553_v23, %v1540_v45  ;;  %v1663_v19 = vmul.f32 %v1510_v50, %v2341_v16 }
0x13ca   :  { %v1676_v58 = vadd.f32 %v1675_v26, %v1662_v13 }
0x13cb   :  { %v1512_v41 = vpop.permute.xlu1 %1511 }
0x13cc   :  { %v1513_v48 = vsel %vm243_vm3, %v1512_v41, 0.0  ;;  %v1677_v34 = vadd.f32 %v1676_v58, %v1663_v19  ;;  %v3276_v19 = vld [vmem:[#allocation21_spill] sm:$0xff] }
0x13cd   :  { %v1542_v5 = vmul.f32 %v1513_v48, %v2350_v25  ;;  %v1603_v7 = vmul.f32 %v1513_v48, %v2353_v27  ;;  %v1664_v53 = vmul.f32 %v1513_v48, %v2357_v29 }
0x13cf   :  { %v1678_v16 = vadd.f32 %v1677_v34, %v1664_v53 }
0x13d9   :  { %s2012_s18 = spop %2011 }
0x13da   :  { %v1499_v51 = vstv %s2012_s18 }
0x13db   :  { %v1500_v54 = vmul.f32 %v1499_v51, %v1494_v47  ;;  %v1615_v47 = vadd.f32 %v1614_v24, %v1601_v46  ;;  %v1541_v51 = vmul.f32 %v1510_v50, %v2332_v9 }
0x13dd   :  { %v2984_v60 = vmax.f32 %v1500_v54, 0.0  ;;  %v1602_v54 = vmul.f32 %v1510_v50, %v2334_v10  ;;  %v1555_v18 = vadd.f32 %v1554_v21, %v1541_v51  ;;  %v1545_v50 = vmul.f32 %v2973_v30, %v2386_v61  ;;  %v3273_v61 = vld [vmem:[#allocation18_spill] sm:$0xff]  ;;  %v3274_v21 = vld [vmem:[#allocation19_spill] sm:$0xff] }
0x13df   :  { %1529 = vrot.lane.b32.xlu1 %v2984_v60, %s2165_s25  ;;  %1526 = vrot.lane.b32.xlu0 %v2984_v60, %s2167_s21  ;;  %v1616_v52 = vadd.f32 %v1615_v47, %v1602_v54  ;;  %v1556_v22 = vadd.f32 %v1555_v18, %v1542_v5 }
0x13e1   :  { %v1617_v6 = vadd.f32 %v1616_v52, %v1603_v7  ;;  %v3277_v7 = vld [vmem:[#allocation22_spill] sm:$0xff] }
0x13e3   :  { %1535 = vrot.lane.b32.xlu1 %v2984_v60, %s2168_s22  ;;  %1532 = vrot.lane.b32.xlu0 %v2984_v60, %s2166_s26 }
0x140a   :  { %v1515_v17 = vpop.permute.xlu0 %1514  ;;  %v1518_v3 = vpop.permute.xlu1 %1517 }
0x140b   :  { %v1516_v9 = vsel %vm233_vm2, %v1515_v17, 0.0  ;;  %v1519_v10 = vsel %vm105_vm0, %v1518_v3, 0.0 }
0x140c   :  { %v1543_v25 = vmul.f32 %v1516_v9, %v2362_v31  ;;  %v1604_v27 = vmul.f32 %v1516_v9, %v2365_v35  ;;  %v1665_v29 = vmul.f32 %v1516_v9, %v2368_v36  ;;  %v1544_v38 = vmul.f32 %v1519_v10, %v2375_v42 }
0x140d   :  { %v1605_v4 = vmul.f32 %v1519_v10, %v2381_v55  ;;  %v1666_v26 = vmul.f32 %v1519_v10, %v2383_v56  ;;  %v1667_v36 = vmul.f32 %v2973_v30, %v2393_v8  ;;  %v3275_v30 = vld [vmem:[#allocation20_spill] sm:$0xff]  ;;  %v3279_v10 = vld [vmem:[#allocation26_spill] sm:$0xff] }
0x140e   :  { %v1557_v23 = vadd.f32 %v1556_v22, %v1543_v25  ;;  %v1618_v24 = vadd.f32 %v1617_v6, %v1604_v27  ;;  %v1679_v41 = vadd.f32 %v1678_v16, %v1665_v29  ;;  %v1521_v46 = vpop.permute.xlu0 %1520  ;;  %v1524_v56 = vpop.permute.xlu1 %1523  ;;  %v3278_v6 = vld [vmem:[#allocation23_spill] sm:$0xff]  ;;  %v3281_v29 = vld [vmem:[#allocation28_spill] sm:$0xff] }
0x140f   :  { %v1522_v49 = vsel %vm109_vm1, %v1521_v46, 0.0  ;;  %v1525_v47 = vsel %vm243_vm3, %v1524_v56, 0.0  ;;  %v3280_v25 = vld [vmem:[#allocation27_spill] sm:$0xff]  ;;  %v1672_v56 = vmul.f32 %v2984_v60, %v3259_v14 }
0x1410   :  { %v1558_v31 = vadd.f32 %v1557_v23, %v1544_v38  ;;  %v1619_v45 = vadd.f32 %v1618_v24, %v1605_v4  ;;  %v1680_v35 = vadd.f32 %v1679_v41, %v1666_v26  ;;  %v1546_v13 = vmul.f32 %v1522_v49, %v2404_v40  ;;  %v3282_v4 = vld [vmem:[#allocation29_spill] sm:$0xff] }
0x1411   :  { %v1607_v48 = vmul.f32 %v1522_v49, %v3273_v61  ;;  %v1668_v63 = vmul.f32 %v1522_v49, %v3274_v21  ;;  %v1547_v58 = vmul.f32 %v1525_v47, %v3275_v30  ;;  %v1608_v5 = vmul.f32 %v1525_v47, %v3276_v19 }
0x1412   :  { %v1559_v42 = vadd.f32 %v1558_v31, %v1545_v50  ;;  %v1620_v0 = vadd.f32 %v1619_v45, %v1606_v57  ;;  %v1681_v55 = vadd.f32 %v1680_v35, %v1667_v36  ;;  %v1669_v53 = vmul.f32 %v1525_v47, %v3277_v7  ;;  %v3283_v35 = vld [vmem:[#allocation24_spill] sm:$0xff] }
0x1413   :  { %v1550_v36 = vmul.f32 %v2984_v60, %v3283_v35 }
0x1414   :  { %v1560_v51 = vadd.f32 %v1559_v42, %v1546_v13  ;;  %v1621_v54 = vadd.f32 %v1620_v0, %v1607_v48  ;;  %v1682_v8 = vadd.f32 %v1681_v55, %v1668_v63  ;;  %v3284_v42 = vld [vmem:[#allocation25_spill] sm:$0xff] }
0x1415   :  { %v1611_v0 = vmul.f32 %v2984_v60, %v3284_v42 }
0x1416   :  { %v1561_v34 = vadd.f32 %v1560_v51, %v1547_v58  ;;  %v1622_v40 = vadd.f32 %v1621_v54, %v1608_v5  ;;  %v1683_v22 = vadd.f32 %v1682_v8, %v1669_v53 }
0x1451   :  { %v1527_v18 = vpop.permute.xlu0 %1526  ;;  %v1530_v52 = vpop.permute.xlu1 %1529 }
0x1452   :  { %v1528_v17 = vsel %vm233_vm2, %v1527_v18, 0.0  ;;  %v1531_v3 = vsel %vm105_vm0, %v1530_v52, 0.0 }
0x1453   :  { %v1548_v9 = vmul.f32 %v1528_v17, %v3278_v6  ;;  %v1609_v16 = vmul.f32 %v1528_v17, %v3279_v10  ;;  %v1670_v27 = vmul.f32 %v1528_v17, %v3280_v25  ;;  %v1549_v38 = vmul.f32 %v1531_v3, %v3281_v29 }
0x1454   :  { %v1610_v23 = vmul.f32 %v1531_v3, %v3282_v4  ;;  %v1671_v50 = vmul.f32 %v1531_v3, %v3256_v12 }
0x1455   :  { %v1562_v24 = vadd.f32 %v1561_v34, %v1548_v9  ;;  %v1623_v41 = vadd.f32 %v1622_v40, %v1609_v16  ;;  %v1684_v26 = vadd.f32 %v1683_v22, %v1670_v27  ;;  %v1533_v57 = vpop.permute.xlu0 %1532  ;;  %v1536_v31 = vpop.permute.xlu1 %1535 }
0x1456   :  { %v1534_v45 = vsel %vm109_vm1, %v1533_v57, 0.0  ;;  %v1537_v12 = vsel %vm243_vm3, %v1536_v31, 0.0 }
0x1457   :  { %v1563_v55 = vadd.f32 %v1562_v24, %v1549_v38  ;;  %v1624_v46 = vadd.f32 %v1623_v41, %v1610_v23  ;;  %v1685_v49 = vadd.f32 %v1684_v26, %v1671_v50  ;;  %v1551_v13 = vmul.f32 %v1534_v45, %v2466_v11 }
0x1458   :  { %v1612_v47 = vmul.f32 %v1534_v45, %v3232_v62  ;;  %v1552_v51 = vmul.f32 %v1537_v12, %v3233_v39  ;;  %v1673_v8 = vmul.f32 %v1534_v45, %v3234_v32  ;;  %v1613_v14 = vmul.f32 %v1537_v12, %v3235_v43 }
0x1459   :  { %v1564_v61 = vadd.f32 %v1563_v55, %v1550_v36  ;;  %v1625_v48 = vadd.f32 %v1624_v46, %v1611_v0  ;;  %v1686_v21 = vadd.f32 %v1685_v49, %v1672_v56  ;;  %v1674_v19 = vmul.f32 %v1537_v12, %v3236_v44 }
0x145b   :  { %v1565_v63 = vadd.f32 %v1564_v61, %v1551_v13  ;;  %v1626_v54 = vadd.f32 %v1625_v48, %v1612_v47  ;;  %v1687_v58 = vadd.f32 %v1686_v21, %v1673_v8 }
0x145d   :  { %v1566_v30 = vadd.f32 %v1565_v63, %v1552_v51  ;;  %v3072_v11 = vadd.f32 %v1626_v54, %v1613_v14  ;;  %v3075_v5 = vadd.f32 %v1687_v58, %v1674_v19 }
0x145f   :  { %1567 = vadd.xlane.f32.xlu0 %v1566_v30  ;;  %v1576_v60 = vmul.f32 %v1566_v30, %v1566_v30  ;;  %v1637_v39 = vmul.f32 %v3072_v11, %v3072_v11  ;;  %v1698_v62 = vmul.f32 %v3075_v5, %v3075_v5 }
0x1461   :  { %1577 = vadd.xlane.f32.xlu1 %v1576_v60 }
0x1463   :  { %1628 = vadd.xlane.f32.xlu0 %v3072_v11 }
0x1465   :  { %1689 = vadd.xlane.f32.xlu1 %v3075_v5 }
0x1467   :  { %1638 = vadd.xlane.f32.xlu0 %v1637_v39 }
0x146b   :  { %1699 = vadd.xlane.f32.xlu0 %v1698_v62 }
0x14ec   :  { %v1568_v32 = vpop.xlane.xlu0 %1567 }
0x14ed   :  { %v1569_v43 = vrot.slane %v1568_v32, 4 }
0x14ee   :  { %v1578_v44 = vpop.xlane.xlu1 %1577 }
0x14ef   :  { %v1570_v7 = vadd.f32 %v1569_v43, %v1568_v32  ;;  %v1579_v53 = vrot.slane %v1578_v44, 4 }
0x14f0   :  { %v1629_v10 = vpop.xlane.xlu0 %1628 }
0x14f1   :  { %v1571_v18 = vrot.slane %v1570_v7, 2  ;;  %v1580_v52 = vadd.f32 %v1579_v53, %v1578_v44  ;;  %v1630_v25 = vrot.slane %v1629_v10, 4 }
0x14f2   :  { %v1690_v42 = vpop.xlane.xlu1 %1689 }
0x14f3   :  { %v1581_v34 = vrot.slane %v1580_v52, 2  ;;  %v1572_v40 = vadd.f32 %v1571_v18, %v1570_v7  ;;  %v1631_v29 = vadd.f32 %v1630_v25, %v1629_v10  ;;  %v1691_v46 = vrot.slane %v1690_v42, 4 }
0x14f4   :  { %v1639_v16 = vpop.xlane.xlu0 %1638 }
0x14f5   :  { %v1573_v17 = vrot.slane %v1572_v40, 1  ;;  %v1582_v3 = vadd.f32 %v1581_v34, %v1580_v52  ;;  %v1640_v27 = vrot.slane %v1639_v16, 4  ;;  %v1632_v4 = vrot.slane %v1631_v29, 2 }
0x14f6   :  { %v1692_v61 = vadd.f32 %v1691_v46, %v1690_v42 }
0x14f7   :  { %v1574_v22 = vadd.f32 %v1573_v17, %v1572_v40  ;;  %v1583_v6 = vrot.slane %v1582_v3, 1  ;;  %v1641_v38 = vadd.f32 %v1640_v27, %v1639_v16  ;;  %v1633_v41 = vadd.f32 %v1632_v4, %v1631_v29 }
0x14f8   :  { %v1700_v0 = vpop.xlane.xlu0 %1699  ;;  %v1693_v21 = vrot.slane %v1692_v61, 2 }
0x14f9   :  { %2013 = vpush %v1574_v22  ;;  %v1584_v9 = vadd.f32 %v1583_v6, %v1582_v3  ;;  %v1642_v23 = vrot.slane %v1641_v38, 2  ;;  %v1634_v50 = vrot.slane %v1633_v41, 1  ;;  %v1701_v56 = vrot.slane %v1700_v0, 4 }
0x14fa   :  { %v1694_v51 = vadd.f32 %v1693_v21, %v1692_v61 }
0x14fb   :  { %2015 = vpush %v1584_v9  ;;  %v1643_v26 = vadd.f32 %v1642_v23, %v1641_v38  ;;  %v1635_v45 = vadd.f32 %v1634_v50, %v1633_v41  ;;  %v1702_v48 = vadd.f32 %v1701_v56, %v1700_v0  ;;  %v3285_v38 = vld [vmem:[#allocation41_spill] sm:$0xff]  ;;  %v3286_v41 = vld [vmem:[#allocation42_spill] sm:$0xff] }
0x14fc   :  { %v1695_v8 = vrot.slane %v1694_v51, 1 }
0x14fd   :  { %v1644_v57 = vrot.slane %v1643_v26, 1  ;;  %v1703_v63 = vrot.slane %v1702_v48, 2 }
0x14fe   :  { %v1696_v14 = vadd.f32 %v1695_v8, %v1694_v51 }
0x14ff   :  { %v1645_v35 = vadd.f32 %v1644_v57, %v1643_v26  ;;  %v1704_v54 = vadd.f32 %v1703_v63, %v1702_v48 }
0x152a   :  { %s2014_s25 = spop %2013 }
0x152b   :  { %s1586_s26 = smul.f32 0.0009765625, %s2014_s25 }
0x152c   :  { %s2016_s20 = spop %2015 }
0x152d   :  { %s1588_s19 = smul.f32 %s1586_s26, %s1586_s26  ;;  %v1590_v36 = vstv %s1586_s26 }
0x152e   :  { %s1587_s1 = smul.f32 0.0009765625, %s2016_s20  ;;  %v1591_v55 = vsub.f32 %v1566_v30, %v1590_v36  ;;  %v1705_v30 = vrot.slane %v1704_v54, 1 }
0x1530   :  { %s1589_s23 = ssub.f32 %s1587_s1, %s1588_s19  ;;  %v1706_v60 = vadd.f32 %v1705_v30, %v1704_v54  ;;  %s2169_s19 = smov [#allocation7]  }
0x1531   :  { %s1797_s20 = sshll.u32 %s2169_s19, 4  ;;  %s1798_s20 = int_to_ptr.vmem [resolvable:$true] %s1797_s20 }
0x1532   :  { %s1592_s24 = sadd.f32 1e-05, %s1589_s23  ;;  %s2135_s1 = scalar_lea.vmem %s1798_s20, 128 }
0x1533   :  { %p2136_p13 = scmp.ne.s32.totalorder %s1798_s20, %s2135_s1  ;;  %p2140_p0 = scmp.lt.s32.totalorder %s1798_s20, %s1798_s20 }
0x1534   :  { %v1593_v24 = vstv %s1592_s24  ;;  %p2141_p1 = scmp.lt.s32.totalorder %s2135_s1, %s2135_s1 }
0x1535   :  { %2092 = vrsqrt.f32 %v1593_v24 }
0x1536   :  { %p2142_p2 = por %p2141_p1, %p2140_p0 }
0x1538   :  { %p2143_p3 = pnand %p2142_p2, %p2136_p13 }
0x153f   :  { %v2093_v31 = vpop.eup %2092 }
0x1540   :  { %2017 = vpush %v2093_v31 }
0x1541   :  { %2019 = vpush %v1635_v45  ;;  %v3287_v45 = vld [vmem:[#allocation43_spill] sm:$0xff] }
0x1542   :  { %2021 = vpush %v1645_v35 }
0x1571   :  { %s2018_s0 = spop %2017 }
0x1572   :  { %v1596_v49 = vstv %s2018_s0  ;;  %s2020_s27 = spop %2019 }
0x1573   :  { %v1597_v12 = vmul.f32 %v1596_v49, %v1591_v55  ;;  %s1647_s28 = smul.f32 0.0009765625, %s2020_s27  ;;  %s2022_s29 = spop %2021 }
0x1574   :  { %s1648_s30 = smul.f32 0.0009765625, %s2022_s29 }
0x1575   :  { %v1598_v13 = vmax.f32 %v1597_v12, 0.0  ;;  %s1649_s3 = smul.f32 %s1647_s28, %s1647_s28  ;;  %v1651_v19 = vstv %s1647_s28 }
0x1576   :  { %v1652_v39 = vsub.f32 %v3072_v11, %v1651_v19 }
0x1577   :  { %s1650_s4 = ssub.f32 %s1648_s30, %s1649_s3  ;;  %1724 = vrot.lane.b32.xlu0 %v1598_v13, %s2168_s22  ;;  %1721 = vrot.lane.b32.xlu1 %v1598_v13, %s2167_s21  ;;  %v1740_v6 = vmul.f32 %v1598_v13, %v3260_v20 }
0x1579   :  { %s1653_s5 = sadd.f32 1e-05, %s1650_s4 }
0x157b   :  { %v1654_v47 = vstv %s1653_s5 }
0x157c   :  { %2094 = vrsqrt.f32 %v1654_v47 }
0x1586   :  { %v2095_v58 = vpop.eup %2094 }
0x1587   :  { %2023 = vpush %v2095_v58 }
0x1588   :  { %2025 = vpush %v1696_v14 }
0x1589   :  { %2027 = vpush %v1706_v60 }
0x15b8   :  { %s2024_s6 = spop %2023 }
0x15b9   :  { %v1657_v62 = vstv %s2024_s6  ;;  %s2026_s7 = spop %2025 }
0x15ba   :  { %v1658_v32 = vmul.f32 %v1657_v62, %v1652_v39  ;;  %s1708_s8 = smul.f32 0.0009765625, %s2026_s7  ;;  %s2028_s9 = spop %2027 }
0x15bb   :  { %s1709_s10 = smul.f32 0.0009765625, %s2028_s9 }
0x15bc   :  { %v1659_v43 = vmax.f32 %v1658_v32, 0.0  ;;  %s1710_s11 = smul.f32 %s1708_s8, %s1708_s8  ;;  %v1712_v11 = vstv %s1708_s8 }
0x15bd   :  { %v1713_v53 = vsub.f32 %v3075_v5, %v1712_v11 }
0x15be   :  { %s1711_s12 = ssub.f32 %s1709_s10, %s1710_s11  ;;  %1727 = vrot.lane.b32.xlu1 %v1659_v43, %s2167_s21  ;;  %v1743_v4 = vmul.f32 %v1659_v43, %v3285_v38 }
0x15c0   :  { %s1714_s13 = sadd.f32 1e-05, %s1711_s12 }
0x15c2   :  { %v1715_v44 = vstv %s1714_s13  ;;  %1730 = vrot.lane.b32.xlu1 %v1659_v43, %s2168_s22 }
0x15c3   :  { %2096 = vrsqrt.f32 %v1715_v44 }
0x15cd   :  { %v2097_v7 = vpop.eup %2096 }
0x15ce   :  { %2029 = vpush %v2097_v7 }
0x15e9   :  { %v1722_v40 = vpop.permute.xlu1 %1721  ;;  %v1725_v3 = vpop.permute.xlu0 %1724 }
0x15ea   :  { %v1723_v17 = vsel %vm233_vm2, %v1722_v40, 0.0  ;;  %v1726_v5 = vsel %vm243_vm3, %v1725_v3, 0.0 }
0x15eb   :  { %v1739_v22 = vmul.f32 %v1723_v17, %v3237_v33  ;;  %v1741_v10 = vmul.f32 %v1726_v5, %v3261_v37 }
0x15ed   :  { %v1748_v9 = vadd.f32 %v1740_v6, %v1739_v22 }
0x15ef   :  { %v1749_v27 = vadd.f32 %v1748_v9, %v1741_v10 }
0x15ff   :  { %s2030_s14 = spop %2029 }
0x1600   :  { %v1718_v18 = vstv %s2030_s14 }
0x1601   :  { %v1719_v52 = vmul.f32 %v1718_v18, %v1713_v53 }
0x1603   :  { %v1720_v34 = vmax.f32 %v1719_v52, 0.0 }
0x1605   :  { %1736 = vrot.lane.b32.xlu1 %v1720_v34, %s2168_s22  ;;  %1733 = vrot.lane.b32.xlu0 %v1720_v34, %s2167_s21  ;;  %v1746_v36 = vmul.f32 %v1720_v34, %v2549_v15 }
0x1630   :  { %v1728_v16 = vpop.permute.xlu1 %1727 }
0x1631   :  { %v1729_v25 = vsel %vm233_vm2, %v1728_v16, 0.0 }
0x1632   :  { %v1742_v29 = vmul.f32 %v1729_v25, %v3262_v59 }
0x1634   :  { %v1750_v23 = vadd.f32 %v1749_v27, %v1742_v29  ;;  %v1731_v33 = vpop.permute.xlu1 %1730 }
0x1635   :  { %v1732_v20 = vsel %vm243_vm3, %v1731_v33, 0.0 }
0x1636   :  { %v1751_v24 = vadd.f32 %v1750_v23, %v1743_v4  ;;  %v1744_v26 = vmul.f32 %v1732_v20, %v3286_v41 }
0x1638   :  { %v1752_v31 = vadd.f32 %v1751_v24, %v1744_v26 }
0x1677   :  { %v1734_v50 = vpop.permute.xlu0 %1733  ;;  %v1737_v57 = vpop.permute.xlu1 %1736 }
0x1678   :  { %v1735_v37 = vsel %vm233_vm2, %v1734_v50, 0.0  ;;  %v1738_v59 = vsel %vm243_vm3, %v1737_v57, 0.0 }
0x1679   :  { %v1745_v35 = vmul.f32 %v1735_v37, %v3287_v45  ;;  %v1747_v55 = vmul.f32 %v1738_v59, %v2554_v28 }
0x167b   :  { %v1753_v42 = vadd.f32 %v1752_v31, %v1745_v35 }
0x167d   :  { %v1754_v0 = vadd.f32 %v1753_v42, %v1746_v36 }
0x167f   :  { %v1755_v46 = vadd.f32 %v1754_v0, %v1747_v55 }
0x1681   :  { %1756 = vadd.xlane.f32.xlu0 %v1755_v46  ;;  %v1765_v49 = vmul.f32 %v1755_v46, %v1755_v46 }
0x1683   :  { %1766 = vadd.xlane.f32.xlu1 %v1765_v49 }
0x170e   :  { %v1757_v56 = vpop.xlane.xlu0 %1756 }
0x170f   :  { %v1758_v12 = vrot.slane %v1757_v56, 4 }
0x1710   :  { %v1767_v13 = vpop.xlane.xlu1 %1766 }
0x1711   :  { %v1759_v61 = vadd.f32 %v1758_v12, %v1757_v56  ;;  %v1768_v48 = vrot.slane %v1767_v13, 4 }
0x1713   :  { %v1760_v21 = vrot.slane %v1759_v61, 2  ;;  %v1769_v63 = vadd.f32 %v1768_v48, %v1767_v13 }
0x1715   :  { %v1761_v47 = vadd.f32 %v1760_v21, %v1759_v61  ;;  %v1770_v2 = vrot.slane %v1769_v63, 2 }
0x1717   :  { %v1771_v51 = vadd.f32 %v1770_v2, %v1769_v63  ;;  %v1762_v54 = vrot.slane %v1761_v47, 1 }
0x1719   :  { %v1763_v15 = vadd.f32 %v1762_v54, %v1761_v47  ;;  %v1772_v8 = vrot.slane %v1771_v51, 1 }
0x171b   :  { %2031 = vpush %v1763_v15  ;;  %v1773_v30 = vadd.f32 %v1772_v8, %v1771_v51 }
0x171d   :  { %2033 = vpush %v1773_v30 }
0x174c   :  { %s2032_s21 = spop %2031 }
0x174d   :  { %s1775_s22 = smul.f32 0.0009765625, %s2032_s21 }
0x174e   :  { %s2034_s15 = spop %2033 }
0x174f   :  { %s1777_s16 = smul.f32 %s1775_s22, %s1775_s22  ;;  %v1779_v14 = vstv %s1775_s22 }
0x1750   :  { %s1776_s17 = smul.f32 0.0009765625, %s2034_s15  ;;  %v1780_v60 = vsub.f32 %v1755_v46, %v1779_v14 }
0x1752   :  { %s1778_s18 = ssub.f32 %s1776_s17, %s1777_s16 }
0x1754   :  { %s1781_s25 = sadd.f32 1e-05, %s1778_s18 }
0x1756   :  { %v1782_v28 = vstv %s1781_s25 }
0x1757   :  { %2098 = vrsqrt.f32 %v1782_v28 }
0x1761   :  { %v2099_v58 = vpop.eup %2098 }
0x1762   :  { %2035 = vpush %v2099_v58 }
0x1793   :  { %s2036_s26 = spop %2035 }
0x1794   :  { %v1785_v19 = vstv %s2036_s26 }
0x1795   :  { %v1786_v39 = vmul.f32 %v1785_v19, %v1780_v60 }
0x1797   :  { %v1787_v62 = vmax.f32 %v1786_v39, 0.0 }
0x1799   :  { %v1788_v32 = vadd.f32 %v1787_v62, %v2930_v1 }
0x179b   :  { %v1789_v43 = vmax.f32 %v1788_v32, 0.0 }
0x179d   :  { %1790 = vst [vmem:[#allocation7] sm:$0xff] %v1789_v43 }
0x179e   :  { %2146 = shalt.err (!%p2143_p3)
}
0x179f   :  { %s2147_s0 = scalar_lea.hbm %s3126_s2, 128 }
0x17a0   :  { %p2148_p4 = scmp.ne.s32.totalorder %s3126_s2, %s2147_s0  ;;  %p2151_p5 = scmp.lt.u32.totalorder %s2147_s0, %s3126_s2 }
0x17a2   :  { %p2153_p6 = pnand %p2151_p5, %p2148_p4 }
0x17a4   :  { %2156 = shalt.err (!%p2153_p6)
}
0x17a5   :  { %1800 = dma.vmem_to_hbm [thread:$0]  %s1798_s20, 128, %s3126_s2, [#allocation4]  }
0x17a6   :  { %2161 = dma.done.wait [#allocation4], 128  }
0x17a7   :  { %2162 = vsyncadd [#allocation4], 4294967168 }
0x17a8   :  { %1804 = vsyncpa [#allocation3], 1 }
0x17a9   :  { %1805 = vsyncpa [#allocation4], 1 }
0x17aa   :  { %1806 = vsyncpa [#allocation5], 1 }

</bundles_post_ra>
